<compile_context>
chip_gen: v6e
topology: v6e:2x2x1
jax: 0.10.0
libtpu: 0.0.40
codegen_flags: <defaults>
</compile_context>

<pallas_src>
import math
import functools

import jax
import jax.numpy as jnp
from jax import lax
from jax.experimental import pallas as pl
from jax.experimental.pallas import tpu as pltpu

PADDING_IDX = 1
LANES = 128  # lane-padding target for every channel dimension

# ---- per-layer parameter layout ------------------------------------------------
# "vec" rows are (LANES,) f32 vectors (LN/BN gains+biases, linear biases, dw taps).
I_FF1_LNG, I_FF1_LNB, I_FF1_B1, I_FF1_B2 = 0, 1, 2, 3
I_ALN_G, I_ALN_B, I_QB, I_KB, I_VB, I_OB = 4, 5, 6, 7, 8, 9
I_CLN_G, I_CLN_B, I_BN_G, I_BN_B = 10, 11, 12, 13
I_FF2_LNG, I_FF2_LNB, I_FF2_B1, I_FF2_B2 = 14, 15, 16, 17
I_FLN_G, I_FLN_B = 18, 19
I_DW = 20                                  # depthwise taps: I_DW .. I_DW + K - 1

# "mat" slots are (LANES, LANES) bf16 matrices.
M_FF1_W1, M_FF1_W2 = 0, 1
M_QW, M_KW, M_VW, M_OW = 2, 3, 4, 5
M_PW1A, M_PW1B, M_PW2 = 6, 7, 8
M_FF2_W1, M_FF2_W2 = 9, 10
NUM_MATS = 11


# ================================================================================
# Kernel 1: whole conformer-layer stack, grid over layers, carry lives in o_ref.
# ================================================================================
def _conformer_stack_kernel(x0_ref, mask_ref, vec_ref, mat_ref, o_ref,
                            *, d_real, dh_real, num_heads, dw_k, t_real):
    layer = pl.program_id(0)

    @pl.when(layer == 0)
    def _():
        o_ref[...] = x0_ref[...]           # seed the VMEM-resident layer carry

    x3 = o_ref[...]                        # (B, Tpad, P) f32, pad lanes/frames handled
    bsz, t_pad, p_dim = x3.shape
    nbt = bsz * t_pad
    dhp = p_dim // num_heads
    x2 = x3.reshape(nbt, p_dim)

    mask = mask_ref[...]                   # (B, Tpad) additive key-padding bias
    vec = vec_ref[0]                       # (NV, P) f32 per-layer vector params

    # time-validity mask for the artificial T padding (frames >= t_real are padding)
    frame_idx = lax.broadcasted_iota(jnp.int32, (bsz, t_pad, p_dim), 1)
    tmask = (frame_idx < t_real).astype(jnp.float32).reshape(nbt, p_dim)

    def w(i):                              # stream one (P, P) bf16 weight on use
        return mat_ref[i]

    def vp2(i):
        return vec[i][None, :]

    def ln(z, gi, bi):                     # LayerNorm over the real d_model channels
        mean = jnp.sum(z, axis=-1, keepdims=True) / d_real
        var = jnp.sum(z * z, axis=-1, keepdims=True) / d_real - mean * mean
        inv = jax.lax.rsqrt(jnp.maximum(var, 0.0) + 1e-5)
        return (z - mean) * inv * vp2(gi) + vp2(bi)

    def ffn(z, lng, lnb, w1, b1, w2, b2):  # LN -> Linear -> SiLU -> Linear
        h = ln(z, lng, lnb)
        h = jnp.dot(h.astype(jnp.bfloat16), w(w1),
                    preferred_element_type=jnp.float32) + vp2(b1)
        h = h * jax.nn.sigmoid(h)
        return jnp.dot(h.astype(jnp.bfloat16), w(w2),
                       preferred_element_type=jnp.float32) + vp2(b2)

    # ---- FFN1 (half residual) ---------------------------------------------------
    x2 = x2 + 0.5 * ffn(x2, I_FF1_LNG, I_FF1_LNB, M_FF1_W1, I_FF1_B1,
                        M_FF1_W2, I_FF1_B2)

    # ---- self attention (pre-LN, per-head, key-padding mask) ---------------------
    h2 = ln(x2, I_ALN_G, I_ALN_B)
    hb = h2.astype(jnp.bfloat16)
    scale = 1.0 / math.sqrt(dh_real)
    qp = (jnp.dot(hb, w(M_QW), preferred_element_type=jnp.float32) + vp2(I_QB)) * scale
    kp = jnp.dot(hb, w(M_KW), preferred_element_type=jnp.float32) + vp2(I_KB)
    vp = jnp.dot(hb, w(M_VW), preferred_element_type=jnp.float32) + vp2(I_VB)
    q3 = qp.astype(jnp.bfloat16).reshape(bsz, t_pad, p_dim)   # bf16 score operands
    k3 = kp.astype(jnp.bfloat16).reshape(bsz, t_pad, p_dim)
    v3 = vp.astype(jnp.bfloat16).reshape(bsz, t_pad, p_dim)
    key_bias = jnp.broadcast_to(mask[:, None, :], (bsz, t_pad, t_pad))  # hoisted once
    head_outs = []
    for head in range(num_heads):          # heads packed into P//H lane slots
        sl = slice(head * dhp, (head + 1) * dhp)
        s = jnp.einsum("bqd,bkd->bqk", q3[:, :, sl], k3[:, :, sl],
                       preferred_element_type=jnp.float32) + key_bias
        m = jnp.max(s, axis=-1, keepdims=True)
        p = jnp.exp(s - m)
        p = p * pl.reciprocal(jnp.sum(p, axis=-1, keepdims=True), approx=True)
        oh = jnp.einsum("bqk,bkd->bqd", p.astype(jnp.bfloat16), v3[:, :, sl],
                        preferred_element_type=jnp.float32)
        head_outs.append(oh.reshape(nbt, dhp))
    attn_cat = jnp.concatenate(head_outs, axis=-1).astype(jnp.bfloat16)  # (nbt, P)
    x2 = x2 + jnp.dot(attn_cat, w(M_OW),                     # single fused out-proj
                      preferred_element_type=jnp.float32) + vp2(I_OB)

    # ---- convolution module: LN -> pw(GLU) -> depthwise(roll) -> BN+SiLU -> pw ---
    h2 = ln(x2, I_CLN_G, I_CLN_B)
    hb = h2.astype(jnp.bfloat16)
    u2 = (jnp.dot(hb, w(M_PW1A), preferred_element_type=jnp.float32) *
          jax.nn.sigmoid(jnp.dot(hb, w(M_PW1B), preferred_element_type=jnp.float32)))
    u2 = u2 * tmask                        # zero pad frames -> exact 'SAME' zero pad
    pad = (dw_k - 1) // 2
    acc2 = jnp.zeros_like(u2)
    for j in range(dw_k):                  # taps: sublane roll + FMA (VPU/XLU, no MXU)
        shift_amt = (pad - j) % nbt
        shifted = u2 if shift_amt == 0 else pltpu.roll(u2, shift=shift_amt, axis=0)
        acc2 = acc2 + shifted * vp2(I_DW + j)
    # BatchNorm1d training-mode statistics over the real (B * t_real) frames only
    nf = float(bsz * t_real)
    acc_m = acc2 * tmask
    bn_mean = jnp.sum(acc_m, axis=0, keepdims=True) / nf
    bn_var = jnp.sum(acc_m * acc_m, axis=0, keepdims=True) / nf - bn_mean * bn_mean
    y = (acc2 - bn_mean) * jax.lax.rsqrt(jnp.maximum(bn_var, 0.0) + 1e-5)
    y = y * vp2(I_BN_G) + vp2(I_BN_B)
    y = y * jax.nn.sigmoid(y)              # SiLU
    x2 = x2 + jnp.dot(y.astype(jnp.bfloat16), w(M_PW2),
                      preferred_element_type=jnp.float32)

    # ---- FFN2 (half residual) + final LayerNorm ----------------------------------
    x2 = x2 + 0.5 * ffn(x2, I_FF2_LNG, I_FF2_LNB, M_FF2_W1, I_FF2_B1,
                        M_FF2_W2, I_FF2_B2)
    x2 = ln(x2, I_FLN_G, I_FLN_B)

    o_ref[...] = x2.reshape(bsz, t_pad, p_dim)


def conformer_layer_stack(x0, mask_bias, vecs, mats, *, d_model, num_heads,
                          dw_kernel, t_real):
    bsz, t_pad, p_dim = x0.shape
    num_layers, nv = vecs.shape[0], vecs.shape[1]
    kernel = functools.partial(
        _conformer_stack_kernel,
        d_real=float(d_model), dh_real=float(d_model // num_heads),
        num_heads=num_heads, dw_k=dw_kernel, t_real=t_real)
    return pl.pallas_call(
        kernel,
        out_shape=jax.ShapeDtypeStruct((bsz, t_pad, p_dim), jnp.float32),
        grid=(num_layers,),
        in_specs=[
            pl.BlockSpec((bsz, t_pad, p_dim), lambda l: (0, 0, 0)),   # seed activation
            pl.BlockSpec((bsz, t_pad), lambda l: (0, 0)),             # key-padding bias
            pl.BlockSpec((1, nv, p_dim), lambda l: (l, 0, 0)),        # layer-l vec params
            pl.BlockSpec((NUM_MATS, p_dim, p_dim), lambda l: (l, 0, 0)),  # layer-l weights
        ],
        out_specs=pl.BlockSpec((bsz, t_pad, p_dim), lambda l: (0, 0, 0)),  # VMEM carry
        compiler_params=pltpu.CompilerParams(
            dimension_semantics=("arbitrary",),
            vmem_limit_bytes=64 * 1024 * 1024),
    )(x0, mask_bias, vecs, mats)


# ================================================================================
# Kernel 2: fused front end (Conv1dSubsampler + positional add + input Linear),
# batch-"parallel" grid axis for megacore.
# ================================================================================
def _frontend_kernel(x_ref, pos_ref, mat_ref, vec_ref, o_ref, *, kernel_sizes):
    h = x_ref[...]                         # (1, T_in, P) f32, channels zero-padded
    bsz, t_cur, p_dim = h.shape
    mi = 0
    # TODO(synk): for long T_in replace the per-tap shift-matrix gather below with a
    #             parity-split + roll (or stride-2 pl.ds loads) to avoid O(T^2) work.
    for stage, k in enumerate(kernel_sizes):
        pad = k // 2
        t_out = (t_cur + 2 * pad - k) // 2 + 1          # stride-2 conv output length
        rows = lax.broadcasted_iota(jnp.int32, (bsz, t_out, t_cur), 1)
        cols = lax.broadcasted_iota(jnp.int32, (bsz, t_out, t_cur), 2)
        hb = h.astype(jnp.bfloat16)
        acc_a = jnp.zeros((bsz * t_out, p_dim), jnp.float32)
        acc_b = jnp.zeros((bsz * t_out, p_dim), jnp.float32)
        for j in range(k):                 # strided conv tap = (bf16) shift matmul
            sel = (cols == 2 * rows + (j - pad)).astype(jnp.bfloat16)  # 0/1 exact
            g = jnp.einsum("boi,bic->boc", sel, hb, preferred_element_type=jnp.float32)
            gb = g.reshape(bsz * t_out, p_dim).astype(jnp.bfloat16)
            acc_a = acc_a + jnp.dot(gb, mat_ref[mi + j],
                                    preferred_element_type=jnp.float32)
            acc_b = acc_b + jnp.dot(gb, mat_ref[mi + k + j],
                                    preferred_element_type=jnp.float32)
        mi += 2 * k
        ba = vec_ref[2 * stage][None, :]
        bb = vec_ref[2 * stage + 1][None, :]
        h = ((acc_a + ba) * jax.nn.sigmoid(acc_b + bb)).reshape(bsz, t_out, p_dim)  # GLU
        t_cur = t_out
    h = h + pos_ref[...]                   # sinusoidal positional term
    hb = h.reshape(bsz * t_cur, p_dim).astype(jnp.bfloat16)
    lin_b = vec_ref[2 * len(kernel_sizes)][None, :]
    out = jnp.dot(hb, mat_ref[mi], preferred_element_type=jnp.float32) + lin_b
    o_ref[...] = out.reshape(bsz, t_cur, p_dim)


def conformer_frontend(x_pad, pos_pad, fe_mat, fe_vec, *, kernel_sizes):
    bsz, t_in, p_dim = x_pad.shape
    t_out = pos_pad.shape[1]
    kernel = functools.partial(_frontend_kernel, kernel_sizes=tuple(kernel_sizes))
    return pl.pallas_call(
        kernel,
        out_shape=jax.ShapeDtypeStruct((bsz, t_out, p_dim), jnp.float32),
        grid=(bsz,),
        in_specs=[
            pl.BlockSpec((1, t_in, p_dim), lambda b: (b, 0, 0)),
            pl.BlockSpec((1, t_out, p_dim), lambda b: (b, 0, 0)),
            pl.BlockSpec(fe_mat.shape, lambda b: (0, 0, 0)),
            pl.BlockSpec(fe_vec.shape, lambda b: (0, 0)),
        ],
        out_specs=pl.BlockSpec((1, t_out, p_dim), lambda b: (b, 0, 0)),
        compiler_params=pltpu.CompilerParams(dimension_semantics=("parallel",)),
    )(x_pad, pos_pad, fe_mat, fe_vec)


# ================================================================================
# Forward pass (plain-JAX glue is only scalar/length math and the tiny pos-emb gather)
# ================================================================================
def conformer_forward(params, x, lengths, *, input_dim, d_model, num_heads,
                      conv_kernel_sizes, depthwise_conv_kernel_size):
    bsz, t_in, _ = x.shape
    p_dim = LANES

    t_out = t_in
    out_len = lengths
    for k in conv_kernel_sizes:
        pad = k // 2
        t_out = (t_out + 2 * pad - k) // 2 + 1
        out_len = jnp.floor((out_len.astype(jnp.float32) - 1.0) / 2.0 + 1.0).astype(jnp.int32)

    # NOTE: as in the torchaudio example, max(lengths) == T_in, so the conv output
    # time length equals max(out_len) and t_out is the reference mask length.
    padding_mask = jnp.arange(t_out)[None, :] >= out_len[:, None]        # (B, T) bool
    valid = jnp.logical_not(padding_mask).astype(jnp.int32)
    positions = jnp.cumsum(valid, axis=1) * valid + PADDING_IDX
    # Reference quirk: `embeddings.to(input)` casts the table to bool (input is the
    # bool padding mask) before the lookup; reproduced exactly.
    emb_bool = params["pos_emb"] != 0.0
    pos = emb_bool[positions].astype(jnp.float32)                        # (B, T, D)
    pos_pad = jnp.zeros((bsz, t_out, p_dim), jnp.float32).at[:, :, :d_model].set(pos)

    x_pad = jnp.zeros((bsz, t_in, p_dim), jnp.float32).at[:, :, :input_dim].set(x)

    h0 = conformer_frontend(x_pad, pos_pad, params["fe_mat"], params["fe_vec"],
                            kernel_sizes=conv_kernel_sizes)

    # Pad time so it is a sublane multiple AND >= t_out + dw_pad so the roll-based
    # depthwise conv picks up exact zero padding from the zeroed pad frames.
    dw_pad = (depthwise_conv_kernel_size - 1) // 2
    t_padded = -(-(t_out + dw_pad) // 8) * 8
    h0_p = jnp.zeros((bsz, t_padded, p_dim), jnp.float32).at[:, :t_out, :].set(h0)
    mask_bias = jnp.where(jnp.arange(t_padded)[None, :] >= out_len[:, None],
                          -1e30, 0.0).astype(jnp.float32)               # (B, Tpad)

    out = conformer_layer_stack(h0_p, mask_bias, params["vec"], params["mat"],
                                d_model=d_model, num_heads=num_heads,
                                dw_kernel=depthwise_conv_kernel_size, t_real=t_out)
    return out[:, :t_out, :d_model], out_len


# ================================================================================
# Deterministic parameter init (shapes follow the torch module), packed/padded to 128.
# ================================================================================
def sinusoidal_embeddings(num_embeddings, dim, padding_idx):
    half = dim // 2
    freq = jnp.exp(jnp.arange(half, dtype=jnp.float32) * (-math.log(10000.0) / (half - 1)))
    emb_t = jnp.arange(num_embeddings, dtype=jnp.float32)[:, None] * freq[None, :]
    emb = jnp.concatenate([jnp.sin(emb_t), jnp.cos(emb_t)], axis=1)
    if dim % 2 == 1:
        emb = jnp.concatenate([emb, jnp.zeros((num_embeddings, 1), jnp.float32)], axis=1)
    if padding_idx is not None:
        emb = emb.at[padding_idx].set(0.0)
    return emb


def init_conformer_params(key, *, num_layers, input_dim, conv_channels, d_model,
                          conv_kernel_sizes, max_source_positions, ffn_dim,
                          num_heads, depthwise_conv_kernel_size):
    p_dim = LANES
    # TODO(synk): dims above 128 need multi-tile packing instead of simple lane padding.
    assert max(input_dim, conv_channels, 2 * d_model, ffn_dim) <= p_dim
    assert d_model % num_heads == 0 and p_dim % num_heads == 0
    heads, dh, dhp = num_heads, d_model // num_heads, p_dim // num_heads
    k_dw = depthwise_conv_kernel_size
    keys = iter(jax.random.split(key, 1024))

    def nrm(shape, scale):
        return scale * jax.random.normal(next(keys), shape, jnp.float32)

    def pad_vec(a):
        return jnp.zeros((p_dim,), jnp.float32).at[: a.shape[0]].set(a)

    def pad_mat(a):
        return jnp.zeros((p_dim, p_dim), jnp.float32).at[: a.shape[0], : a.shape[1]].set(a)

    def head_cols(wm):          # (D, D), output cols = heads*dh -> head-slot padded (P, P)
        w3 = wm.reshape(d_model, heads, dh)
        return (jnp.zeros((p_dim, heads, dhp), jnp.float32)
                .at[:d_model, :, :dh].set(w3).reshape(p_dim, p_dim))

    def head_rows(wm):          # (D, D), input rows = heads*dh -> head-slot padded (P, P)
        w3 = wm.reshape(heads, dh, d_model)
        return (jnp.zeros((heads, dhp, p_dim), jnp.float32)
                .at[:, :dh, :d_model].set(w3).reshape(p_dim, p_dim))

    def head_vec(bv):           # (D,) heads*dh -> (P,)
        return (jnp.zeros((heads, dhp), jnp.float32)
                .at[:, :dh].set(bv.reshape(heads, dh)).reshape(p_dim))

    # ---- front end: Conv1dSubsampler (GLU pre-split) + input Linear ---------------
    fe_mats, fe_vecs = [], []
    cin = input_dim
    n_stages = len(conv_kernel_sizes)
    for i, k in enumerate(conv_kernel_sizes):
        out2 = conv_channels if i < n_stages - 1 else 2 * d_model
        half = out2 // 2
        scale = 1.0 / math.sqrt(cin * k)
        wa = nrm((k, cin, half), scale)
        wb = nrm((k, cin, half), scale)
        fe_mats += [pad_mat(wa[j]) for j in range(k)]
        fe_mats += [pad_mat(wb[j]) for j in range(k)]
        fe_vecs += [pad_vec(nrm((half,), 0.02)), pad_vec(nrm((half,), 0.02))]
        cin = half
    fe_mats.append(pad_mat(nrm((d_model, d_model), 1.0 / math.sqrt(d_model))))
    fe_vecs.append(pad_vec(nrm((d_model,), 0.02)))

    # ---- conformer layers ----------------------------------------------------------
    num_vec_rows = I_DW + k_dw
    sc_d = 1.0 / math.sqrt(d_model)
    sc_f = 1.0 / math.sqrt(ffn_dim)

    def ln_pair():
        return pad_vec(1.0 + nrm((d_model,), 0.01)), pad_vec(nrm((d_model,), 0.01))

    vec_blocks, mat_blocks = [], []
    for _ in range(num_layers):
        v = [None] * num_vec_rows
        m = [None] * NUM_MATS
        v[I_FF1_LNG], v[I_FF1_LNB] = ln_pair()
        m[M_FF1_W1] = pad_mat(nrm((d_model, ffn_dim), sc_d))
        v[I_FF1_B1] = pad_vec(nrm((ffn_dim,), 0.02))
        m[M_FF1_W2] = pad_mat(nrm((ffn_dim, d_model), sc_f))
        v[I_FF1_B2] = pad_vec(nrm((d_model,), 0.02))

        v[I_ALN_G], v[I_ALN_B] = ln_pair()
        m[M_QW] = head_cols(nrm((d_model, d_model), sc_d))
        m[M_KW] = head_cols(nrm((d_model, d_model), sc_d))
        m[M_VW] = head_cols(nrm((d_model, d_model), sc_d))
        v[I_QB] = head_vec(nrm((d_model,), 0.02))
        v[I_KB] = head_vec(nrm((d_model,), 0.02))
        v[I_VB] = head_vec(nrm((d_model,), 0.02))
        m[M_OW] = head_rows(nrm((d_model, d_model), sc_d))
        v[I_OB] = pad_vec(nrm((d_model,), 0.02))

        v[I_CLN_G], v[I_CLN_B] = ln_pair()
        m[M_PW1A] = pad_mat(nrm((d_model, d_model), sc_d))   # GLU halves, no bias
        m[M_PW1B] = pad_mat(nrm((d_model, d_model), sc_d))
        dw = nrm((k_dw, d_model), 1.0 / math.sqrt(k_dw))
        for j in range(k_dw):
            v[I_DW + j] = pad_vec(dw[j])
        v[I_BN_G] = pad_vec(1.0 + nrm((d_model,), 0.01))
        v[I_BN_B] = pad_vec(nrm((d_model,), 0.01))
        m[M_PW2] = pad_mat(nrm((d_model, d_model), sc_d))

        v[I_FF2_LNG], v[I_FF2_LNB] = ln_pair()
        m[M_FF2_W1] = pad_mat(nrm((d_model, ffn_dim), sc_d))
        v[I_FF2_B1] = pad_vec(nrm((ffn_dim,), 0.02))
        m[M_FF2_W2] = pad_mat(nrm((ffn_dim, d_model), sc_f))
        v[I_FF2_B2] = pad_vec(nrm((d_model,), 0.02))

        v[I_FLN_G], v[I_FLN_B] = ln_pair()

        vec_blocks.append(jnp.stack(v))                      # (NV, P)
        mat_blocks.append(jnp.stack(m))                      # (NUM_MATS, P, P)

    return {
        "fe_mat": jnp.stack(fe_mats).astype(jnp.bfloat16),             # (2*sum(k)+1, P, P)
        "fe_vec": jnp.stack(fe_vecs),                                  # (2*stages+1, P)
        "vec": jnp.stack(vec_blocks),                                  # (L, NV, P) f32
        "mat": jnp.concatenate(mat_blocks, axis=0).astype(jnp.bfloat16),  # (L*NM, P, P)
        "pos_emb": sinusoidal_embeddings(max_source_positions + PADDING_IDX + 1,
                                         d_model, PADDING_IDX),
    }


# ================================================================================
if __name__ == "__main__":
    cfg = dict(num_layers=2, input_dim=16, conv_channels=32, d_model=32,
               conv_kernel_sizes=(3, 3), max_source_positions=64, ffn_dim=64,
               num_heads=4, depthwise_conv_kernel_size=7)

    key = jax.random.PRNGKey(0)
    pkey, xkey = jax.random.split(key)
    params = init_conformer_params(pkey, **cfg)

    batch, t_in = 2, 16
    x = jax.random.normal(xkey, (batch, t_in, cfg["input_dim"]), jnp.float32)
    lengths = jnp.array([16, 11], jnp.int32)   # max(lengths) == T_in (torchaudio example)

    fwd = jax.jit(functools.partial(
        conformer_forward,
        input_dim=cfg["input_dim"], d_model=cfg["d_model"], num_heads=cfg["num_heads"],
        conv_kernel_sizes=cfg["conv_kernel_sizes"],
        depthwise_conv_kernel_size=cfg["depthwise_conv_kernel_size"]))

    out, out_lengths = fwd(params, x, lengths)
    jax.block_until_ready((out, out_lengths))

    assert out.shape == (batch, 4, cfg["d_model"]), out.shape
    assert out_lengths.shape == (batch,)
    assert bool(jnp.all(jnp.isfinite(out)))
    print("KERNEL_OK")
</pallas_src>

<mosaic_0001>
module attributes {stable_mosaic.version = 11 : i64} {
  func.func @_frontend_kernel(%arg0: i32, %arg1: memref<1x16x128xf32, #tpu.memory_space<vmem>>, %arg2: memref<1x4x128xf32, #tpu.memory_space<vmem>>, %arg3: memref<13x128x128xbf16, #tpu.memory_space<vmem>>, %arg4: memref<5x128xf32, #tpu.memory_space<vmem>>, %arg5: memref<1x4x128xf32, #tpu.memory_space<vmem>>) attributes {dimension_semantics = [#tpu.dimension_semantics<parallel>], iteration_bounds = array<i64: 2>, scalar_prefetch = 0 : i64, scratch_operands = 0 : i64, tpu.core_type = #tpu.core_type<tc>, window_params = [{transform_indices = @transform_0, window_bounds = array<i64: 1, 16, 128>}, {transform_indices = @transform_1, window_bounds = array<i64: 1, 4, 128>}, {pipeline_mode = #tpu.pipeline_mode<synchronous>, transform_indices = @transform_2, window_bounds = array<i64: 13, 128, 128>}, {pipeline_mode = #tpu.pipeline_mode<synchronous>, transform_indices = @transform_3, window_bounds = array<i64: 5, 128>}, {transform_indices = @transform_4, window_bounds = array<i64: 1, 4, 128>}]} {
    %c0 = arith.constant 0 : index
    %c0_0 = arith.constant 0 : index
    %c0_1 = arith.constant 0 : index
    %0 = vector.load %arg1[%c0, %c0_0, %c0_1] : memref<1x16x128xf32, #tpu.memory_space<vmem>>, vector<1x16x128xf32>
    %1 = tpu.iota {dimensions = array<i32: 1>} : vector<1x8x16xi32>
    %2 = tpu.iota {dimensions = array<i32: 2>} : vector<1x8x16xi32>
    %3 = arith.truncf %0 : vector<1x16x128xf32> to vector<1x16x128xbf16>
    %cst = arith.constant 0.000000e+00 : f32
    %4 = vector.broadcast %cst : f32 to vector<8x128xf32>
    %cst_2 = arith.constant 0.000000e+00 : f32
    %5 = vector.broadcast %cst_2 : f32 to vector<8x128xf32>
    %c2_i32 = arith.constant 2 : i32
    %6 = vector.broadcast %c2_i32 : i32 to vector<1x8x16xi32>
    %7 = arith.muli %6, %1 : vector<1x8x16xi32>
    %c-1_i32 = arith.constant -1 : i32
    %8 = vector.broadcast %c-1_i32 : i32 to vector<1x8x16xi32>
    %9 = arith.addi %7, %8 : vector<1x8x16xi32>
    %10 = arith.cmpi eq, %2, %9 : vector<1x8x16xi32>
    %11 = arith.extui %10 : vector<1x8x16xi1> to vector<1x8x16xi32>
    %12 = arith.sitofp %11 : vector<1x8x16xi32> to vector<1x8x16xf32>
    %13 = arith.truncf %12 : vector<1x8x16xf32> to vector<1x8x16xbf16>
    "tpu.trace_start"() <{level = 10 : i32, message = "boi,bic->boc"}> : () -> ()
    %cst_3 = arith.constant dense<0.000000e+00> : vector<1x8x128xf32>
    %14 = tpu.matmul %13, %3, %cst_3 {dimension_numbers = #tpu.dot_dimension_numbers<[2], [1], [1], [2], [0, 0, 0, 1, 1, 2], [0], [0]>} : vector<1x8x16xbf16>, vector<1x16x128xbf16>, vector<1x8x128xf32> -> vector<1x8x128xf32>
    "tpu.trace_stop"() : () -> ()
    %15 = vector.shape_cast %14 : vector<1x8x128xf32> to vector<8x128xf32>
    %16 = arith.truncf %15 : vector<8x128xf32> to vector<8x128xbf16>
    %c0_4 = arith.constant 0 : index
    %c0_5 = arith.constant 0 : index
    %c0_6 = arith.constant 0 : index
    %17 = vector.load %arg3[%c0_4, %c0_5, %c0_6] : memref<13x128x128xbf16, #tpu.memory_space<vmem>>, vector<1x128x128xbf16>
    %18 = vector.shape_cast %17 : vector<1x128x128xbf16> to vector<128x128xbf16>
    %cst_7 = arith.constant dense<0.000000e+00> : vector<8x128xf32>
    %19 = tpu.matmul %16, %18, %cst_7 {dimension_numbers = #tpu.dot_dimension_numbers<[1], [0], [0], [1], [0, 0, 1, 1], [], []>} : vector<8x128xbf16>, vector<128x128xbf16>, vector<8x128xf32> -> vector<8x128xf32>
    %20 = arith.addf %4, %19 : vector<8x128xf32>
    %c3 = arith.constant 3 : index
    %c0_8 = arith.constant 0 : index
    %c0_9 = arith.constant 0 : index
    %21 = vector.load %arg3[%c3, %c0_8, %c0_9] : memref<13x128x128xbf16, #tpu.memory_space<vmem>>, vector<1x128x128xbf16>
    %22 = vector.shape_cast %21 : vector<1x128x128xbf16> to vector<128x128xbf16>
    %cst_10 = arith.constant dense<0.000000e+00> : vector<8x128xf32>
    %23 = tpu.matmul %16, %22, %cst_10 {dimension_numbers = #tpu.dot_dimension_numbers<[1], [0], [0], [1], [0, 0, 1, 1], [], []>} : vector<8x128xbf16>, vector<128x128xbf16>, vector<8x128xf32> -> vector<8x128xf32>
    %24 = arith.addf %5, %23 : vector<8x128xf32>
    %c2_i32_11 = arith.constant 2 : i32
    %25 = vector.broadcast %c2_i32_11 : i32 to vector<1x8x16xi32>
    %26 = arith.muli %25, %1 : vector<1x8x16xi32>
    %c0_i32 = arith.constant 0 : i32
    %27 = vector.broadcast %c0_i32 : i32 to vector<1x8x16xi32>
    %28 = arith.addi %26, %27 : vector<1x8x16xi32>
    %29 = arith.cmpi eq, %2, %28 : vector<1x8x16xi32>
    %30 = arith.extui %29 : vector<1x8x16xi1> to vector<1x8x16xi32>
    %31 = arith.sitofp %30 : vector<1x8x16xi32> to vector<1x8x16xf32>
    %32 = arith.truncf %31 : vector<1x8x16xf32> to vector<1x8x16xbf16>
    "tpu.trace_start"() <{level = 10 : i32, message = "boi,bic->boc"}> : () -> ()
    %cst_12 = arith.constant dense<0.000000e+00> : vector<1x8x128xf32>
    %33 = tpu.matmul %32, %3, %cst_12 {dimension_numbers = #tpu.dot_dimension_numbers<[2], [1], [1], [2], [0, 0, 0, 1, 1, 2], [0], [0]>} : vector<1x8x16xbf16>, vector<1x16x128xbf16>, vector<1x8x128xf32> -> vector<1x8x128xf32>
    "tpu.trace_stop"() : () -> ()
    %34 = vector.shape_cast %33 : vector<1x8x128xf32> to vector<8x128xf32>
    %35 = arith.truncf %34 : vector<8x128xf32> to vector<8x128xbf16>
    %c1 = arith.constant 1 : index
    %c0_13 = arith.constant 0 : index
    %c0_14 = arith.constant 0 : index
    %36 = vector.load %arg3[%c1, %c0_13, %c0_14] : memref<13x128x128xbf16, #tpu.memory_space<vmem>>, vector<1x128x128xbf16>
    %37 = vector.shape_cast %36 : vector<1x128x128xbf16> to vector<128x128xbf16>
    %cst_15 = arith.constant dense<0.000000e+00> : vector<8x128xf32>
    %38 = tpu.matmul %35, %37, %cst_15 {dimension_numbers = #tpu.dot_dimension_numbers<[1], [0], [0], [1], [0, 0, 1, 1], [], []>} : vector<8x128xbf16>, vector<128x128xbf16>, vector<8x128xf32> -> vector<8x128xf32>
    %39 = arith.addf %20, %38 : vector<8x128xf32>
    %c4 = arith.constant 4 : index
    %c0_16 = arith.constant 0 : index
    %c0_17 = arith.constant 0 : index
    %40 = vector.load %arg3[%c4, %c0_16, %c0_17] : memref<13x128x128xbf16, #tpu.memory_space<vmem>>, vector<1x128x128xbf16>
    %41 = vector.shape_cast %40 : vector<1x128x128xbf16> to vector<128x128xbf16>
    %cst_18 = arith.constant dense<0.000000e+00> : vector<8x128xf32>
    %42 = tpu.matmul %35, %41, %cst_18 {dimension_numbers = #tpu.dot_dimension_numbers<[1], [0], [0], [1], [0, 0, 1, 1], [], []>} : vector<8x128xbf16>, vector<128x128xbf16>, vector<8x128xf32> -> vector<8x128xf32>
    %43 = arith.addf %24, %42 : vector<8x128xf32>
    %c2_i32_19 = arith.constant 2 : i32
    %44 = vector.broadcast %c2_i32_19 : i32 to vector<1x8x16xi32>
    %45 = arith.muli %44, %1 : vector<1x8x16xi32>
    %c1_i32 = arith.constant 1 : i32
    %46 = vector.broadcast %c1_i32 : i32 to vector<1x8x16xi32>
    %47 = arith.addi %45, %46 : vector<1x8x16xi32>
    %48 = arith.cmpi eq, %2, %47 : vector<1x8x16xi32>
    %49 = arith.extui %48 : vector<1x8x16xi1> to vector<1x8x16xi32>
    %50 = arith.sitofp %49 : vector<1x8x16xi32> to vector<1x8x16xf32>
    %51 = arith.truncf %50 : vector<1x8x16xf32> to vector<1x8x16xbf16>
    "tpu.trace_start"() <{level = 10 : i32, message = "boi,bic->boc"}> : () -> ()
    %cst_20 = arith.constant dense<0.000000e+00> : vector<1x8x128xf32>
    %52 = tpu.matmul %51, %3, %cst_20 {dimension_numbers = #tpu.dot_dimension_numbers<[2], [1], [1], [2], [0, 0, 0, 1, 1, 2], [0], [0]>} : vector<1x8x16xbf16>, vector<1x16x128xbf16>, vector<1x8x128xf32> -> vector<1x8x128xf32>
    "tpu.trace_stop"() : () -> ()
    %53 = vector.shape_cast %52 : vector<1x8x128xf32> to vector<8x128xf32>
    %54 = arith.truncf %53 : vector<8x128xf32> to vector<8x128xbf16>
    %c2 = arith.constant 2 : index
    %c0_21 = arith.constant 0 : index
    %c0_22 = arith.constant 0 : index
    %55 = vector.load %arg3[%c2, %c0_21, %c0_22] : memref<13x128x128xbf16, #tpu.memory_space<vmem>>, vector<1x128x128xbf16>
    %56 = vector.shape_cast %55 : vector<1x128x128xbf16> to vector<128x128xbf16>
    %cst_23 = arith.constant dense<0.000000e+00> : vector<8x128xf32>
    %57 = tpu.matmul %54, %56, %cst_23 {dimension_numbers = #tpu.dot_dimension_numbers<[1], [0], [0], [1], [0, 0, 1, 1], [], []>} : vector<8x128xbf16>, vector<128x128xbf16>, vector<8x128xf32> -> vector<8x128xf32>
    %58 = arith.addf %39, %57 : vector<8x128xf32>
    %c5 = arith.constant 5 : index
    %c0_24 = arith.constant 0 : index
    %c0_25 = arith.constant 0 : index
    %59 = vector.load %arg3[%c5, %c0_24, %c0_25] : memref<13x128x128xbf16, #tpu.memory_space<vmem>>, vector<1x128x128xbf16>
    %60 = vector.shape_cast %59 : vector<1x128x128xbf16> to vector<128x128xbf16>
    %cst_26 = arith.constant dense<0.000000e+00> : vector<8x128xf32>
    %61 = tpu.matmul %54, %60, %cst_26 {dimension_numbers = #tpu.dot_dimension_numbers<[1], [0], [0], [1], [0, 0, 1, 1], [], []>} : vector<8x128xbf16>, vector<128x128xbf16>, vector<8x128xf32> -> vector<8x128xf32>
    %62 = arith.addf %43, %61 : vector<8x128xf32>
    %c0_27 = arith.constant 0 : index
    %c0_28 = arith.constant 0 : index
    %63 = vector.load %arg4[%c0_27, %c0_28] : memref<5x128xf32, #tpu.memory_space<vmem>>, vector<1x128xf32>
    %64 = vector.shape_cast %63 : vector<1x128xf32> to vector<128xf32>
    %65 = vector.shape_cast %64 : vector<128xf32> to vector<1x128xf32>
    %c1_29 = arith.constant 1 : index
    %c0_30 = arith.constant 0 : index
    %66 = vector.load %arg4[%c1_29, %c0_30] : memref<5x128xf32, #tpu.memory_space<vmem>>, vector<1x128xf32>
    %67 = vector.shape_cast %66 : vector<1x128xf32> to vector<128xf32>
    %68 = vector.shape_cast %67 : vector<128xf32> to vector<1x128xf32>
    %69 = vector.broadcast %65 : vector<1x128xf32> to vector<8x128xf32>
    %70 = arith.addf %58, %69 : vector<8x128xf32>
    %71 = vector.broadcast %68 : vector<1x128xf32> to vector<8x128xf32>
    %72 = arith.addf %62, %71 : vector<8x128xf32>
    %73 = arith.negf %72 : vector<8x128xf32>
    %74 = math.exp %73 : vector<8x128xf32>
    %cst_31 = arith.constant 1.000000e+00 : f32
    %75 = vector.broadcast %cst_31 : f32 to vector<8x128xf32>
    %76 = arith.addf %75, %74 : vector<8x128xf32>
    %77 = arith.divf %75, %76 : vector<8x128xf32>
    %78 = arith.mulf %70, %77 : vector<8x128xf32>
    %79 = vector.shape_cast %78 : vector<8x128xf32> to vector<1x8x128xf32>
    %80 = tpu.iota {dimensions = array<i32: 1>} : vector<1x4x8xi32>
    %81 = tpu.iota {dimensions = array<i32: 2>} : vector<1x4x8xi32>
    %82 = arith.truncf %79 : vector<1x8x128xf32> to vector<1x8x128xbf16>
    %cst_32 = arith.constant 0.000000e+00 : f32
    %83 = vector.broadcast %cst_32 : f32 to vector<4x128xf32>
    %cst_33 = arith.constant 0.000000e+00 : f32
    %84 = vector.broadcast %cst_33 : f32 to vector<4x128xf32>
    %c2_i32_34 = arith.constant 2 : i32
    %85 = vector.broadcast %c2_i32_34 : i32 to vector<1x4x8xi32>
    %86 = arith.muli %85, %80 : vector<1x4x8xi32>
    %c-1_i32_35 = arith.constant -1 : i32
    %87 = vector.broadcast %c-1_i32_35 : i32 to vector<1x4x8xi32>
    %88 = arith.addi %86, %87 : vector<1x4x8xi32>
    %89 = arith.cmpi eq, %81, %88 : vector<1x4x8xi32>
    %90 = arith.extui %89 : vector<1x4x8xi1> to vector<1x4x8xi32>
    %91 = arith.sitofp %90 : vector<1x4x8xi32> to vector<1x4x8xf32>
    %92 = arith.truncf %91 : vector<1x4x8xf32> to vector<1x4x8xbf16>
    "tpu.trace_start"() <{level = 10 : i32, message = "boi,bic->boc"}> : () -> ()
    %cst_36 = arith.constant dense<0.000000e+00> : vector<1x4x128xf32>
    %93 = tpu.matmul %92, %82, %cst_36 {dimension_numbers = #tpu.dot_dimension_numbers<[2], [1], [1], [2], [0, 0, 0, 1, 1, 2], [0], [0]>} : vector<1x4x8xbf16>, vector<1x8x128xbf16>, vector<1x4x128xf32> -> vector<1x4x128xf32>
    "tpu.trace_stop"() : () -> ()
    %94 = vector.shape_cast %93 : vector<1x4x128xf32> to vector<4x128xf32>
    %95 = arith.truncf %94 : vector<4x128xf32> to vector<4x128xbf16>
    %c6 = arith.constant 6 : index
    %c0_37 = arith.constant 0 : index
    %c0_38 = arith.constant 0 : index
    %96 = vector.load %arg3[%c6, %c0_37, %c0_38] : memref<13x128x128xbf16, #tpu.memory_space<vmem>>, vector<1x128x128xbf16>
    %97 = vector.shape_cast %96 : vector<1x128x128xbf16> to vector<128x128xbf16>
    %cst_39 = arith.constant dense<0.000000e+00> : vector<4x128xf32>
    %98 = tpu.matmul %95, %97, %cst_39 {dimension_numbers = #tpu.dot_dimension_numbers<[1], [0], [0], [1], [0, 0, 1, 1], [], []>} : vector<4x128xbf16>, vector<128x128xbf16>, vector<4x128xf32> -> vector<4x128xf32>
    %99 = arith.addf %83, %98 : vector<4x128xf32>
    %c9 = arith.constant 9 : index
    %c0_40 = arith.constant 0 : index
    %c0_41 = arith.constant 0 : index
    %100 = vector.load %arg3[%c9, %c0_40, %c0_41] : memref<13x128x128xbf16, #tpu.memory_space<vmem>>, vector<1x128x128xbf16>
    %101 = vector.shape_cast %100 : vector<1x128x128xbf16> to vector<128x128xbf16>
    %cst_42 = arith.constant dense<0.000000e+00> : vector<4x128xf32>
    %102 = tpu.matmul %95, %101, %cst_42 {dimension_numbers = #tpu.dot_dimension_numbers<[1], [0], [0], [1], [0, 0, 1, 1], [], []>} : vector<4x128xbf16>, vector<128x128xbf16>, vector<4x128xf32> -> vector<4x128xf32>
    %103 = arith.addf %84, %102 : vector<4x128xf32>
    %c2_i32_43 = arith.constant 2 : i32
    %104 = vector.broadcast %c2_i32_43 : i32 to vector<1x4x8xi32>
    %105 = arith.muli %104, %80 : vector<1x4x8xi32>
    %c0_i32_44 = arith.constant 0 : i32
    %106 = vector.broadcast %c0_i32_44 : i32 to vector<1x4x8xi32>
    %107 = arith.addi %105, %106 : vector<1x4x8xi32>
    %108 = arith.cmpi eq, %81, %107 : vector<1x4x8xi32>
    %109 = arith.extui %108 : vector<1x4x8xi1> to vector<1x4x8xi32>
    %110 = arith.sitofp %109 : vector<1x4x8xi32> to vector<1x4x8xf32>
    %111 = arith.truncf %110 : vector<1x4x8xf32> to vector<1x4x8xbf16>
    "tpu.trace_start"() <{level = 10 : i32, message = "boi,bic->boc"}> : () -> ()
    %cst_45 = arith.constant dense<0.000000e+00> : vector<1x4x128xf32>
    %112 = tpu.matmul %111, %82, %cst_45 {dimension_numbers = #tpu.dot_dimension_numbers<[2], [1], [1], [2], [0, 0, 0, 1, 1, 2], [0], [0]>} : vector<1x4x8xbf16>, vector<1x8x128xbf16>, vector<1x4x128xf32> -> vector<1x4x128xf32>
    "tpu.trace_stop"() : () -> ()
    %113 = vector.shape_cast %112 : vector<1x4x128xf32> to vector<4x128xf32>
    %114 = arith.truncf %113 : vector<4x128xf32> to vector<4x128xbf16>
    %c7 = arith.constant 7 : index
    %c0_46 = arith.constant 0 : index
    %c0_47 = arith.constant 0 : index
    %115 = vector.load %arg3[%c7, %c0_46, %c0_47] : memref<13x128x128xbf16, #tpu.memory_space<vmem>>, vector<1x128x128xbf16>
    %116 = vector.shape_cast %115 : vector<1x128x128xbf16> to vector<128x128xbf16>
    %cst_48 = arith.constant dense<0.000000e+00> : vector<4x128xf32>
    %117 = tpu.matmul %114, %116, %cst_48 {dimension_numbers = #tpu.dot_dimension_numbers<[1], [0], [0], [1], [0, 0, 1, 1], [], []>} : vector<4x128xbf16>, vector<128x128xbf16>, vector<4x128xf32> -> vector<4x128xf32>
    %118 = arith.addf %99, %117 : vector<4x128xf32>
    %c10 = arith.constant 10 : index
    %c0_49 = arith.constant 0 : index
    %c0_50 = arith.constant 0 : index
    %119 = vector.load %arg3[%c10, %c0_49, %c0_50] : memref<13x128x128xbf16, #tpu.memory_space<vmem>>, vector<1x128x128xbf16>
    %120 = vector.shape_cast %119 : vector<1x128x128xbf16> to vector<128x128xbf16>
    %cst_51 = arith.constant dense<0.000000e+00> : vector<4x128xf32>
    %121 = tpu.matmul %114, %120, %cst_51 {dimension_numbers = #tpu.dot_dimension_numbers<[1], [0], [0], [1], [0, 0, 1, 1], [], []>} : vector<4x128xbf16>, vector<128x128xbf16>, vector<4x128xf32> -> vector<4x128xf32>
    %122 = arith.addf %103, %121 : vector<4x128xf32>
    %c2_i32_52 = arith.constant 2 : i32
    %123 = vector.broadcast %c2_i32_52 : i32 to vector<1x4x8xi32>
    %124 = arith.muli %123, %80 : vector<1x4x8xi32>
    %c1_i32_53 = arith.constant 1 : i32
    %125 = vector.broadcast %c1_i32_53 : i32 to vector<1x4x8xi32>
    %126 = arith.addi %124, %125 : vector<1x4x8xi32>
    %127 = arith.cmpi eq, %81, %126 : vector<1x4x8xi32>
    %128 = arith.extui %127 : vector<1x4x8xi1> to vector<1x4x8xi32>
    %129 = arith.sitofp %128 : vector<1x4x8xi32> to vector<1x4x8xf32>
    %130 = arith.truncf %129 : vector<1x4x8xf32> to vector<1x4x8xbf16>
    "tpu.trace_start"() <{level = 10 : i32, message = "boi,bic->boc"}> : () -> ()
    %cst_54 = arith.constant dense<0.000000e+00> : vector<1x4x128xf32>
    %131 = tpu.matmul %130, %82, %cst_54 {dimension_numbers = #tpu.dot_dimension_numbers<[2], [1], [1], [2], [0, 0, 0, 1, 1, 2], [0], [0]>} : vector<1x4x8xbf16>, vector<1x8x128xbf16>, vector<1x4x128xf32> -> vector<1x4x128xf32>
    "tpu.trace_stop"() : () -> ()
    %132 = vector.shape_cast %131 : vector<1x4x128xf32> to vector<4x128xf32>
    %133 = arith.truncf %132 : vector<4x128xf32> to vector<4x128xbf16>
    %c8 = arith.constant 8 : index
    %c0_55 = arith.constant 0 : index
    %c0_56 = arith.constant 0 : index
    %134 = vector.load %arg3[%c8, %c0_55, %c0_56] : memref<13x128x128xbf16, #tpu.memory_space<vmem>>, vector<1x128x128xbf16>
    %135 = vector.shape_cast %134 : vector<1x128x128xbf16> to vector<128x128xbf16>
    %cst_57 = arith.constant dense<0.000000e+00> : vector<4x128xf32>
    %136 = tpu.matmul %133, %135, %cst_57 {dimension_numbers = #tpu.dot_dimension_numbers<[1], [0], [0], [1], [0, 0, 1, 1], [], []>} : vector<4x128xbf16>, vector<128x128xbf16>, vector<4x128xf32> -> vector<4x128xf32>
    %137 = arith.addf %118, %136 : vector<4x128xf32>
    %c11 = arith.constant 11 : index
    %c0_58 = arith.constant 0 : index
    %c0_59 = arith.constant 0 : index
    %138 = vector.load %arg3[%c11, %c0_58, %c0_59] : memref<13x128x128xbf16, #tpu.memory_space<vmem>>, vector<1x128x128xbf16>
    %139 = vector.shape_cast %138 : vector<1x128x128xbf16> to vector<128x128xbf16>
    %cst_60 = arith.constant dense<0.000000e+00> : vector<4x128xf32>
    %140 = tpu.matmul %133, %139, %cst_60 {dimension_numbers = #tpu.dot_dimension_numbers<[1], [0], [0], [1], [0, 0, 1, 1], [], []>} : vector<4x128xbf16>, vector<128x128xbf16>, vector<4x128xf32> -> vector<4x128xf32>
    %141 = arith.addf %122, %140 : vector<4x128xf32>
    %c2_61 = arith.constant 2 : index
    %c0_62 = arith.constant 0 : index
    %142 = vector.load %arg4[%c2_61, %c0_62] : memref<5x128xf32, #tpu.memory_space<vmem>>, vector<1x128xf32>
    %143 = vector.shape_cast %142 : vector<1x128xf32> to vector<128xf32>
    %144 = vector.shape_cast %143 : vector<128xf32> to vector<1x128xf32>
    %c3_63 = arith.constant 3 : index
    %c0_64 = arith.constant 0 : index
    %145 = vector.load %arg4[%c3_63, %c0_64] : memref<5x128xf32, #tpu.memory_space<vmem>>, vector<1x128xf32>
    %146 = vector.shape_cast %145 : vector<1x128xf32> to vector<128xf32>
    %147 = vector.shape_cast %146 : vector<128xf32> to vector<1x128xf32>
    %148 = vector.broadcast %144 : vector<1x128xf32> to vector<4x128xf32>
    %149 = arith.addf %137, %148 : vector<4x128xf32>
    %150 = vector.broadcast %147 : vector<1x128xf32> to vector<4x128xf32>
    %151 = arith.addf %141, %150 : vector<4x128xf32>
    %152 = arith.negf %151 : vector<4x128xf32>
    %153 = math.exp %152 : vector<4x128xf32>
    %cst_65 = arith.constant 1.000000e+00 : f32
    %154 = vector.broadcast %cst_65 : f32 to vector<4x128xf32>
    %155 = arith.addf %154, %153 : vector<4x128xf32>
    %156 = arith.divf %154, %155 : vector<4x128xf32>
    %157 = arith.mulf %149, %156 : vector<4x128xf32>
    %158 = vector.shape_cast %157 : vector<4x128xf32> to vector<1x4x128xf32>
    %c0_66 = arith.constant 0 : index
    %c0_67 = arith.constant 0 : index
    %c0_68 = arith.constant 0 : index
    %159 = vector.load %arg2[%c0_66, %c0_67, %c0_68] : memref<1x4x128xf32, #tpu.memory_space<vmem>>, vector<1x4x128xf32>
    %160 = arith.addf %158, %159 : vector<1x4x128xf32>
    %161 = vector.shape_cast %160 : vector<1x4x128xf32> to vector<4x128xf32>
    %162 = arith.truncf %161 : vector<4x128xf32> to vector<4x128xbf16>
    %c4_69 = arith.constant 4 : index
    %c0_70 = arith.constant 0 : index
    %163 = vector.load %arg4[%c4_69, %c0_70] : memref<5x128xf32, #tpu.memory_space<vmem>>, vector<1x128xf32>
    %164 = vector.shape_cast %163 : vector<1x128xf32> to vector<128xf32>
    %165 = vector.shape_cast %164 : vector<128xf32> to vector<1x128xf32>
    %c12 = arith.constant 12 : index
    %c0_71 = arith.constant 0 : index
    %c0_72 = arith.constant 0 : index
    %166 = vector.load %arg3[%c12, %c0_71, %c0_72] : memref<13x128x128xbf16, #tpu.memory_space<vmem>>, vector<1x128x128xbf16>
    %167 = vector.shape_cast %166 : vector<1x128x128xbf16> to vector<128x128xbf16>
    %cst_73 = arith.constant dense<0.000000e+00> : vector<4x128xf32>
    %168 = tpu.matmul %162, %167, %cst_73 {dimension_numbers = #tpu.dot_dimension_numbers<[1], [0], [0], [1], [0, 0, 1, 1], [], []>} : vector<4x128xbf16>, vector<128x128xbf16>, vector<4x128xf32> -> vector<4x128xf32>
    %169 = vector.broadcast %165 : vector<1x128xf32> to vector<4x128xf32>
    %170 = arith.addf %168, %169 : vector<4x128xf32>
    %171 = vector.shape_cast %170 : vector<4x128xf32> to vector<1x4x128xf32>
    %c0_74 = arith.constant 0 : index
    %c0_75 = arith.constant 0 : index
    %c0_76 = arith.constant 0 : index
    %172 = vector.load %arg5[%c0_74, %c0_75, %c0_76] : memref<1x4x128xf32, #tpu.memory_space<vmem>>, vector<1x4x128xf32>
    tpu.vector_store %arg5[%c0_74, %c0_75, %c0_76], %171 {strides = array<i32>} : memref<1x4x128xf32, #tpu.memory_space<vmem>>, vector<1x4x128xf32>,
    return
  }
  func.func @transform_0(%arg0: i32) -> (i32, i32, i32) {
    %c0_i32 = arith.constant 0 : i32
    %c0_i32_0 = arith.constant 0 : i32
    %c0_i32_1 = arith.constant 0 : i32
    return %arg0, %c0_i32, %c0_i32_0 : i32, i32, i32
  }
  func.func @transform_1(%arg0: i32) -> (i32, i32, i32) {
    %c0_i32 = arith.constant 0 : i32
    %c0_i32_0 = arith.constant 0 : i32
    %c0_i32_1 = arith.constant 0 : i32
    return %arg0, %c0_i32, %c0_i32_0 : i32, i32, i32
  }
  func.func @transform_2(%arg0: i32) -> (i32, i32, i32) {
    %c0_i32 = arith.constant 0 : i32
    %c0_i32_0 = arith.constant 0 : i32
    %c0_i32_1 = arith.constant 0 : i32
    %c0_i32_2 = arith.constant 0 : i32
    return %c0_i32, %c0_i32_0, %c0_i32_1 : i32, i32, i32
  }
  func.func @transform_3(%arg0: i32) -> (i32, i32) {
    %c0_i32 = arith.constant 0 : i32
    %c0_i32_0 = arith.constant 0 : i32
    %c0_i32_1 = arith.constant 0 : i32
    return %c0_i32, %c0_i32_0 : i32, i32
  }
  func.func @transform_4(%arg0: i32) -> (i32, i32, i32) {
    %c0_i32 = arith.constant 0 : i32
    %c0_i32_0 = arith.constant 0 : i32
    %c0_i32_1 = arith.constant 0 : i32
    return %arg0, %c0_i32, %c0_i32_0 : i32, i32, i32
  }
}

module attributes {stable_mosaic.version = 11 : i64} {
  func.func @_conformer_stack_kernel(%arg0: i32, %arg1: memref<2x8x128xf32, #tpu.memory_space<vmem>>, %arg2: memref<2x8xf32, #tpu.memory_space<vmem>>, %arg3: memref<1x27x128xf32, #tpu.memory_space<vmem>>, %arg4: memref<11x128x128xbf16, #tpu.memory_space<vmem>>, %arg5: memref<2x8x128xf32, #tpu.memory_space<vmem>>) attributes {dimension_semantics = [#tpu.dimension_semantics<arbitrary>], iteration_bounds = array<i64: 2>, scalar_prefetch = 0 : i64, scratch_operands = 0 : i64, tpu.core_type = #tpu.core_type<tc>, window_params = [{pipeline_mode = #tpu.pipeline_mode<synchronous>, transform_indices = @transform_0, window_bounds = array<i64: 2, 8, 128>}, {pipeline_mode = #tpu.pipeline_mode<synchronous>, transform_indices = @transform_1, window_bounds = array<i64: 2, 8>}, {transform_indices = @transform_2, window_bounds = array<i64: 1, 27, 128>}, {transform_indices = @transform_3, window_bounds = array<i64: 11, 128, 128>}, {pipeline_mode = #tpu.pipeline_mode<synchronous>, transform_indices = @transform_4, window_bounds = array<i64: 2, 8, 128>}]} {
    %c0_i32 = arith.constant 0 : i32
    %0 = arith.cmpi eq, %arg0, %c0_i32 : i32
    %1 = arith.extui %0 : i1 to i32
    %c0_i32_0 = arith.constant 0 : i32
    %2 = arith.cmpi ne, %1, %c0_i32_0 : i32
    scf.if %2 {
      %c0_104 = arith.constant 0 : index
      %c0_105 = arith.constant 0 : index
      %c0_106 = arith.constant 0 : index
      %444 = vector.load %arg1[%c0_104, %c0_105, %c0_106] : memref<2x8x128xf32, #tpu.memory_space<vmem>>, vector<2x8x128xf32>
      %c0_107 = arith.constant 0 : index
      %c0_108 = arith.constant 0 : index
      %c0_109 = arith.constant 0 : index
      %445 = vector.load %arg5[%c0_107, %c0_108, %c0_109] : memref<2x8x128xf32, #tpu.memory_space<vmem>>, vector<2x8x128xf32>
      tpu.vector_store %arg5[%c0_107, %c0_108, %c0_109], %444 {strides = array<i32>} : memref<2x8x128xf32, #tpu.memory_space<vmem>>, vector<2x8x128xf32>,
    } else {
    }
    %c0 = arith.constant 0 : index
    %c0_1 = arith.constant 0 : index
    %c0_2 = arith.constant 0 : index
    %3 = vector.load %arg5[%c0, %c0_1, %c0_2] : memref<2x8x128xf32, #tpu.memory_space<vmem>>, vector<2x8x128xf32>
    %4 = vector.shape_cast %3 : vector<2x8x128xf32> to vector<16x128xf32>
    %c0_3 = arith.constant 0 : index
    %c0_4 = arith.constant 0 : index
    %5 = vector.load %arg2[%c0_3, %c0_4] : memref<2x8xf32, #tpu.memory_space<vmem>>, vector<2x8xf32>
    %c0_5 = arith.constant 0 : index
    %c0_6 = arith.constant 0 : index
    %c0_7 = arith.constant 0 : index
    %6 = vector.load %arg3[%c0_5, %c0_6, %c0_7] : memref<1x27x128xf32, #tpu.memory_space<vmem>>, vector<1x27x128xf32>
    %7 = vector.shape_cast %6 : vector<1x27x128xf32> to vector<27x128xf32>
    %8 = tpu.iota {dimensions = array<i32: 1>} : vector<2x8x128xi32>
    %c4_i32 = arith.constant 4 : i32
    %9 = vector.broadcast %c4_i32 : i32 to vector<2x8x128xi32>
    %10 = arith.cmpi slt, %8, %9 : vector<2x8x128xi32>
    %11 = arith.extui %10 : vector<2x8x128xi1> to vector<2x8x128xi32>
    %12 = arith.sitofp %11 : vector<2x8x128xi32> to vector<2x8x128xf32>
    %13 = vector.shape_cast %12 : vector<2x8x128xf32> to vector<16x128xf32>
    %cst = arith.constant dense<0.000000e+00> : vector<16xf32>
    %14 = vector.multi_reduction <add>, %4, %cst [1] : vector<16x128xf32> to vector<16xf32>
    %15 = vector.shape_cast %14 : vector<16xf32> to vector<16x1xf32>
    %cst_8 = arith.constant 3.200000e+01 : f32
    %16 = vector.broadcast %cst_8 : f32 to vector<16x1xf32>
    %17 = arith.divf %15, %16 : vector<16x1xf32>
    %18 = arith.mulf %4, %4 : vector<16x128xf32>
    %cst_9 = arith.constant dense<0.000000e+00> : vector<16xf32>
    %19 = vector.multi_reduction <add>, %18, %cst_9 [1] : vector<16x128xf32> to vector<16xf32>
    %20 = vector.shape_cast %19 : vector<16xf32> to vector<16x1xf32>
    %cst_10 = arith.constant 3.200000e+01 : f32
    %21 = vector.broadcast %cst_10 : f32 to vector<16x1xf32>
    %22 = arith.divf %20, %21 : vector<16x1xf32>
    %23 = arith.mulf %17, %17 : vector<16x1xf32>
    %24 = arith.subf %22, %23 : vector<16x1xf32>
    %cst_11 = arith.constant 0.000000e+00 : f32
    %25 = vector.broadcast %cst_11 : f32 to vector<16x1xf32>
    %26 = arith.maximumf %24, %25 : vector<16x1xf32>
    %cst_12 = arith.constant 9.99999974E-6 : f32
    %27 = vector.broadcast %cst_12 : f32 to vector<16x1xf32>
    %28 = arith.addf %26, %27 : vector<16x1xf32>
    %29 = math.rsqrt %28 : vector<16x1xf32>
    %30 = vector.broadcast %17 : vector<16x1xf32> to vector<16x128xf32>
    %31 = arith.subf %4, %30 : vector<16x128xf32>
    %32 = vector.broadcast %29 : vector<16x1xf32> to vector<16x128xf32>
    %33 = arith.mulf %31, %32 : vector<16x128xf32>
    %34 = vector.extract_strided_slice %7 {offsets = [0, 0], sizes = [1, 128], strides = [1, 1]} : vector<27x128xf32> to vector<1x128xf32>
    %35 = vector.shape_cast %34 : vector<1x128xf32> to vector<128xf32>
    %36 = vector.shape_cast %35 : vector<128xf32> to vector<1x128xf32>
    %37 = vector.broadcast %36 : vector<1x128xf32> to vector<16x128xf32>
    %38 = arith.mulf %33, %37 : vector<16x128xf32>
    %39 = vector.extract_strided_slice %7 {offsets = [1, 0], sizes = [1, 128], strides = [1, 1]} : vector<27x128xf32> to vector<1x128xf32>
    %40 = vector.shape_cast %39 : vector<1x128xf32> to vector<128xf32>
    %41 = vector.shape_cast %40 : vector<128xf32> to vector<1x128xf32>
    %42 = vector.broadcast %41 : vector<1x128xf32> to vector<16x128xf32>
    %43 = arith.addf %38, %42 : vector<16x128xf32>
    %44 = arith.truncf %43 : vector<16x128xf32> to vector<16x128xbf16>
    %c0_13 = arith.constant 0 : index
    %c0_14 = arith.constant 0 : index
    %c0_15 = arith.constant 0 : index
    %45 = vector.load %arg4[%c0_13, %c0_14, %c0_15] : memref<11x128x128xbf16, #tpu.memory_space<vmem>>, vector<1x128x128xbf16>
    %46 = vector.shape_cast %45 : vector<1x128x128xbf16> to vector<128x128xbf16>
    %cst_16 = arith.constant dense<0.000000e+00> : vector<16x128xf32>
    %47 = tpu.matmul %44, %46, %cst_16 {dimension_numbers = #tpu.dot_dimension_numbers<[1], [0], [0], [1], [0, 0, 1, 1], [], []>} : vector<16x128xbf16>, vector<128x128xbf16>, vector<16x128xf32> -> vector<16x128xf32>
    %48 = vector.extract_strided_slice %7 {offsets = [2, 0], sizes = [1, 128], strides = [1, 1]} : vector<27x128xf32> to vector<1x128xf32>
    %49 = vector.shape_cast %48 : vector<1x128xf32> to vector<128xf32>
    %50 = vector.shape_cast %49 : vector<128xf32> to vector<1x128xf32>
    %51 = vector.broadcast %50 : vector<1x128xf32> to vector<16x128xf32>
    %52 = arith.addf %47, %51 : vector<16x128xf32>
    %53 = arith.negf %52 : vector<16x128xf32>
    %54 = math.exp %53 : vector<16x128xf32>
    %cst_17 = arith.constant 1.000000e+00 : f32
    %55 = vector.broadcast %cst_17 : f32 to vector<16x128xf32>
    %56 = arith.addf %55, %54 : vector<16x128xf32>
    %57 = arith.divf %55, %56 : vector<16x128xf32>
    %58 = arith.mulf %52, %57 : vector<16x128xf32>
    %59 = arith.truncf %58 : vector<16x128xf32> to vector<16x128xbf16>
    %c1 = arith.constant 1 : index
    %c0_18 = arith.constant 0 : index
    %c0_19 = arith.constant 0 : index
    %60 = vector.load %arg4[%c1, %c0_18, %c0_19] : memref<11x128x128xbf16, #tpu.memory_space<vmem>>, vector<1x128x128xbf16>
    %61 = vector.shape_cast %60 : vector<1x128x128xbf16> to vector<128x128xbf16>
    %cst_20 = arith.constant dense<0.000000e+00> : vector<16x128xf32>
    %62 = tpu.matmul %59, %61, %cst_20 {dimension_numbers = #tpu.dot_dimension_numbers<[1], [0], [0], [1], [0, 0, 1, 1], [], []>} : vector<16x128xbf16>, vector<128x128xbf16>, vector<16x128xf32> -> vector<16x128xf32>
    %63 = vector.extract_strided_slice %7 {offsets = [3, 0], sizes = [1, 128], strides = [1, 1]} : vector<27x128xf32> to vector<1x128xf32>
    %64 = vector.shape_cast %63 : vector<1x128xf32> to vector<128xf32>
    %65 = vector.shape_cast %64 : vector<128xf32> to vector<1x128xf32>
    %66 = vector.broadcast %65 : vector<1x128xf32> to vector<16x128xf32>
    %67 = arith.addf %62, %66 : vector<16x128xf32>
    %cst_21 = arith.constant 5.000000e-01 : f32
    %68 = vector.broadcast %cst_21 : f32 to vector<16x128xf32>
    %69 = arith.mulf %68, %67 : vector<16x128xf32>
    %70 = arith.addf %4, %69 : vector<16x128xf32>
    %cst_22 = arith.constant dense<0.000000e+00> : vector<16xf32>
    %71 = vector.multi_reduction <add>, %70, %cst_22 [1] : vector<16x128xf32> to vector<16xf32>
    %72 = vector.shape_cast %71 : vector<16xf32> to vector<16x1xf32>
    %cst_23 = arith.constant 3.200000e+01 : f32
    %73 = vector.broadcast %cst_23 : f32 to vector<16x1xf32>
    %74 = arith.divf %72, %73 : vector<16x1xf32>
    %75 = arith.mulf %70, %70 : vector<16x128xf32>
    %cst_24 = arith.constant dense<0.000000e+00> : vector<16xf32>
    %76 = vector.multi_reduction <add>, %75, %cst_24 [1] : vector<16x128xf32> to vector<16xf32>
    %77 = vector.shape_cast %76 : vector<16xf32> to vector<16x1xf32>
    %cst_25 = arith.constant 3.200000e+01 : f32
    %78 = vector.broadcast %cst_25 : f32 to vector<16x1xf32>
    %79 = arith.divf %77, %78 : vector<16x1xf32>
    %80 = arith.mulf %74, %74 : vector<16x1xf32>
    %81 = arith.subf %79, %80 : vector<16x1xf32>
    %cst_26 = arith.constant 0.000000e+00 : f32
    %82 = vector.broadcast %cst_26 : f32 to vector<16x1xf32>
    %83 = arith.maximumf %81, %82 : vector<16x1xf32>
    %cst_27 = arith.constant 9.99999974E-6 : f32
    %84 = vector.broadcast %cst_27 : f32 to vector<16x1xf32>
    %85 = arith.addf %83, %84 : vector<16x1xf32>
    %86 = math.rsqrt %85 : vector<16x1xf32>
    %87 = vector.broadcast %74 : vector<16x1xf32> to vector<16x128xf32>
    %88 = arith.subf %70, %87 : vector<16x128xf32>
    %89 = vector.broadcast %86 : vector<16x1xf32> to vector<16x128xf32>
    %90 = arith.mulf %88, %89 : vector<16x128xf32>
    %91 = vector.extract_strided_slice %7 {offsets = [4, 0], sizes = [1, 128], strides = [1, 1]} : vector<27x128xf32> to vector<1x128xf32>
    %92 = vector.shape_cast %91 : vector<1x128xf32> to vector<128xf32>
    %93 = vector.shape_cast %92 : vector<128xf32> to vector<1x128xf32>
    %94 = vector.broadcast %93 : vector<1x128xf32> to vector<16x128xf32>
    %95 = arith.mulf %90, %94 : vector<16x128xf32>
    %96 = vector.extract_strided_slice %7 {offsets = [5, 0], sizes = [1, 128], strides = [1, 1]} : vector<27x128xf32> to vector<1x128xf32>
    %97 = vector.shape_cast %96 : vector<1x128xf32> to vector<128xf32>
    %98 = vector.shape_cast %97 : vector<128xf32> to vector<1x128xf32>
    %99 = vector.broadcast %98 : vector<1x128xf32> to vector<16x128xf32>
    %100 = arith.addf %95, %99 : vector<16x128xf32>
    %101 = arith.truncf %100 : vector<16x128xf32> to vector<16x128xbf16>
    %c2 = arith.constant 2 : index
    %c0_28 = arith.constant 0 : index
    %c0_29 = arith.constant 0 : index
    %102 = vector.load %arg4[%c2, %c0_28, %c0_29] : memref<11x128x128xbf16, #tpu.memory_space<vmem>>, vector<1x128x128xbf16>
    %103 = vector.shape_cast %102 : vector<1x128x128xbf16> to vector<128x128xbf16>
    %cst_30 = arith.constant dense<0.000000e+00> : vector<16x128xf32>
    %104 = tpu.matmul %101, %103, %cst_30 {dimension_numbers = #tpu.dot_dimension_numbers<[1], [0], [0], [1], [0, 0, 1, 1], [], []>} : vector<16x128xbf16>, vector<128x128xbf16>, vector<16x128xf32> -> vector<16x128xf32>
    %105 = vector.extract_strided_slice %7 {offsets = [6, 0], sizes = [1, 128], strides = [1, 1]} : vector<27x128xf32> to vector<1x128xf32>
    %106 = vector.shape_cast %105 : vector<1x128xf32> to vector<128xf32>
    %107 = vector.shape_cast %106 : vector<128xf32> to vector<1x128xf32>
    %108 = vector.broadcast %107 : vector<1x128xf32> to vector<16x128xf32>
    %109 = arith.addf %104, %108 : vector<16x128xf32>
    %cst_31 = arith.constant 0.353553385 : f32
    %110 = vector.broadcast %cst_31 : f32 to vector<16x128xf32>
    %111 = arith.mulf %109, %110 : vector<16x128xf32>
    %c3 = arith.constant 3 : index
    %c0_32 = arith.constant 0 : index
    %c0_33 = arith.constant 0 : index
    %112 = vector.load %arg4[%c3, %c0_32, %c0_33] : memref<11x128x128xbf16, #tpu.memory_space<vmem>>, vector<1x128x128xbf16>
    %113 = vector.shape_cast %112 : vector<1x128x128xbf16> to vector<128x128xbf16>
    %cst_34 = arith.constant dense<0.000000e+00> : vector<16x128xf32>
    %114 = tpu.matmul %101, %113, %cst_34 {dimension_numbers = #tpu.dot_dimension_numbers<[1], [0], [0], [1], [0, 0, 1, 1], [], []>} : vector<16x128xbf16>, vector<128x128xbf16>, vector<16x128xf32> -> vector<16x128xf32>
    %115 = vector.extract_strided_slice %7 {offsets = [7, 0], sizes = [1, 128], strides = [1, 1]} : vector<27x128xf32> to vector<1x128xf32>
    %116 = vector.shape_cast %115 : vector<1x128xf32> to vector<128xf32>
    %117 = vector.shape_cast %116 : vector<128xf32> to vector<1x128xf32>
    %118 = vector.broadcast %117 : vector<1x128xf32> to vector<16x128xf32>
    %119 = arith.addf %114, %118 : vector<16x128xf32>
    %c4 = arith.constant 4 : index
    %c0_35 = arith.constant 0 : index
    %c0_36 = arith.constant 0 : index
    %120 = vector.load %arg4[%c4, %c0_35, %c0_36] : memref<11x128x128xbf16, #tpu.memory_space<vmem>>, vector<1x128x128xbf16>
    %121 = vector.shape_cast %120 : vector<1x128x128xbf16> to vector<128x128xbf16>
    %cst_37 = arith.constant dense<0.000000e+00> : vector<16x128xf32>
    %122 = tpu.matmul %101, %121, %cst_37 {dimension_numbers = #tpu.dot_dimension_numbers<[1], [0], [0], [1], [0, 0, 1, 1], [], []>} : vector<16x128xbf16>, vector<128x128xbf16>, vector<16x128xf32> -> vector<16x128xf32>
    %123 = vector.extract_strided_slice %7 {offsets = [8, 0], sizes = [1, 128], strides = [1, 1]} : vector<27x128xf32> to vector<1x128xf32>
    %124 = vector.shape_cast %123 : vector<1x128xf32> to vector<128xf32>
    %125 = vector.shape_cast %124 : vector<128xf32> to vector<1x128xf32>
    %126 = vector.broadcast %125 : vector<1x128xf32> to vector<16x128xf32>
    %127 = arith.addf %122, %126 : vector<16x128xf32>
    %128 = arith.truncf %111 : vector<16x128xf32> to vector<16x128xbf16>
    %129 = vector.shape_cast %128 : vector<16x128xbf16> to vector<2x8x128xbf16>
    %130 = arith.truncf %119 : vector<16x128xf32> to vector<16x128xbf16>
    %131 = vector.shape_cast %130 : vector<16x128xbf16> to vector<2x8x128xbf16>
    %132 = arith.truncf %127 : vector<16x128xf32> to vector<16x128xbf16>
    %133 = vector.shape_cast %132 : vector<16x128xbf16> to vector<2x8x128xbf16>
    %134 = vector.shape_cast %5 : vector<2x8xf32> to vector<2x1x8xf32>
    %135 = vector.shape_cast %134 : vector<2x1x8xf32> to vector<2x1x8xf32>
    %136 = vector.broadcast %135 : vector<2x1x8xf32> to vector<2x8x8xf32>
    %137 = vector.extract_strided_slice %129 {offsets = [0, 0, 0], sizes = [2, 8, 32], strides = [1, 1, 1]} : vector<2x8x128xbf16> to vector<2x8x32xbf16>
    %138 = vector.extract_strided_slice %131 {offsets = [0, 0, 0], sizes = [2, 8, 32], strides = [1, 1, 1]} : vector<2x8x128xbf16> to vector<2x8x32xbf16>
    "tpu.trace_start"() <{level = 10 : i32, message = "bqd,bkd->bqk"}> : () -> ()
    %cst_38 = arith.constant dense<0.000000e+00> : vector<2x8x8xf32>
    %139 = tpu.matmul %137, %138, %cst_38 {dimension_numbers = #tpu.dot_dimension_numbers<[2], [2], [1], [1], [0, 0, 0, 1, 1, 1], [0], [0]>} : vector<2x8x32xbf16>, vector<2x8x32xbf16>, vector<2x8x8xf32> -> vector<2x8x8xf32>
    "tpu.trace_stop"() : () -> ()
    %140 = arith.addf %139, %136 : vector<2x8x8xf32>
    %cst_39 = arith.constant dense<0xFF800000> : vector<2x8xf32>
    %141 = vector.multi_reduction <maximumf>, %140, %cst_39 [2] : vector<2x8x8xf32> to vector<2x8xf32>
    %142 = vector.shape_cast %141 : vector<2x8xf32> to vector<2x8x1xf32>
    %143 = vector.broadcast %142 : vector<2x8x1xf32> to vector<2x8x8xf32>
    %144 = arith.subf %140, %143 : vector<2x8x8xf32>
    %145 = math.exp %144 : vector<2x8x8xf32>
    %cst_40 = arith.constant dense<0.000000e+00> : vector<2x8xf32>
    %146 = vector.multi_reduction <add>, %145, %cst_40 [2] : vector<2x8x8xf32> to vector<2x8xf32>
    %147 = vector.shape_cast %146 : vector<2x8xf32> to vector<2x8x1xf32>
    %148 = tpu.reciprocal %147 {approx = true} : vector<2x8x1xf32> -> vector<2x8x1xf32>
    %149 = vector.broadcast %148 : vector<2x8x1xf32> to vector<2x8x8xf32>
    %150 = arith.mulf %145, %149 : vector<2x8x8xf32>
    %151 = arith.truncf %150 : vector<2x8x8xf32> to vector<2x8x8xbf16>
    %152 = vector.extract_strided_slice %133 {offsets = [0, 0, 0], sizes = [2, 8, 32], strides = [1, 1, 1]} : vector<2x8x128xbf16> to vector<2x8x32xbf16>
    "tpu.trace_start"() <{level = 10 : i32, message = "bqk,bkd->bqd"}> : () -> ()
    %cst_41 = arith.constant dense<0.000000e+00> : vector<2x8x32xf32>
    %153 = tpu.matmul %151, %152, %cst_41 {dimension_numbers = #tpu.dot_dimension_numbers<[2], [1], [1], [2], [0, 0, 0, 1, 1, 2], [0], [0]>} : vector<2x8x8xbf16>, vector<2x8x32xbf16>, vector<2x8x32xf32> -> vector<2x8x32xf32>
    "tpu.trace_stop"() : () -> ()
    %154 = vector.shape_cast %153 : vector<2x8x32xf32> to vector<16x32xf32>
    %155 = vector.extract_strided_slice %129 {offsets = [0, 0, 32], sizes = [2, 8, 32], strides = [1, 1, 1]} : vector<2x8x128xbf16> to vector<2x8x32xbf16>
    %156 = vector.extract_strided_slice %131 {offsets = [0, 0, 32], sizes = [2, 8, 32], strides = [1, 1, 1]} : vector<2x8x128xbf16> to vector<2x8x32xbf16>
    "tpu.trace_start"() <{level = 10 : i32, message = "bqd,bkd->bqk"}> : () -> ()
    %cst_42 = arith.constant dense<0.000000e+00> : vector<2x8x8xf32>
    %157 = tpu.matmul %155, %156, %cst_42 {dimension_numbers = #tpu.dot_dimension_numbers<[2], [2], [1], [1], [0, 0, 0, 1, 1, 1], [0], [0]>} : vector<2x8x32xbf16>, vector<2x8x32xbf16>, vector<2x8x8xf32> -> vector<2x8x8xf32>
    "tpu.trace_stop"() : () -> ()
    %158 = arith.addf %157, %136 : vector<2x8x8xf32>
    %cst_43 = arith.constant dense<0xFF800000> : vector<2x8xf32>
    %159 = vector.multi_reduction <maximumf>, %158, %cst_43 [2] : vector<2x8x8xf32> to vector<2x8xf32>
    %160 = vector.shape_cast %159 : vector<2x8xf32> to vector<2x8x1xf32>
    %161 = vector.broadcast %160 : vector<2x8x1xf32> to vector<2x8x8xf32>
    %162 = arith.subf %158, %161 : vector<2x8x8xf32>
    %163 = math.exp %162 : vector<2x8x8xf32>
    %cst_44 = arith.constant dense<0.000000e+00> : vector<2x8xf32>
    %164 = vector.multi_reduction <add>, %163, %cst_44 [2] : vector<2x8x8xf32> to vector<2x8xf32>
    %165 = vector.shape_cast %164 : vector<2x8xf32> to vector<2x8x1xf32>
    %166 = tpu.reciprocal %165 {approx = true} : vector<2x8x1xf32> -> vector<2x8x1xf32>
    %167 = vector.broadcast %166 : vector<2x8x1xf32> to vector<2x8x8xf32>
    %168 = arith.mulf %163, %167 : vector<2x8x8xf32>
    %169 = arith.truncf %168 : vector<2x8x8xf32> to vector<2x8x8xbf16>
    %170 = vector.extract_strided_slice %133 {offsets = [0, 0, 32], sizes = [2, 8, 32], strides = [1, 1, 1]} : vector<2x8x128xbf16> to vector<2x8x32xbf16>
    "tpu.trace_start"() <{level = 10 : i32, message = "bqk,bkd->bqd"}> : () -> ()
    %cst_45 = arith.constant dense<0.000000e+00> : vector<2x8x32xf32>
    %171 = tpu.matmul %169, %170, %cst_45 {dimension_numbers = #tpu.dot_dimension_numbers<[2], [1], [1], [2], [0, 0, 0, 1, 1, 2], [0], [0]>} : vector<2x8x8xbf16>, vector<2x8x32xbf16>, vector<2x8x32xf32> -> vector<2x8x32xf32>
    "tpu.trace_stop"() : () -> ()
    %172 = vector.shape_cast %171 : vector<2x8x32xf32> to vector<16x32xf32>
    %173 = vector.extract_strided_slice %129 {offsets = [0, 0, 64], sizes = [2, 8, 32], strides = [1, 1, 1]} : vector<2x8x128xbf16> to vector<2x8x32xbf16>
    %174 = vector.extract_strided_slice %131 {offsets = [0, 0, 64], sizes = [2, 8, 32], strides = [1, 1, 1]} : vector<2x8x128xbf16> to vector<2x8x32xbf16>
    "tpu.trace_start"() <{level = 10 : i32, message = "bqd,bkd->bqk"}> : () -> ()
    %cst_46 = arith.constant dense<0.000000e+00> : vector<2x8x8xf32>
    %175 = tpu.matmul %173, %174, %cst_46 {dimension_numbers = #tpu.dot_dimension_numbers<[2], [2], [1], [1], [0, 0, 0, 1, 1, 1], [0], [0]>} : vector<2x8x32xbf16>, vector<2x8x32xbf16>, vector<2x8x8xf32> -> vector<2x8x8xf32>
    "tpu.trace_stop"() : () -> ()
    %176 = arith.addf %175, %136 : vector<2x8x8xf32>
    %cst_47 = arith.constant dense<0xFF800000> : vector<2x8xf32>
    %177 = vector.multi_reduction <maximumf>, %176, %cst_47 [2] : vector<2x8x8xf32> to vector<2x8xf32>
    %178 = vector.shape_cast %177 : vector<2x8xf32> to vector<2x8x1xf32>
    %179 = vector.broadcast %178 : vector<2x8x1xf32> to vector<2x8x8xf32>
    %180 = arith.subf %176, %179 : vector<2x8x8xf32>
    %181 = math.exp %180 : vector<2x8x8xf32>
    %cst_48 = arith.constant dense<0.000000e+00> : vector<2x8xf32>
    %182 = vector.multi_reduction <add>, %181, %cst_48 [2] : vector<2x8x8xf32> to vector<2x8xf32>
    %183 = vector.shape_cast %182 : vector<2x8xf32> to vector<2x8x1xf32>
    %184 = tpu.reciprocal %183 {approx = true} : vector<2x8x1xf32> -> vector<2x8x1xf32>
    %185 = vector.broadcast %184 : vector<2x8x1xf32> to vector<2x8x8xf32>
    %186 = arith.mulf %181, %185 : vector<2x8x8xf32>
    %187 = arith.truncf %186 : vector<2x8x8xf32> to vector<2x8x8xbf16>
    %188 = vector.extract_strided_slice %133 {offsets = [0, 0, 64], sizes = [2, 8, 32], strides = [1, 1, 1]} : vector<2x8x128xbf16> to vector<2x8x32xbf16>
    "tpu.trace_start"() <{level = 10 : i32, message = "bqk,bkd->bqd"}> : () -> ()
    %cst_49 = arith.constant dense<0.000000e+00> : vector<2x8x32xf32>
    %189 = tpu.matmul %187, %188, %cst_49 {dimension_numbers = #tpu.dot_dimension_numbers<[2], [1], [1], [2], [0, 0, 0, 1, 1, 2], [0], [0]>} : vector<2x8x8xbf16>, vector<2x8x32xbf16>, vector<2x8x32xf32> -> vector<2x8x32xf32>
    "tpu.trace_stop"() : () -> ()
    %190 = vector.shape_cast %189 : vector<2x8x32xf32> to vector<16x32xf32>
    %191 = vector.extract_strided_slice %129 {offsets = [0, 0, 96], sizes = [2, 8, 32], strides = [1, 1, 1]} : vector<2x8x128xbf16> to vector<2x8x32xbf16>
    %192 = vector.extract_strided_slice %131 {offsets = [0, 0, 96], sizes = [2, 8, 32], strides = [1, 1, 1]} : vector<2x8x128xbf16> to vector<2x8x32xbf16>
    "tpu.trace_start"() <{level = 10 : i32, message = "bqd,bkd->bqk"}> : () -> ()
    %cst_50 = arith.constant dense<0.000000e+00> : vector<2x8x8xf32>
    %193 = tpu.matmul %191, %192, %cst_50 {dimension_numbers = #tpu.dot_dimension_numbers<[2], [2], [1], [1], [0, 0, 0, 1, 1, 1], [0], [0]>} : vector<2x8x32xbf16>, vector<2x8x32xbf16>, vector<2x8x8xf32> -> vector<2x8x8xf32>
    "tpu.trace_stop"() : () -> ()
    %194 = arith.addf %193, %136 : vector<2x8x8xf32>
    %cst_51 = arith.constant dense<0xFF800000> : vector<2x8xf32>
    %195 = vector.multi_reduction <maximumf>, %194, %cst_51 [2] : vector<2x8x8xf32> to vector<2x8xf32>
    %196 = vector.shape_cast %195 : vector<2x8xf32> to vector<2x8x1xf32>
    %197 = vector.broadcast %196 : vector<2x8x1xf32> to vector<2x8x8xf32>
    %198 = arith.subf %194, %197 : vector<2x8x8xf32>
    %199 = math.exp %198 : vector<2x8x8xf32>
    %cst_52 = arith.constant dense<0.000000e+00> : vector<2x8xf32>
    %200 = vector.multi_reduction <add>, %199, %cst_52 [2] : vector<2x8x8xf32> to vector<2x8xf32>
    %201 = vector.shape_cast %200 : vector<2x8xf32> to vector<2x8x1xf32>
    %202 = tpu.reciprocal %201 {approx = true} : vector<2x8x1xf32> -> vector<2x8x1xf32>
    %203 = vector.broadcast %202 : vector<2x8x1xf32> to vector<2x8x8xf32>
    %204 = arith.mulf %199, %203 : vector<2x8x8xf32>
    %205 = arith.truncf %204 : vector<2x8x8xf32> to vector<2x8x8xbf16>
    %206 = vector.extract_strided_slice %133 {offsets = [0, 0, 96], sizes = [2, 8, 32], strides = [1, 1, 1]} : vector<2x8x128xbf16> to vector<2x8x32xbf16>
    "tpu.trace_start"() <{level = 10 : i32, message = "bqk,bkd->bqd"}> : () -> ()
    %cst_53 = arith.constant dense<0.000000e+00> : vector<2x8x32xf32>
    %207 = tpu.matmul %205, %206, %cst_53 {dimension_numbers = #tpu.dot_dimension_numbers<[2], [1], [1], [2], [0, 0, 0, 1, 1, 2], [0], [0]>} : vector<2x8x8xbf16>, vector<2x8x32xbf16>, vector<2x8x32xf32> -> vector<2x8x32xf32>
    "tpu.trace_stop"() : () -> ()
    %208 = vector.shape_cast %207 : vector<2x8x32xf32> to vector<16x32xf32>
    %209 = tpu.concatenate %154, %172, %190, %208 in 1 : vector<16x32xf32>, vector<16x32xf32>, vector<16x32xf32>, vector<16x32xf32> -> vector<16x128xf32>
    %210 = arith.truncf %209 : vector<16x128xf32> to vector<16x128xbf16>
    %c5 = arith.constant 5 : index
    %c0_54 = arith.constant 0 : index
    %c0_55 = arith.constant 0 : index
    %211 = vector.load %arg4[%c5, %c0_54, %c0_55] : memref<11x128x128xbf16, #tpu.memory_space<vmem>>, vector<1x128x128xbf16>
    %212 = vector.shape_cast %211 : vector<1x128x128xbf16> to vector<128x128xbf16>
    %cst_56 = arith.constant dense<0.000000e+00> : vector<16x128xf32>
    %213 = tpu.matmul %210, %212, %cst_56 {dimension_numbers = #tpu.dot_dimension_numbers<[1], [0], [0], [1], [0, 0, 1, 1], [], []>} : vector<16x128xbf16>, vector<128x128xbf16>, vector<16x128xf32> -> vector<16x128xf32>
    %214 = arith.addf %70, %213 : vector<16x128xf32>
    %215 = vector.extract_strided_slice %7 {offsets = [9, 0], sizes = [1, 128], strides = [1, 1]} : vector<27x128xf32> to vector<1x128xf32>
    %216 = vector.shape_cast %215 : vector<1x128xf32> to vector<128xf32>
    %217 = vector.shape_cast %216 : vector<128xf32> to vector<1x128xf32>
    %218 = vector.broadcast %217 : vector<1x128xf32> to vector<16x128xf32>
    %219 = arith.addf %214, %218 : vector<16x128xf32>
    %cst_57 = arith.constant dense<0.000000e+00> : vector<16xf32>
    %220 = vector.multi_reduction <add>, %219, %cst_57 [1] : vector<16x128xf32> to vector<16xf32>
    %221 = vector.shape_cast %220 : vector<16xf32> to vector<16x1xf32>
    %cst_58 = arith.constant 3.200000e+01 : f32
    %222 = vector.broadcast %cst_58 : f32 to vector<16x1xf32>
    %223 = arith.divf %221, %222 : vector<16x1xf32>
    %224 = arith.mulf %219, %219 : vector<16x128xf32>
    %cst_59 = arith.constant dense<0.000000e+00> : vector<16xf32>
    %225 = vector.multi_reduction <add>, %224, %cst_59 [1] : vector<16x128xf32> to vector<16xf32>
    %226 = vector.shape_cast %225 : vector<16xf32> to vector<16x1xf32>
    %cst_60 = arith.constant 3.200000e+01 : f32
    %227 = vector.broadcast %cst_60 : f32 to vector<16x1xf32>
    %228 = arith.divf %226, %227 : vector<16x1xf32>
    %229 = arith.mulf %223, %223 : vector<16x1xf32>
    %230 = arith.subf %228, %229 : vector<16x1xf32>
    %cst_61 = arith.constant 0.000000e+00 : f32
    %231 = vector.broadcast %cst_61 : f32 to vector<16x1xf32>
    %232 = arith.maximumf %230, %231 : vector<16x1xf32>
    %cst_62 = arith.constant 9.99999974E-6 : f32
    %233 = vector.broadcast %cst_62 : f32 to vector<16x1xf32>
    %234 = arith.addf %232, %233 : vector<16x1xf32>
    %235 = math.rsqrt %234 : vector<16x1xf32>
    %236 = vector.broadcast %223 : vector<16x1xf32> to vector<16x128xf32>
    %237 = arith.subf %219, %236 : vector<16x128xf32>
    %238 = vector.broadcast %235 : vector<16x1xf32> to vector<16x128xf32>
    %239 = arith.mulf %237, %238 : vector<16x128xf32>
    %240 = vector.extract_strided_slice %7 {offsets = [10, 0], sizes = [1, 128], strides = [1, 1]} : vector<27x128xf32> to vector<1x128xf32>
    %241 = vector.shape_cast %240 : vector<1x128xf32> to vector<128xf32>
    %242 = vector.shape_cast %241 : vector<128xf32> to vector<1x128xf32>
    %243 = vector.broadcast %242 : vector<1x128xf32> to vector<16x128xf32>
    %244 = arith.mulf %239, %243 : vector<16x128xf32>
    %245 = vector.extract_strided_slice %7 {offsets = [11, 0], sizes = [1, 128], strides = [1, 1]} : vector<27x128xf32> to vector<1x128xf32>
    %246 = vector.shape_cast %245 : vector<1x128xf32> to vector<128xf32>
    %247 = vector.shape_cast %246 : vector<128xf32> to vector<1x128xf32>
    %248 = vector.broadcast %247 : vector<1x128xf32> to vector<16x128xf32>
    %249 = arith.addf %244, %248 : vector<16x128xf32>
    %250 = arith.truncf %249 : vector<16x128xf32> to vector<16x128xbf16>
    %c6 = arith.constant 6 : index
    %c0_63 = arith.constant 0 : index
    %c0_64 = arith.constant 0 : index
    %251 = vector.load %arg4[%c6, %c0_63, %c0_64] : memref<11x128x128xbf16, #tpu.memory_space<vmem>>, vector<1x128x128xbf16>
    %252 = vector.shape_cast %251 : vector<1x128x128xbf16> to vector<128x128xbf16>
    %cst_65 = arith.constant dense<0.000000e+00> : vector<16x128xf32>
    %253 = tpu.matmul %250, %252, %cst_65 {dimension_numbers = #tpu.dot_dimension_numbers<[1], [0], [0], [1], [0, 0, 1, 1], [], []>} : vector<16x128xbf16>, vector<128x128xbf16>, vector<16x128xf32> -> vector<16x128xf32>
    %c7 = arith.constant 7 : index
    %c0_66 = arith.constant 0 : index
    %c0_67 = arith.constant 0 : index
    %254 = vector.load %arg4[%c7, %c0_66, %c0_67] : memref<11x128x128xbf16, #tpu.memory_space<vmem>>, vector<1x128x128xbf16>
    %255 = vector.shape_cast %254 : vector<1x128x128xbf16> to vector<128x128xbf16>
    %cst_68 = arith.constant dense<0.000000e+00> : vector<16x128xf32>
    %256 = tpu.matmul %250, %255, %cst_68 {dimension_numbers = #tpu.dot_dimension_numbers<[1], [0], [0], [1], [0, 0, 1, 1], [], []>} : vector<16x128xbf16>, vector<128x128xbf16>, vector<16x128xf32> -> vector<16x128xf32>
    %257 = arith.negf %256 : vector<16x128xf32>
    %258 = math.exp %257 : vector<16x128xf32>
    %cst_69 = arith.constant 1.000000e+00 : f32
    %259 = vector.broadcast %cst_69 : f32 to vector<16x128xf32>
    %260 = arith.addf %259, %258 : vector<16x128xf32>
    %261 = arith.divf %259, %260 : vector<16x128xf32>
    %262 = arith.mulf %253, %261 : vector<16x128xf32>
    %263 = arith.mulf %262, %13 : vector<16x128xf32>
    %cst_70 = arith.constant 0.000000e+00 : f32
    %264 = vector.broadcast %cst_70 : f32 to vector<16x128xf32>
    %c3_i32 = arith.constant 3 : i32
    %265 = tpu.dynamic_rotate %263 by %c3_i32 dim 0 : vector<16x128xf32>, i32 -> vector<16x128xf32>
    %266 = vector.extract_strided_slice %7 {offsets = [20, 0], sizes = [1, 128], strides = [1, 1]} : vector<27x128xf32> to vector<1x128xf32>
    %267 = vector.shape_cast %266 : vector<1x128xf32> to vector<128xf32>
    %268 = vector.shape_cast %267 : vector<128xf32> to vector<1x128xf32>
    %269 = vector.broadcast %268 : vector<1x128xf32> to vector<16x128xf32>
    %270 = arith.mulf %265, %269 : vector<16x128xf32>
    %271 = arith.addf %264, %270 : vector<16x128xf32>
    %c2_i32 = arith.constant 2 : i32
    %272 = tpu.dynamic_rotate %263 by %c2_i32 dim 0 : vector<16x128xf32>, i32 -> vector<16x128xf32>
    %273 = vector.extract_strided_slice %7 {offsets = [21, 0], sizes = [1, 128], strides = [1, 1]} : vector<27x128xf32> to vector<1x128xf32>
    %274 = vector.shape_cast %273 : vector<1x128xf32> to vector<128xf32>
    %275 = vector.shape_cast %274 : vector<128xf32> to vector<1x128xf32>
    %276 = vector.broadcast %275 : vector<1x128xf32> to vector<16x128xf32>
    %277 = arith.mulf %272, %276 : vector<16x128xf32>
    %278 = arith.addf %271, %277 : vector<16x128xf32>
    %c1_i32 = arith.constant 1 : i32
    %279 = tpu.dynamic_rotate %263 by %c1_i32 dim 0 : vector<16x128xf32>, i32 -> vector<16x128xf32>
    %280 = vector.extract_strided_slice %7 {offsets = [22, 0], sizes = [1, 128], strides = [1, 1]} : vector<27x128xf32> to vector<1x128xf32>
    %281 = vector.shape_cast %280 : vector<1x128xf32> to vector<128xf32>
    %282 = vector.shape_cast %281 : vector<128xf32> to vector<1x128xf32>
    %283 = vector.broadcast %282 : vector<1x128xf32> to vector<16x128xf32>
    %284 = arith.mulf %279, %283 : vector<16x128xf32>
    %285 = arith.addf %278, %284 : vector<16x128xf32>
    %286 = vector.extract_strided_slice %7 {offsets = [23, 0], sizes = [1, 128], strides = [1, 1]} : vector<27x128xf32> to vector<1x128xf32>
    %287 = vector.shape_cast %286 : vector<1x128xf32> to vector<128xf32>
    %288 = vector.shape_cast %287 : vector<128xf32> to vector<1x128xf32>
    %289 = vector.broadcast %288 : vector<1x128xf32> to vector<16x128xf32>
    %290 = arith.mulf %263, %289 : vector<16x128xf32>
    %291 = arith.addf %285, %290 : vector<16x128xf32>
    %c15_i32 = arith.constant 15 : i32
    %292 = tpu.dynamic_rotate %263 by %c15_i32 dim 0 : vector<16x128xf32>, i32 -> vector<16x128xf32>
    %293 = vector.extract_strided_slice %7 {offsets = [24, 0], sizes = [1, 128], strides = [1, 1]} : vector<27x128xf32> to vector<1x128xf32>
    %294 = vector.shape_cast %293 : vector<1x128xf32> to vector<128xf32>
    %295 = vector.shape_cast %294 : vector<128xf32> to vector<1x128xf32>
    %296 = vector.broadcast %295 : vector<1x128xf32> to vector<16x128xf32>
    %297 = arith.mulf %292, %296 : vector<16x128xf32>
    %298 = arith.addf %291, %297 : vector<16x128xf32>
    %c14_i32 = arith.constant 14 : i32
    %299 = tpu.dynamic_rotate %263 by %c14_i32 dim 0 : vector<16x128xf32>, i32 -> vector<16x128xf32>
    %300 = vector.extract_strided_slice %7 {offsets = [25, 0], sizes = [1, 128], strides = [1, 1]} : vector<27x128xf32> to vector<1x128xf32>
    %301 = vector.shape_cast %300 : vector<1x128xf32> to vector<128xf32>
    %302 = vector.shape_cast %301 : vector<128xf32> to vector<1x128xf32>
    %303 = vector.broadcast %302 : vector<1x128xf32> to vector<16x128xf32>
    %304 = arith.mulf %299, %303 : vector<16x128xf32>
    %305 = arith.addf %298, %304 : vector<16x128xf32>
    %c13_i32 = arith.constant 13 : i32
    %306 = tpu.dynamic_rotate %263 by %c13_i32 dim 0 : vector<16x128xf32>, i32 -> vector<16x128xf32>
    %307 = vector.extract_strided_slice %7 {offsets = [26, 0], sizes = [1, 128], strides = [1, 1]} : vector<27x128xf32> to vector<1x128xf32>
    %308 = vector.shape_cast %307 : vector<1x128xf32> to vector<128xf32>
    %309 = vector.shape_cast %308 : vector<128xf32> to vector<1x128xf32>
    %310 = vector.broadcast %309 : vector<1x128xf32> to vector<16x128xf32>
    %311 = arith.mulf %306, %310 : vector<16x128xf32>
    %312 = arith.addf %305, %311 : vector<16x128xf32>
    %313 = arith.mulf %312, %13 : vector<16x128xf32>
    %cst_71 = arith.constant dense<0.000000e+00> : vector<128xf32>
    %314 = vector.multi_reduction <add>, %313, %cst_71 [0] : vector<16x128xf32> to vector<128xf32>
    %315 = vector.shape_cast %314 : vector<128xf32> to vector<1x128xf32>
    %cst_72 = arith.constant 8.000000e+00 : f32
    %316 = vector.broadcast %cst_72 : f32 to vector<1x128xf32>
    %317 = arith.divf %315, %316 : vector<1x128xf32>
    %318 = arith.mulf %313, %313 : vector<16x128xf32>
    %cst_73 = arith.constant dense<0.000000e+00> : vector<128xf32>
    %319 = vector.multi_reduction <add>, %318, %cst_73 [0] : vector<16x128xf32> to vector<128xf32>
    %320 = vector.shape_cast %319 : vector<128xf32> to vector<1x128xf32>
    %cst_74 = arith.constant 8.000000e+00 : f32
    %321 = vector.broadcast %cst_74 : f32 to vector<1x128xf32>
    %322 = arith.divf %320, %321 : vector<1x128xf32>
    %323 = arith.mulf %317, %317 : vector<1x128xf32>
    %324 = arith.subf %322, %323 : vector<1x128xf32>
    %325 = vector.broadcast %317 : vector<1x128xf32> to vector<16x128xf32>
    %326 = arith.subf %312, %325 : vector<16x128xf32>
    %cst_75 = arith.constant 0.000000e+00 : f32
    %327 = vector.broadcast %cst_75 : f32 to vector<1x128xf32>
    %328 = arith.maximumf %324, %327 : vector<1x128xf32>
    %cst_76 = arith.constant 9.99999974E-6 : f32
    %329 = vector.broadcast %cst_76 : f32 to vector<1x128xf32>
    %330 = arith.addf %328, %329 : vector<1x128xf32>
    %331 = math.rsqrt %330 : vector<1x128xf32>
    %332 = vector.broadcast %331 : vector<1x128xf32> to vector<16x128xf32>
    %333 = arith.mulf %326, %332 : vector<16x128xf32>
    %334 = vector.extract_strided_slice %7 {offsets = [12, 0], sizes = [1, 128], strides = [1, 1]} : vector<27x128xf32> to vector<1x128xf32>
    %335 = vector.shape_cast %334 : vector<1x128xf32> to vector<128xf32>
    %336 = vector.shape_cast %335 : vector<128xf32> to vector<1x128xf32>
    %337 = vector.broadcast %336 : vector<1x128xf32> to vector<16x128xf32>
    %338 = arith.mulf %333, %337 : vector<16x128xf32>
    %339 = vector.extract_strided_slice %7 {offsets = [13, 0], sizes = [1, 128], strides = [1, 1]} : vector<27x128xf32> to vector<1x128xf32>
    %340 = vector.shape_cast %339 : vector<1x128xf32> to vector<128xf32>
    %341 = vector.shape_cast %340 : vector<128xf32> to vector<1x128xf32>
    %342 = vector.broadcast %341 : vector<1x128xf32> to vector<16x128xf32>
    %343 = arith.addf %338, %342 : vector<16x128xf32>
    %344 = arith.negf %343 : vector<16x128xf32>
    %345 = math.exp %344 : vector<16x128xf32>
    %cst_77 = arith.constant 1.000000e+00 : f32
    %346 = vector.broadcast %cst_77 : f32 to vector<16x128xf32>
    %347 = arith.addf %346, %345 : vector<16x128xf32>
    %348 = arith.divf %346, %347 : vector<16x128xf32>
    %349 = arith.mulf %343, %348 : vector<16x128xf32>
    %350 = arith.truncf %349 : vector<16x128xf32> to vector<16x128xbf16>
    %c8 = arith.constant 8 : index
    %c0_78 = arith.constant 0 : index
    %c0_79 = arith.constant 0 : index
    %351 = vector.load %arg4[%c8, %c0_78, %c0_79] : memref<11x128x128xbf16, #tpu.memory_space<vmem>>, vector<1x128x128xbf16>
    %352 = vector.shape_cast %351 : vector<1x128x128xbf16> to vector<128x128xbf16>
    %cst_80 = arith.constant dense<0.000000e+00> : vector<16x128xf32>
    %353 = tpu.matmul %350, %352, %cst_80 {dimension_numbers = #tpu.dot_dimension_numbers<[1], [0], [0], [1], [0, 0, 1, 1], [], []>} : vector<16x128xbf16>, vector<128x128xbf16>, vector<16x128xf32> -> vector<16x128xf32>
    %354 = arith.addf %219, %353 : vector<16x128xf32>
    %cst_81 = arith.constant dense<0.000000e+00> : vector<16xf32>
    %355 = vector.multi_reduction <add>, %354, %cst_81 [1] : vector<16x128xf32> to vector<16xf32>
    %356 = vector.shape_cast %355 : vector<16xf32> to vector<16x1xf32>
    %cst_82 = arith.constant 3.200000e+01 : f32
    %357 = vector.broadcast %cst_82 : f32 to vector<16x1xf32>
    %358 = arith.divf %356, %357 : vector<16x1xf32>
    %359 = arith.mulf %354, %354 : vector<16x128xf32>
    %cst_83 = arith.constant dense<0.000000e+00> : vector<16xf32>
    %360 = vector.multi_reduction <add>, %359, %cst_83 [1] : vector<16x128xf32> to vector<16xf32>
    %361 = vector.shape_cast %360 : vector<16xf32> to vector<16x1xf32>
    %cst_84 = arith.constant 3.200000e+01 : f32
    %362 = vector.broadcast %cst_84 : f32 to vector<16x1xf32>
    %363 = arith.divf %361, %362 : vector<16x1xf32>
    %364 = arith.mulf %358, %358 : vector<16x1xf32>
    %365 = arith.subf %363, %364 : vector<16x1xf32>
    %cst_85 = arith.constant 0.000000e+00 : f32
    %366 = vector.broadcast %cst_85 : f32 to vector<16x1xf32>
    %367 = arith.maximumf %365, %366 : vector<16x1xf32>
    %cst_86 = arith.constant 9.99999974E-6 : f32
    %368 = vector.broadcast %cst_86 : f32 to vector<16x1xf32>
    %369 = arith.addf %367, %368 : vector<16x1xf32>
    %370 = math.rsqrt %369 : vector<16x1xf32>
    %371 = vector.broadcast %358 : vector<16x1xf32> to vector<16x128xf32>
    %372 = arith.subf %354, %371 : vector<16x128xf32>
    %373 = vector.broadcast %370 : vector<16x1xf32> to vector<16x128xf32>
    %374 = arith.mulf %372, %373 : vector<16x128xf32>
    %375 = vector.extract_strided_slice %7 {offsets = [14, 0], sizes = [1, 128], strides = [1, 1]} : vector<27x128xf32> to vector<1x128xf32>
    %376 = vector.shape_cast %375 : vector<1x128xf32> to vector<128xf32>
    %377 = vector.shape_cast %376 : vector<128xf32> to vector<1x128xf32>
    %378 = vector.broadcast %377 : vector<1x128xf32> to vector<16x128xf32>
    %379 = arith.mulf %374, %378 : vector<16x128xf32>
    %380 = vector.extract_strided_slice %7 {offsets = [15, 0], sizes = [1, 128], strides = [1, 1]} : vector<27x128xf32> to vector<1x128xf32>
    %381 = vector.shape_cast %380 : vector<1x128xf32> to vector<128xf32>
    %382 = vector.shape_cast %381 : vector<128xf32> to vector<1x128xf32>
    %383 = vector.broadcast %382 : vector<1x128xf32> to vector<16x128xf32>
    %384 = arith.addf %379, %383 : vector<16x128xf32>
    %385 = arith.truncf %384 : vector<16x128xf32> to vector<16x128xbf16>
    %c9 = arith.constant 9 : index
    %c0_87 = arith.constant 0 : index
    %c0_88 = arith.constant 0 : index
    %386 = vector.load %arg4[%c9, %c0_87, %c0_88] : memref<11x128x128xbf16, #tpu.memory_space<vmem>>, vector<1x128x128xbf16>
    %387 = vector.shape_cast %386 : vector<1x128x128xbf16> to vector<128x128xbf16>
    %cst_89 = arith.constant dense<0.000000e+00> : vector<16x128xf32>
    %388 = tpu.matmul %385, %387, %cst_89 {dimension_numbers = #tpu.dot_dimension_numbers<[1], [0], [0], [1], [0, 0, 1, 1], [], []>} : vector<16x128xbf16>, vector<128x128xbf16>, vector<16x128xf32> -> vector<16x128xf32>
    %389 = vector.extract_strided_slice %7 {offsets = [16, 0], sizes = [1, 128], strides = [1, 1]} : vector<27x128xf32> to vector<1x128xf32>
    %390 = vector.shape_cast %389 : vector<1x128xf32> to vector<128xf32>
    %391 = vector.shape_cast %390 : vector<128xf32> to vector<1x128xf32>
    %392 = vector.broadcast %391 : vector<1x128xf32> to vector<16x128xf32>
    %393 = arith.addf %388, %392 : vector<16x128xf32>
    %394 = arith.negf %393 : vector<16x128xf32>
    %395 = math.exp %394 : vector<16x128xf32>
    %cst_90 = arith.constant 1.000000e+00 : f32
    %396 = vector.broadcast %cst_90 : f32 to vector<16x128xf32>
    %397 = arith.addf %396, %395 : vector<16x128xf32>
    %398 = arith.divf %396, %397 : vector<16x128xf32>
    %399 = arith.mulf %393, %398 : vector<16x128xf32>
    %400 = arith.truncf %399 : vector<16x128xf32> to vector<16x128xbf16>
    %c10 = arith.constant 10 : index
    %c0_91 = arith.constant 0 : index
    %c0_92 = arith.constant 0 : index
    %401 = vector.load %arg4[%c10, %c0_91, %c0_92] : memref<11x128x128xbf16, #tpu.memory_space<vmem>>, vector<1x128x128xbf16>
    %402 = vector.shape_cast %401 : vector<1x128x128xbf16> to vector<128x128xbf16>
    %cst_93 = arith.constant dense<0.000000e+00> : vector<16x128xf32>
    %403 = tpu.matmul %400, %402, %cst_93 {dimension_numbers = #tpu.dot_dimension_numbers<[1], [0], [0], [1], [0, 0, 1, 1], [], []>} : vector<16x128xbf16>, vector<128x128xbf16>, vector<16x128xf32> -> vector<16x128xf32>
    %404 = vector.extract_strided_slice %7 {offsets = [17, 0], sizes = [1, 128], strides = [1, 1]} : vector<27x128xf32> to vector<1x128xf32>
    %405 = vector.shape_cast %404 : vector<1x128xf32> to vector<128xf32>
    %406 = vector.shape_cast %405 : vector<128xf32> to vector<1x128xf32>
    %407 = vector.broadcast %406 : vector<1x128xf32> to vector<16x128xf32>
    %408 = arith.addf %403, %407 : vector<16x128xf32>
    %cst_94 = arith.constant 5.000000e-01 : f32
    %409 = vector.broadcast %cst_94 : f32 to vector<16x128xf32>
    %410 = arith.mulf %409, %408 : vector<16x128xf32>
    %411 = arith.addf %354, %410 : vector<16x128xf32>
    %cst_95 = arith.constant dense<0.000000e+00> : vector<16xf32>
    %412 = vector.multi_reduction <add>, %411, %cst_95 [1] : vector<16x128xf32> to vector<16xf32>
    %413 = vector.shape_cast %412 : vector<16xf32> to vector<16x1xf32>
    %cst_96 = arith.constant 3.200000e+01 : f32
    %414 = vector.broadcast %cst_96 : f32 to vector<16x1xf32>
    %415 = arith.divf %413, %414 : vector<16x1xf32>
    %416 = arith.mulf %411, %411 : vector<16x128xf32>
    %cst_97 = arith.constant dense<0.000000e+00> : vector<16xf32>
    %417 = vector.multi_reduction <add>, %416, %cst_97 [1] : vector<16x128xf32> to vector<16xf32>
    %418 = vector.shape_cast %417 : vector<16xf32> to vector<16x1xf32>
    %cst_98 = arith.constant 3.200000e+01 : f32
    %419 = vector.broadcast %cst_98 : f32 to vector<16x1xf32>
    %420 = arith.divf %418, %419 : vector<16x1xf32>
    %421 = arith.mulf %415, %415 : vector<16x1xf32>
    %422 = arith.subf %420, %421 : vector<16x1xf32>
    %cst_99 = arith.constant 0.000000e+00 : f32
    %423 = vector.broadcast %cst_99 : f32 to vector<16x1xf32>
    %424 = arith.maximumf %422, %423 : vector<16x1xf32>
    %cst_100 = arith.constant 9.99999974E-6 : f32
    %425 = vector.broadcast %cst_100 : f32 to vector<16x1xf32>
    %426 = arith.addf %424, %425 : vector<16x1xf32>
    %427 = math.rsqrt %426 : vector<16x1xf32>
    %428 = vector.broadcast %415 : vector<16x1xf32> to vector<16x128xf32>
    %429 = arith.subf %411, %428 : vector<16x128xf32>
    %430 = vector.broadcast %427 : vector<16x1xf32> to vector<16x128xf32>
    %431 = arith.mulf %429, %430 : vector<16x128xf32>
    %432 = vector.extract_strided_slice %7 {offsets = [18, 0], sizes = [1, 128], strides = [1, 1]} : vector<27x128xf32> to vector<1x128xf32>
    %433 = vector.shape_cast %432 : vector<1x128xf32> to vector<128xf32>
    %434 = vector.shape_cast %433 : vector<128xf32> to vector<1x128xf32>
    %435 = vector.broadcast %434 : vector<1x128xf32> to vector<16x128xf32>
    %436 = arith.mulf %431, %435 : vector<16x128xf32>
    %437 = vector.extract_strided_slice %7 {offsets = [19, 0], sizes = [1, 128], strides = [1, 1]} : vector<27x128xf32> to vector<1x128xf32>
    %438 = vector.shape_cast %437 : vector<1x128xf32> to vector<128xf32>
    %439 = vector.shape_cast %438 : vector<128xf32> to vector<1x128xf32>
    %440 = vector.broadcast %439 : vector<1x128xf32> to vector<16x128xf32>
    %441 = arith.addf %436, %440 : vector<16x128xf32>
    %442 = vector.shape_cast %441 : vector<16x128xf32> to vector<2x8x128xf32>
    %c0_101 = arith.constant 0 : index
    %c0_102 = arith.constant 0 : index
    %c0_103 = arith.constant 0 : index
    %443 = vector.load %arg5[%c0_101, %c0_102, %c0_103] : memref<2x8x128xf32, #tpu.memory_space<vmem>>, vector<2x8x128xf32>
    tpu.vector_store %arg5[%c0_101, %c0_102, %c0_103], %442 {strides = array<i32>} : memref<2x8x128xf32, #tpu.memory_space<vmem>>, vector<2x8x128xf32>,
    return
  }
  func.func @transform_0(%arg0: i32) -> (i32, i32, i32) {
    %c0_i32 = arith.constant 0 : i32
    %c0_i32_0 = arith.constant 0 : i32
    %c0_i32_1 = arith.constant 0 : i32
    %c0_i32_2 = arith.constant 0 : i32
    return %c0_i32, %c0_i32_0, %c0_i32_1 : i32, i32, i32
  }
  func.func @transform_1(%arg0: i32) -> (i32, i32) {
    %c0_i32 = arith.constant 0 : i32
    %c0_i32_0 = arith.constant 0 : i32
    %c0_i32_1 = arith.constant 0 : i32
    return %c0_i32, %c0_i32_0 : i32, i32
  }
  func.func @transform_2(%arg0: i32) -> (i32, i32, i32) {
    %c0_i32 = arith.constant 0 : i32
    %c0_i32_0 = arith.constant 0 : i32
    %c0_i32_1 = arith.constant 0 : i32
    return %arg0, %c0_i32, %c0_i32_0 : i32, i32, i32
  }
  func.func @transform_3(%arg0: i32) -> (i32, i32, i32) {
    %c0_i32 = arith.constant 0 : i32
    %c0_i32_0 = arith.constant 0 : i32
    %c0_i32_1 = arith.constant 0 : i32
    return %arg0, %c0_i32, %c0_i32_0 : i32, i32, i32
  }
  func.func @transform_4(%arg0: i32) -> (i32, i32, i32) {
    %c0_i32 = arith.constant 0 : i32
    %c0_i32_0 = arith.constant 0 : i32
    %c0_i32_1 = arith.constant 0 : i32
    %c0_i32_2 = arith.constant 0 : i32
    return %c0_i32, %c0_i32_0, %c0_i32_1 : i32, i32, i32
  }
}

</mosaic_0001>

<bundles_post_ra>
// kernel: conformer_forward.2
= control target key start
LH: loop header
LB: loop body
LE: loop exit
PB: predicated region body
PF: predicated region fallthrough
CT: control target
= control target key end

     0   :  { %9 = vsyncpa [#allocation3], 0  ;;  %s2773_s15 = smov 0   ;;  %s3026_s0 = inlined_call_operand.vmem [shape: f32[2,16,128], index: 0, kind: input, shape index: {}]   ;;  %s3027_s1 = inlined_call_operand.vmem [shape: f32[2,4,128], index: 1, kind: input, shape index: {}]   ;;  %s3028_s2 = inlined_call_operand.hbm [shape: bf16[13,128,128], index: 2, kind: input, shape index: {}]   ;;  %s3029_s3 = inlined_call_operand.vmem [shape: f32[5,128], index: 3, kind: input, shape index: {}]   ;;  %s3030_s4 = inlined_call_operand.vmem [shape: f32[2,4,128], index: 4, kind: output, shape index: {}]  }
   0x1 LB: > { %s2779_s16 = sadd.s32 4294967295, %s2741_s15   ;;  %p2013_p0 = scmp.ge.s32.totalorder %s2741_s15, 1  ;;  %s2741_s15 = sphi %s2773_s15, %s15_s15  }
   0x2   : > { %p140_p1 = scmp.lt.s32.totalorder %s2741_s15, 3  ;;  %s2743_s17 = smov [#allocation2]  }
   0x3   : > { %s152_s18 = sshll.u32 %s2743_s17, 4  ;;  %p2578_p3 = scmp.eq.s32.totalorder %s2779_s16, 0  ;;  %s153_s18 = int_to_ptr.vmem [resolvable:$true] %s152_s18 }
   0x4   : > { %p2783_p2 = pnand %p2013_p0, %p140_p1  ;;  %s2716_s20 = scalar_lea.vmem %s153_s18, 13312 }
   0x5   : > { %p2717_p7 = scmp.ne.s32.totalorder %s153_s18, %s2716_s20  ;;  %p2724_p10 = scmp.lt.s32.totalorder %s153_s18, %s153_s18 }
   0x6   : > { %p2574_p4 = pneg %p2783_p2  ;;  %p2725_p11 = scmp.lt.s32.totalorder %s2716_s20, %s2716_s20 }
   0x8   : > { %p2575_p5 = pnand %p2578_p3, %p2574_p4  ;;  %p2726_p12 = por %p2725_p11, %p2724_p10 }
   0xa   : > { %p2707_p6 = pneg %p2575_p5 }
   0xc   : > { %p2719_p8 = pnand %p2717_p7, %p2707_p6 }
   0xe   : > { %p2720_p9 = pneg %p2719_p8 }
  0x10   : > { %p2727_p13 = pnand %p2726_p12, %p2720_p9 }
  0x12   : > { %2730 = shalt.err (!%p2727_p13)
}
  0x13   : > { %s2744_s21 = smov 64   ;;  %s2745_s22 = smov 4  }
  0x14   : > { %2577 = dma.hbm_to_vmem [thread:$0]  (!%p2575_p5), %s3028_s2, 13312, %s153_s18, [#allocation3], %s2744_s21, %s2744_s21, %s2745_s22  }
  0x15   : > { %186 = sbr.rel (%p2783_p2) target bundleno = 1578 (0x62a), region = 36 }
  0x1a   : > { %2736 = dma.done.wait (%p2578_p3), [#allocation3], 13312  }
  0x1b   : > { %2738 = vsyncadd (%p2578_p3), [#allocation3], 4294953984  ;;  %p215_p0 = scmp.lt.s32.totalorder %s2779_s16, 1  ;;  %v231_v0 = vlaneseq  ;;  %v2746_v1 = vmov 0.0   ;;  %vm2747_vm0 = vmmov 0   ;;  %v2593_v12 = vld [vmem:[#allocation2 + $0x78] sm:$0xff]  }
  0x1c   : > { %2274 = vmatprep.subr.bf16.mxu0 %v2746_v1  ;;  %2280 = vmatprep.subr.bf16.mxu1 %v2746_v1  ;;  %vm242_vm3 = vcmask 130048   ;;  %v2594_v14 = vld [vmem:[#allocation2 + $0x38] sm:$0xff]   ;;  %v2595_v15 = vld [vmem:[#allocation2 + $0x70] sm:$0xff]   ;;  %v2597_v17 = vld [vmem:[#allocation2 + $0x68] sm:$0xff]   ;;  %vm1038_vm5 = vcmask 1043456   ;;  %vm1035_vm6 = vcmask 64512  }
  0x1d   : > { %s3033_s16 = smov (!%p215_p0, %s2779_s16), 1  ;;  %2276 = vmatprep.mubr.msk.bf16.mxu0 %vm2747_vm0, %v2746_v1  ;;  %2282 = vmatprep.mubr.msk.bf16.mxu1 %vm2747_vm0, %v2746_v1  ;;  %v232_v2 = vshrl.u32 %v231_v0, 7  ;;  %v2811_v3 = vand.u32 127, %v231_v0  ;;  %v2596_v16 = vld [vmem:[#allocation2 + $0x30] sm:$0xff]   ;;  %v2598_v18 = vld [vmem:[#allocation2 + $0x28] sm:$0xff]   ;;  %v2599_v19 = vld [vmem:[#allocation2 + $0x60] sm:$0xff]  }
  0x1e   : > { %s2144_s25 = sshll.u32 %s3033_s16, 4  ;;  %v2600_v20 = vld [vmem:[#allocation2 + $0x20] sm:$0xff]   ;;  %v2601_v21 = vld [vmem:[#allocation2 + $0x58] sm:$0xff]   ;;  %v2603_v23 = vld [vmem:[#allocation2 + $0x50] sm:$0xff]   ;;  %s2020_s9 = sshll.u32 %s3033_s16, 2 }
  0x1f   : > { %v2814_v4 = vmul.u32 2, %v232_v2  ;;  %s219_s28 = scalar_lea.vmem %s3026_s0, %s2144_s25  ;;  %v2602_v22 = vld [vmem:[#allocation2 + $0x18] sm:$0xff]   ;;  %v2604_v24 = vld [vmem:[#allocation2 + $0x10] sm:$0xff]   ;;  %v2605_v25 = vld [vmem:[#allocation2 + $0x48] sm:$0xff]   ;;  %s223_s14 = scalar_lea.vmem %s3027_s1, %s2020_s9 }
  0x20   : > { %v229_v6 = vld [vmem:[%s219_s28] sm:$0xff]  ;;  %v230_v7 = vld [vmem:[%s219_s28 + $0x8] sm:$0xff]  ;;  %v2609_v31 = vld [vmem:[#allocation2 + $0x138] sm:$0xff]   ;;  %s227_s20 = scalar_lea.vmem %s3030_s4, %s2020_s9 }
  0x21   : > { %v237_v5 = vadd.s32 4294967295, %v2814_v4  ;;  %vm320_vm1 = vcmp.eq.s32.totalorder %v2811_v3, %v2814_v4  ;;  %v2823_v9 = vpack.c.bf16 %v230_v7, %v229_v6  ;;  %v2606_v26 = vld [vmem:[#allocation2 + $0x8] sm:$0xff]   ;;  %v2607_v27 = vld [vmem:[#allocation2 + $0x40] sm:$0xff]   ;;  %v2610_v32 = vld [vmem:[#allocation2 + $0xf8] sm:$0xff]   ;;  %v754_v55 = vadd.s32 1, %v2814_v4 }
  0x22   : > { %v2024_v8 = vsel %vm320_vm1, 1.0, %v2746_v1  ;;  %v2608_v28 = vld [vmem:[#allocation2] sm:$0xff]   ;;  %v2611_v38 = vld [vmem:[#allocation2 + $0x130] sm:$0xff]   ;;  %v2613_v43 = vld [vmem:[#allocation2 + $0x128] sm:$0xff]  }
  0x23   : > { %vm238_vm2 = vcmp.eq.s32.totalorder %v2811_v3, %v237_v5  ;;  %v2827_v11 = vpack.c.bf16 %v2024_v8, %v2024_v8  ;;  %2275 = vmatpush3.bf16.msra.mxu0 %v2823_v9  ;;  %2281 = vmatpush3.bf16.msra.mxu1 %v2823_v9  ;;  %v2612_v39 = vld [vmem:[#allocation2 + $0xf0] sm:$0xff]   ;;  %v2614_v44 = vld [vmem:[#allocation2 + $0xe8] sm:$0xff]   ;;  %v2615_v45 = vld [vmem:[#allocation2 + $0x120] sm:$0xff]   ;;  %vm755_vm4 = vcmp.eq.s32.totalorder %v2811_v3, %v754_v55 }
  0x24   : > { %v2022_v10 = vsel %vm238_vm2, 1.0, %v2746_v1  ;;  %2286 = vmatprep.subr.bf16.mxu0 %v2746_v1  ;;  %2306 = vmatprep.subr.bf16.mxu1 %v2746_v1  ;;  %v2616_v46 = vld [vmem:[#allocation2 + $0xe0] sm:$0xff]   ;;  %v2617_v47 = vld [vmem:[#allocation2 + $0x118] sm:$0xff]   ;;  %v2619_v49 = vld [vmem:[#allocation2 + $0x110] sm:$0xff]   ;;  %v2058_v56 = vsel %vm755_vm4, 1.0, %v2746_v1 }
  0x25   : > { %v2831_v13 = vpack.c.bf16 %v2022_v10, %v2022_v10  ;;  %v2618_v48 = vld [vmem:[#allocation2 + $0xd8] sm:$0xff]   ;;  %v2620_v50 = vld [vmem:[#allocation2 + $0xd0] sm:$0xff]   ;;  %v2621_v51 = vld [vmem:[#allocation2 + $0x108] sm:$0xff]   ;;  %v2888_v57 = vpack.c.bf16 %v2058_v56, %v2058_v56 }
  0x26   : > { %2283 = vmatmul.mubr.msk.bf16.vlgmr.msra.gmra.mxu1 %vm242_vm3, %v2827_v11  ;;  %v2622_v52 = vld [vmem:[#allocation2 + $0xc8] sm:$0xff]   ;;  %v2623_v53 = vld [vmem:[#allocation2 + $0x100] sm:$0xff]   ;;  %v2625_v58 = vld [vmem:[#allocation2 + $0xb8] sm:$0xff]  }
  0x27   : > { %2277 = vmatmul.mubr.msk.bf16.vlgmr.msra.gmra.mxu0 %vm242_vm3, %v2831_v13  ;;  %2307 = vmatpush3.bf16.msra.mxu1 %v2594_v14  ;;  %v2624_v54 = vld [vmem:[#allocation2 + $0xc0] sm:$0xff]   ;;  %v2626_v59 = vld [vmem:[#allocation2 + $0x178] sm:$0xff]   ;;  %v2627_v60 = vld [vmem:[#allocation2 + $0xb0] sm:$0xff]  }
  0x28   : > { %2287 = vmatpush3.bf16.msra.mxu0 %v2593_v12  ;;  %2308 = vmatprep.subr.bf16.mxu1 %v2746_v1  ;;  %v2628_v61 = vld [vmem:[#allocation2 + $0x170] sm:$0xff]   ;;  %v2629_v62 = vld [vmem:[#allocation2 + $0xa8] sm:$0xff]   ;;  %v2631_v0 = vld [vmem:[#allocation2 + $0xa0] sm:$0xff]  }
  0x29   : > { %2288 = vmatprep.subr.bf16.mxu0 %v2746_v1  ;;  %2302 = vmatprep.mubr.msk.bf16.mxu0 %vm2747_vm0, %v2746_v1  ;;  %v2630_v63 = vld [vmem:[#allocation2 + $0x168] sm:$0xff]   ;;  %v2632_v2 = vld [vmem:[#allocation2 + $0x160] sm:$0xff]   ;;  %v2633_v3 = vld [vmem:[#allocation2 + $0x98] sm:$0xff]  }
  0x2a   : > { %2322 = vmatprep.mubr.msk.bf16.mxu1 %vm2747_vm0, %v2746_v1  ;;  %v2634_v4 = vld [vmem:[#allocation2 + $0x158] sm:$0xff]   ;;  %v2635_v5 = vld [vmem:[#allocation2 + $0x90] sm:$0xff]   ;;  %v2637_v7 = vld [vmem:[#allocation2 + $0x88] sm:$0xff]  }
  0x2b   : > { %2309 = vmatpush3.bf16.msra.mxu1 %v2596_v16  ;;  %v2636_v6 = vld [vmem:[#allocation2 + $0x150] sm:$0xff]   ;;  %v2638_v8 = vld [vmem:[#allocation2 + $0x148] sm:$0xff]   ;;  %v2640_v10 = vld [vmem:[#allocation2 + $0x140] sm:$0xff]  }
  0x2c   : > { %2289 = vmatpush3.bf16.msra.mxu0 %v2595_v15  ;;  %2310 = vmatprep.subr.bf16.mxu1 %v2746_v1 }
  0x2d   : > { %2290 = vmatprep.subr.bf16.mxu0 %v2746_v1 }
  0x2f   : > { %2311 = vmatpush3.bf16.msra.mxu1 %v2598_v18 }
  0x30   : > { %2291 = vmatpush3.bf16.msra.mxu0 %v2597_v17  ;;  %2312 = vmatprep.subr.bf16.mxu1 %v2746_v1 }
  0x31   : > { %2292 = vmatprep.subr.bf16.mxu0 %v2746_v1 }
  0x33   : > { %2313 = vmatpush3.bf16.msra.mxu1 %v2600_v20 }
  0x34   : > { %2293 = vmatpush3.bf16.msra.mxu0 %v2599_v19  ;;  %2314 = vmatprep.subr.bf16.mxu1 %v2746_v1 }
  0x35   : > { %2294 = vmatprep.subr.bf16.mxu0 %v2746_v1 }
  0x37   : > { %2315 = vmatpush3.bf16.msra.mxu1 %v2602_v22 }
  0x38   : > { %2295 = vmatpush3.bf16.msra.mxu0 %v2601_v21  ;;  %2316 = vmatprep.subr.bf16.mxu1 %v2746_v1 }
  0x39   : > { %2296 = vmatprep.subr.bf16.mxu0 %v2746_v1 }
  0x3b   : > { %2317 = vmatpush3.bf16.msra.mxu1 %v2604_v24 }
  0x3c   : > { %2297 = vmatpush3.bf16.msra.mxu0 %v2603_v23  ;;  %2318 = vmatprep.subr.bf16.mxu1 %v2746_v1 }
  0x3d   : > { %2298 = vmatprep.subr.bf16.mxu0 %v2746_v1 }
  0x3f   : > { %2319 = vmatpush3.bf16.msra.mxu1 %v2606_v26 }
  0x40   : > { %2299 = vmatpush3.bf16.msra.mxu0 %v2605_v25  ;;  %2320 = vmatprep.subr.bf16.mxu1 %v2746_v1 }
  0x41   : > { %2300 = vmatprep.subr.bf16.mxu0 %v2746_v1 }
  0x43   : > { %2321 = vmatpush3.bf16.msra.mxu1 %v2608_v28 }
  0x44   : > { %2301 = vmatpush3.bf16.msra.mxu0 %v2607_v27  ;;  %2346 = vmatprep.subr.bf16.mxu1 %v2746_v1 }
  0x45   : > { %2326 = vmatprep.subr.bf16.mxu0 %v2746_v1 }
  0xe6   : > { %v361_v30 = vpop.f32.mrf.mxu1 }
  0xe7   : > { %v280_v29 = vpop.f32.mrf.mxu0  ;;  %v367_v34 = vpack.c.bf16 %v361_v30, %v361_v30 }
  0xe8   : > { %v286_v33 = vpack.c.bf16 %v280_v29, %v280_v29  ;;  %v2284_v36 = vpop.f32.mrf.mxu1 }
  0xe9   : > { %v2278_v35 = vpop.f32.mrf.mxu0  ;;  %2303 = vmatmul.mubr.bf16.vlgmr.msra.gmra.mxu0 %v367_v34  ;;  %v2641_v36 = vld [vmem:[#allocation2 + $0x1b8] sm:$0xff]  }
  0xea   : > { %2323 = vmatmul.mubr.bf16.vlgmr.msra.gmra.mxu1 %v286_v33  ;;  %2327 = vmatpush3.bf16.msra.mxu0 %v2609_v31  ;;  %v364_v40 = vpop.f32.mrf.mxu1 }
  0xeb   : > { %2347 = vmatpush3.bf16.msra.mxu1 %v2610_v32  ;;  %v283_v37 = vpop.f32.mrf.mxu0  ;;  %2328 = vmatprep.subr.bf16.mxu0 %v2746_v1  ;;  %v2648_v40 = vld [vmem:[#allocation2 + $0x198] sm:$0xff]  }
  0xec   : > { %2348 = vmatprep.subr.bf16.mxu1 %v2746_v1  ;;  %2342 = vmatprep.mubr.msk.bf16.mxu0 %vm2747_vm0, %v2746_v1  ;;  %v2285_v42 = vpop.f32.mrf.mxu1  ;;  %v2642_v37 = vld [vmem:[#allocation2 + $0x1b0] sm:$0xff]  }
  0xed   : > { %v2279_v41 = vpop.f32.mrf.mxu0  ;;  %2362 = vmatprep.mubr.msk.bf16.mxu1 %vm2747_vm0, %v2746_v1  ;;  %v2652_v42 = vld [vmem:[#allocation2 + $0x188] sm:$0xff]  }
  0xee   : > { %2329 = vmatpush3.bf16.msra.mxu0 %v2611_v38  ;;  %v2644_v38 = vld [vmem:[#allocation2 + $0x1a8] sm:$0xff]   ;;  %v2650_v41 = vld [vmem:[#allocation2 + $0x190] sm:$0xff]  }
  0xef   : > { %2349 = vmatpush3.bf16.msra.mxu1 %v2612_v39  ;;  %2330 = vmatprep.subr.bf16.mxu0 %v2746_v1  ;;  %v2646_v39 = vld [vmem:[#allocation2 + $0x1a0] sm:$0xff]  }
  0xf0   : > { %2350 = vmatprep.subr.bf16.mxu1 %v2746_v1 }
  0xf2   : > { %2331 = vmatpush3.bf16.msra.mxu0 %v2613_v43  ;;  %v2654_v43 = vld [vmem:[#allocation2 + $0x180] sm:$0xff]  }
  0xf3   : > { %2351 = vmatpush3.bf16.msra.mxu1 %v2614_v44  ;;  %2332 = vmatprep.subr.bf16.mxu0 %v2746_v1 }
  0xf4   : > { %2352 = vmatprep.subr.bf16.mxu1 %v2746_v1 }
  0xf6   : > { %2333 = vmatpush3.bf16.msra.mxu0 %v2615_v45 }
  0xf7   : > { %2353 = vmatpush3.bf16.msra.mxu1 %v2616_v46  ;;  %2334 = vmatprep.subr.bf16.mxu0 %v2746_v1  ;;  %v2077_v46 = vld [vmem:[%s3029_s3 + $0x1] ss:$0 sm:$0xff] }
  0xf8   : > { %2354 = vmatprep.subr.bf16.mxu1 %v2746_v1 }
  0xfa   : > { %2335 = vmatpush3.bf16.msra.mxu0 %v2617_v47 }
  0xfb   : > { %2355 = vmatpush3.bf16.msra.mxu1 %v2618_v48  ;;  %2336 = vmatprep.subr.bf16.mxu0 %v2746_v1 }
  0xfc   : > { %2356 = vmatprep.subr.bf16.mxu1 %v2746_v1 }
  0xfe   : > { %2337 = vmatpush3.bf16.msra.mxu0 %v2619_v49 }
  0xff   : > { %2357 = vmatpush3.bf16.msra.mxu1 %v2620_v50  ;;  %2338 = vmatprep.subr.bf16.mxu0 %v2746_v1 }
 0x100   : > { %2358 = vmatprep.subr.bf16.mxu1 %v2746_v1 }
 0x102   : > { %2339 = vmatpush3.bf16.msra.mxu0 %v2621_v51 }
 0x103   : > { %2359 = vmatpush3.bf16.msra.mxu1 %v2622_v52  ;;  %2340 = vmatprep.subr.bf16.mxu0 %v2746_v1 }
 0x104   : > { %2360 = vmatprep.subr.bf16.mxu1 %v2746_v1 }
 0x106   : > { %2341 = vmatpush3.bf16.msra.mxu0 %v2623_v53 }
 0x107   : > { %2361 = vmatpush3.bf16.msra.mxu1 %v2624_v54  ;;  %2392 = vmatprep.subr.bf16.mxu0 %v2746_v1 }
 0x108   : > { %2366 = vmatprep.subr.bf16.mxu1 %v2746_v1 }
 0x109   : > { %2343 = vmatmul.mubr.bf16.vlgmr.msra.gmra.mxu0 %v367_v34 }
 0x10a   : > { %2363 = vmatmul.mubr.bf16.vlgmr.msra.gmra.mxu1 %v286_v33  ;;  %2408 = vmatprep.mubr.msk.bf16.mxu0 %vm2747_vm0, %v2746_v1 }
 0x10b   : > { %2367 = vmatpush3.bf16.msra.mxu1 %v2823_v9  ;;  %2368 = vmatprep.mubr.msk.bf16.mxu1 %vm2747_vm0, %v2746_v1  ;;  %v2639_v9 = vld [vmem:[#allocation2 + $0x80] sm:$0xff]  }
 0x10c   : > { %2372 = vmatprep.subr.bf16.mxu1 %v2746_v1  ;;  %2393 = vmatpush3.bf16.msra.mxu0 %v2626_v59 }
 0x10d   : > { %2394 = vmatprep.subr.bf16.mxu0 %v2746_v1 }
 0x110   : > { %2395 = vmatpush3.bf16.msra.mxu0 %v2628_v61 }
 0x111   : > { %2396 = vmatprep.subr.bf16.mxu0 %v2746_v1 }
 0x112   : > { %2369 = vmatmul.mubr.msk.bf16.vlgmr.msra.gmra.mxu1 %vm242_vm3, %v2888_v57 }
 0x113   : > { %2388 = vmatprep.mubr.msk.bf16.mxu1 %vm2747_vm0, %v2746_v1  ;;  %2373 = vmatpush3.bf16.msra.mxu1 %v2625_v58 }
 0x114   : > { %2374 = vmatprep.subr.bf16.mxu1 %v2746_v1  ;;  %2397 = vmatpush3.bf16.msra.mxu0 %v2630_v63 }
 0x115   : > { %2398 = vmatprep.subr.bf16.mxu0 %v2746_v1 }
 0x117   : > { %2375 = vmatpush3.bf16.msra.mxu1 %v2627_v60  ;;  %v2076_v60 = vld [vmem:[%s3029_s3] ss:$0 sm:$0xff] }
 0x118   : > { %2376 = vmatprep.subr.bf16.mxu1 %v2746_v1  ;;  %2399 = vmatpush3.bf16.msra.mxu0 %v2632_v2 }
 0x119   : > { %2400 = vmatprep.subr.bf16.mxu0 %v2746_v1 }
 0x11b   : > { %2377 = vmatpush3.bf16.msra.mxu1 %v2629_v62 }
 0x11c   : > { %2378 = vmatprep.subr.bf16.mxu1 %v2746_v1  ;;  %2401 = vmatpush3.bf16.msra.mxu0 %v2634_v4  ;;  %v2645_v4 = vld [vmem:[#allocation2 + $0x1f0] sm:$0xff]  }
 0x11d   : > { %2402 = vmatprep.subr.bf16.mxu0 %v2746_v1 }
 0x11f   : > { %2379 = vmatpush3.bf16.msra.mxu1 %v2631_v0 }
 0x120   : > { %2380 = vmatprep.subr.bf16.mxu1 %v2746_v1  ;;  %2403 = vmatpush3.bf16.msra.mxu0 %v2636_v6  ;;  %v2651_v6 = vld [vmem:[#allocation2 + $0x1d8] sm:$0xff]  }
 0x121   : > { %2404 = vmatprep.subr.bf16.mxu0 %v2746_v1 }
 0x123   : > { %2381 = vmatpush3.bf16.msra.mxu1 %v2633_v3  ;;  %v2643_v3 = vld [vmem:[#allocation2 + $0x1f8] sm:$0xff]  }
 0x124   : > { %2382 = vmatprep.subr.bf16.mxu1 %v2746_v1  ;;  %2405 = vmatpush3.bf16.msra.mxu0 %v2638_v8  ;;  %v2657_v8 = vld [vmem:[#allocation2 + $0x1c0] sm:$0xff]  }
 0x125   : > { %2406 = vmatprep.subr.bf16.mxu0 %v2746_v1 }
 0x127   : > { %2383 = vmatpush3.bf16.msra.mxu1 %v2635_v5  ;;  %v2649_v5 = vld [vmem:[#allocation2 + $0x1e0] sm:$0xff]  }
 0x128   : > { %2384 = vmatprep.subr.bf16.mxu1 %v2746_v1  ;;  %2407 = vmatpush3.bf16.msra.mxu0 %v2640_v10  ;;  %v2656_v10 = vld [vmem:[#allocation2 + $0x278] sm:$0xff]  }
 0x129   : > { %2444 = vmatprep.subr.bf16.mxu0 %v2746_v1 }
 0x12b   : > { %2385 = vmatpush3.bf16.msra.mxu1 %v2637_v7  ;;  %v2655_v7 = vld [vmem:[#allocation2 + $0x1c8] sm:$0xff]  }
 0x12c   : > { %2386 = vmatprep.subr.bf16.mxu1 %v2746_v1 }
 0x12f   : > { %2387 = vmatpush3.bf16.msra.mxu1 %v2639_v9 }
 0x130   : > { %2412 = vmatprep.subr.bf16.mxu1 %v2746_v1 }
 0x1a9   : > { %v467_v12 = vpop.f32.mrf.mxu0 }
 0x1aa   : > { %v555_v14 = vpop.f32.mrf.mxu1 }
 0x1ab   : > { %v2910_v15 = vadd.f32 %v555_v14, %v467_v12  ;;  %v2304_v17 = vpop.f32.mrf.mxu0 }
 0x1ac   : > { %v2324_v16 = vpop.f32.mrf.mxu1 }
 0x1ad   : > { %v470_v19 = vpop.f32.mrf.mxu0  ;;  %v2658_v16 = vld [vmem:[#allocation2 + $0x270] sm:$0xff]  }
 0x1ae   : > { %v558_v18 = vpop.f32.mrf.mxu1  ;;  %v2659_v19 = vld [vmem:[#allocation2 + $0x2b8] sm:$0xff]  }
 0x1af   : > { %v2305_v21 = vpop.f32.mrf.mxu0 }
 0x1b0   : > { %v2325_v20 = vpop.f32.mrf.mxu1 }
 0x1b1   : > { %v2660_v20 = vld [vmem:[#allocation2 + $0x268] sm:$0xff]  }
 0x1c9   : > { %v660_v22 = vpop.f32.mrf.mxu0 }
 0x1ca   : > { %v748_v23 = vpop.f32.mrf.mxu1 }
 0x1cb   : > { %v749_v24 = vadd.f32 %v748_v23, %v660_v22  ;;  %v2344_v26 = vpop.f32.mrf.mxu0 }
 0x1cc   : > { %v2364_v25 = vpop.f32.mrf.mxu1 }
 0x1cd   : > { %v663_v28 = vpop.f32.mrf.mxu0  ;;  %v2662_v25 = vld [vmem:[#allocation2 + $0x260] sm:$0xff]  }
 0x1ce   : > { %v751_v27 = vpop.f32.mrf.mxu1  ;;  %v2664_v28 = vld [vmem:[#allocation2 + $0x258] sm:$0xff]  }
 0x1cf   : > { %v2345_v30 = vpop.f32.mrf.mxu0  ;;  %v2663_v27 = vld [vmem:[#allocation2 + $0x2a8] sm:$0xff]  }
 0x1d0   : > { %v2365_v29 = vpop.f32.mrf.mxu1  ;;  %v2666_v30 = vld [vmem:[#allocation2 + $0x250] sm:$0xff]  }
 0x1d1   : > { %v2665_v29 = vld [vmem:[#allocation2 + $0x2a0] sm:$0xff]  }
 0x1d2   : > { %v796_v31 = vpop.f32.mrf.mxu1 }
 0x1d3   : > { %v802_v32 = vpack.c.bf16 %v796_v31, %v796_v31  ;;  %v2667_v31 = vld [vmem:[#allocation2 + $0x298] sm:$0xff]  }
 0x1d4   : > { %v2370_v33 = vpop.f32.mrf.mxu1 }
 0x1d5   : > { %2389 = vmatmul.mubr.bf16.vlgmr.msra.gmra.mxu1 %v802_v32  ;;  %2409 = vmatmul.mubr.bf16.vlgmr.msra.gmra.mxu0 %v802_v32  ;;  %v2668_v32 = vld [vmem:[#allocation2 + $0x248] sm:$0xff]   ;;  %v2669_v33 = vld [vmem:[#allocation2 + $0x290] sm:$0xff]  }
 0x1d6   : > { %v799_v34 = vpop.f32.mrf.mxu1  ;;  %2414 = vmatprep.mubr.msk.bf16.mxu1 %vm2747_vm0, %v2746_v1  ;;  %2460 = vmatprep.mubr.msk.bf16.mxu0 %vm2747_vm0, %v2746_v1 }
 0x1d7   : > { %2445 = vmatpush3.bf16.msra.mxu0 %v2641_v36  ;;  %v2670_v34 = vld [vmem:[#allocation2 + $0x240] sm:$0xff]  }
 0x1d8   : > { %v2371_v35 = vpop.f32.mrf.mxu1  ;;  %2446 = vmatprep.subr.bf16.mxu0 %v2746_v1  ;;  %v2672_v36 = vld [vmem:[#allocation2 + $0x280] sm:$0xff]  }
 0x1d9   : > { %v2671_v35 = vld [vmem:[#allocation2 + $0x288] sm:$0xff]  }
 0x1db   : > { %2447 = vmatpush3.bf16.msra.mxu0 %v2642_v37  ;;  %v2673_v37 = vld [vmem:[#allocation2 + $0x238] sm:$0xff]  }
 0x1dc   : > { %2448 = vmatprep.subr.bf16.mxu0 %v2746_v1 }
 0x1df   : > { %2449 = vmatpush3.bf16.msra.mxu0 %v2644_v38  ;;  %v2674_v38 = vld [vmem:[#allocation2 + $0x2f8] sm:$0xff]  }
 0x1e0   : > { %2450 = vmatprep.subr.bf16.mxu0 %v2746_v1 }
 0x1e3   : > { %2451 = vmatpush3.bf16.msra.mxu0 %v2646_v39  ;;  %v2675_v39 = vld [vmem:[#allocation2 + $0x230] sm:$0xff]  }
 0x1e4   : > { %2452 = vmatprep.subr.bf16.mxu0 %v2746_v1 }
 0x1e7   : > { %2453 = vmatpush3.bf16.msra.mxu0 %v2648_v40  ;;  %v2676_v40 = vld [vmem:[#allocation2 + $0x2f0] sm:$0xff]  }
 0x1e8   : > { %2454 = vmatprep.subr.bf16.mxu0 %v2746_v1 }
 0x1eb   : > { %2455 = vmatpush3.bf16.msra.mxu0 %v2650_v41  ;;  %v2677_v41 = vld [vmem:[#allocation2 + $0x228] sm:$0xff]  }
 0x1ec   : > { %2456 = vmatprep.subr.bf16.mxu0 %v2746_v1 }
 0x1ef   : > { %2457 = vmatpush3.bf16.msra.mxu0 %v2652_v42  ;;  %v2678_v42 = vld [vmem:[#allocation2 + $0x2e8] sm:$0xff]  }
 0x1f0   : > { %2458 = vmatprep.subr.bf16.mxu0 %v2746_v1 }
 0x1f3   : > { %2459 = vmatpush3.bf16.msra.mxu0 %v2654_v43  ;;  %v2680_v43 = vld [vmem:[#allocation2 + $0x2e0] sm:$0xff]  }
 0x1f4   : > { %2484 = vmatprep.subr.bf16.mxu0 %v2746_v1 }
 0x295   : > { %v902_v44 = vpop.f32.mrf.mxu1  ;;  %v1008_v45 = vpop.f32.mrf.mxu0 }
 0x296   : > { %v1014_v47 = vadd.f32 %v1008_v45, %v749_v24  ;;  %v908_v59 = vadd.f32 %v902_v44, %v2910_v15  ;;  %v2661_v24 = vld [vmem:[#allocation2 + $0x2b0] sm:$0xff]   ;;  %v2681_v44 = vld [vmem:[#allocation2 + $0x218] sm:$0xff]  }
 0x297   : > { %v2390_v48 = vpop.f32.mrf.mxu1  ;;  %v2410_v49 = vpop.f32.mrf.mxu0  ;;  %v2682_v45 = vld [vmem:[#allocation2 + $0x2d8] sm:$0xff]  }
 0x298   : > { %v1026_v50 = vadd.f32 %v2077_v46, %v1014_v47  ;;  %v1021_v61 = vadd.f32 %v2076_v60, %v908_v59  ;;  %v2683_v46 = vld [vmem:[#allocation2 + $0x210] sm:$0xff]   ;;  %v2685_v48 = vld [vmem:[#allocation2 + $0x208] sm:$0xff]  }
 0x299   : > { %v905_v51 = vpop.f32.mrf.mxu1  ;;  %v1011_v52 = vpop.f32.mrf.mxu0  ;;  %v2684_v47 = vld [vmem:[#allocation2 + $0x2d0] sm:$0xff]   ;;  %v2686_v49 = vld [vmem:[#allocation2 + $0x2c8] sm:$0xff]  }
 0x29a   : > { %v2078_v53 = vmul.f32 -1.442695, %v1026_v50  ;;  %v2687_v50 = vld [vmem:[#allocation2 + $0x200] sm:$0xff]  }
 0x29b   : > { %v2391_v54 = vpop.f32.mrf.mxu1  ;;  %v2411_v55 = vpop.f32.mrf.mxu0  ;;  %v2688_v51 = vld [vmem:[#allocation2 + $0x2c0] sm:$0xff]  }
 0x29c   : > { %2697 = vpow2.f32 %v2078_v53 }
 0x2a9   : > { %v2698_v56 = vpop.eup %2697 }
 0x2aa   : > { %v1030_v58 = vadd.f32 1.0, %v2698_v56 }
 0x2ac   : > { %2699 = vrcp.f32 %v1030_v58 }
 0x2b9   : > { %v2700_v62 = vpop.eup %2699 }
 0x2ba   : > { %v1033_v63 = vmul.f32 %v2700_v62, %v1021_v61 }
 0x2bc   : > { %v1034_v0 = vpack.c.bf16 %v1033_v63, %v1033_v63 }
 0x2be   : > { %v2931_v2 = vsel %vm1038_vm5, %v1034_v0, 0 }
 0x2bf   : > { %2413 = vmatpush3.bf16.msra.mxu1 %v2931_v2 }
 0x2c0   : > { %2418 = vmatprep.subr.bf16.mxu1 %v2746_v1 }
 0x2c2   : > { %2415 = vmatmul.mubr.msk.bf16.vlgmr.msra.gmra.mxu1 %vm1035_vm6, %v2831_v13  ;;  %v2647_v13 = vld [vmem:[#allocation2 + $0x1e8] sm:$0xff]  }
 0x2c3   : > { %2419 = vmatpush3.bf16.msra.mxu1 %v2931_v2  ;;  %2420 = vmatprep.mubr.msk.bf16.mxu1 %vm2747_vm0, %v2746_v1 }
 0x2c4   : > { %2424 = vmatprep.subr.bf16.mxu1 %v2746_v1 }
 0x2ca   : > { %2421 = vmatmul.mubr.msk.bf16.vlgmr.msra.gmra.mxu1 %vm1035_vm6, %v2827_v11  ;;  %v2653_v11 = vld [vmem:[#allocation2 + $0x1d0] sm:$0xff]  }
 0x2cb   : > { %2425 = vmatpush3.bf16.msra.mxu1 %v2643_v3  ;;  %2440 = vmatprep.mubr.msk.bf16.mxu1 %vm2747_vm0, %v2746_v1 }
 0x2cc   : > { %2426 = vmatprep.subr.bf16.mxu1 %v2746_v1 }
 0x2cf   : > { %2427 = vmatpush3.bf16.msra.mxu1 %v2645_v4 }
 0x2d0   : > { %2428 = vmatprep.subr.bf16.mxu1 %v2746_v1 }
 0x2d3   : > { %2429 = vmatpush3.bf16.msra.mxu1 %v2647_v13 }
 0x2d4   : > { %2430 = vmatprep.subr.bf16.mxu1 %v2746_v1 }
 0x2d7   : > { %2431 = vmatpush3.bf16.msra.mxu1 %v2649_v5 }
 0x2d8   : > { %2432 = vmatprep.subr.bf16.mxu1 %v2746_v1 }
 0x2db   : > { %2433 = vmatpush3.bf16.msra.mxu1 %v2651_v6 }
 0x2dc   : > { %2434 = vmatprep.subr.bf16.mxu1 %v2746_v1 }
 0x2df   : > { %2435 = vmatpush3.bf16.msra.mxu1 %v2653_v11 }
 0x2e0   : > { %2436 = vmatprep.subr.bf16.mxu1 %v2746_v1 }
 0x2e3   : > { %2437 = vmatpush3.bf16.msra.mxu1 %v2655_v7 }
 0x2e4   : > { %2438 = vmatprep.subr.bf16.mxu1 %v2746_v1 }
 0x2e7   : > { %2439 = vmatpush3.bf16.msra.mxu1 %v2657_v8 }
 0x2e8   : > { %2464 = vmatprep.subr.bf16.mxu1 %v2746_v1 }
 0x382   : > { %v1076_v9 = vpop.f32.mrf.mxu1 }
 0x383   : > { %v1082_v12 = vpack.c.bf16 %v1076_v9, %v1076_v9 }
 0x384   : > { %v2416_v14 = vpop.f32.mrf.mxu1 }
 0x385   : > { %2461 = vmatmul.mubr.bf16.vlgmr.msra.gmra.mxu0 %v1082_v12  ;;  %v2690_v14 = vld [vmem:[#allocation2 + $0x330] sm:$0xff]  }
 0x386   : > { %2485 = vmatpush3.bf16.msra.mxu0 %v2656_v10  ;;  %v1079_v15 = vpop.f32.mrf.mxu1  ;;  %2500 = vmatprep.mubr.msk.bf16.mxu0 %vm2747_vm0, %v2746_v1 }
 0x387   : > { %2486 = vmatprep.subr.bf16.mxu0 %v2746_v1  ;;  %v2691_v15 = vld [vmem:[#allocation2 + $0x328] sm:$0xff]  }
 0x388   : > { %v2417_v17 = vpop.f32.mrf.mxu1 }
 0x389   : > { %v2693_v17 = vld [vmem:[#allocation2 + $0x318] sm:$0xff]  }
 0x38a   : > { %2487 = vmatpush3.bf16.msra.mxu0 %v2658_v16  ;;  %v1153_v18 = vpop.f32.mrf.mxu1  ;;  %v2692_v16 = vld [vmem:[#allocation2 + $0x320] sm:$0xff]  }
 0x38b   : > { %v1159_v21 = vpack.c.bf16 %v1153_v18, %v1153_v18  ;;  %2488 = vmatprep.subr.bf16.mxu0 %v2746_v1  ;;  %v2694_v18 = vld [vmem:[#allocation2 + $0x310] sm:$0xff]  }
 0x38c   : > { %v2422_v22 = vpop.f32.mrf.mxu1 }
 0x38d   : > { %2441 = vmatmul.mubr.bf16.vlgmr.msra.gmra.mxu1 %v1159_v21 }
 0x38e   : > { %2465 = vmatpush3.bf16.msra.mxu1 %v2659_v19  ;;  %2489 = vmatpush3.bf16.msra.mxu0 %v2660_v20  ;;  %v1156_v23 = vpop.f32.mrf.mxu1  ;;  %v2695_v19 = vld [vmem:[#allocation2 + $0x308] sm:$0xff]   ;;  %v2696_v20 = vld [vmem:[#allocation2 + $0x300] sm:$0xff]  }
 0x38f   : > { %2466 = vmatprep.subr.bf16.mxu1 %v2746_v1  ;;  %2490 = vmatprep.subr.bf16.mxu0 %v2746_v1  ;;  %v2131_v23 = vld [vmem:[%s3029_s3 + $0x3] ss:$0 sm:$0xff] }
 0x390   : > { %v2423_v26 = vpop.f32.mrf.mxu1  ;;  %2480 = vmatprep.mubr.msk.bf16.mxu1 %vm2747_vm0, %v2746_v1 }
 0x392   : > { %2467 = vmatpush3.bf16.msra.mxu1 %v2661_v24  ;;  %2491 = vmatpush3.bf16.msra.mxu0 %v2662_v25 }
 0x393   : > { %2468 = vmatprep.subr.bf16.mxu1 %v2746_v1  ;;  %2492 = vmatprep.subr.bf16.mxu0 %v2746_v1 }
 0x396   : > { %2469 = vmatpush3.bf16.msra.mxu1 %v2663_v27  ;;  %2493 = vmatpush3.bf16.msra.mxu0 %v2664_v28 }
 0x397   : > { %2470 = vmatprep.subr.bf16.mxu1 %v2746_v1  ;;  %2494 = vmatprep.subr.bf16.mxu0 %v2746_v1 }
 0x39a   : > { %2471 = vmatpush3.bf16.msra.mxu1 %v2665_v29  ;;  %2495 = vmatpush3.bf16.msra.mxu0 %v2666_v30 }
 0x39b   : > { %2472 = vmatprep.subr.bf16.mxu1 %v2746_v1  ;;  %2496 = vmatprep.subr.bf16.mxu0 %v2746_v1 }
 0x39e   : > { %2473 = vmatpush3.bf16.msra.mxu1 %v2667_v31  ;;  %2497 = vmatpush3.bf16.msra.mxu0 %v2668_v32 }
 0x39f   : > { %2474 = vmatprep.subr.bf16.mxu1 %v2746_v1  ;;  %2498 = vmatprep.subr.bf16.mxu0 %v2746_v1 }
 0x3a2   : > { %2475 = vmatpush3.bf16.msra.mxu1 %v2669_v33  ;;  %2499 = vmatpush3.bf16.msra.mxu0 %v2670_v34 }
 0x3a3   : > { %2476 = vmatprep.subr.bf16.mxu1 %v2746_v1  ;;  %2510 = vmatprep.subr.bf16.mxu0 %v2746_v1 }
 0x3a5   : > { %2501 = vmatmul.mubr.bf16.vlgmr.msra.gmra.mxu0 %v1082_v12  ;;  %v2689_v12 = vld [vmem:[#allocation2 + $0x338] sm:$0xff]  }
 0x3a6   : > { %2477 = vmatpush3.bf16.msra.mxu1 %v2671_v35  ;;  %2526 = vmatprep.mubr.msk.bf16.mxu0 %vm2747_vm0, %v2746_v1  ;;  %v2130_v35 = vld [vmem:[%s3029_s3 + $0x2] ss:$0 sm:$0xff] }
 0x3a7   : > { %2478 = vmatprep.subr.bf16.mxu1 %v2746_v1  ;;  %2511 = vmatpush3.bf16.msra.mxu0 %v2673_v37 }
 0x3a8   : > { %2512 = vmatprep.subr.bf16.mxu0 %v2746_v1 }
 0x3aa   : > { %2479 = vmatpush3.bf16.msra.mxu1 %v2672_v36 }
 0x3ab   : > { %2504 = vmatprep.subr.bf16.mxu1 %v2746_v1  ;;  %2513 = vmatpush3.bf16.msra.mxu0 %v2675_v39 }
 0x3ac   : > { %2514 = vmatprep.subr.bf16.mxu0 %v2746_v1 }
 0x3ad   : > { %2481 = vmatmul.mubr.bf16.vlgmr.msra.gmra.mxu1 %v1159_v21 }
 0x3ae   : > { %2505 = vmatpush3.bf16.msra.mxu1 %v2931_v2  ;;  %2506 = vmatprep.mubr.msk.bf16.mxu1 %vm2747_vm0, %v2746_v1 }
 0x3af   : > { %2530 = vmatprep.subr.bf16.mxu1 %v2746_v1  ;;  %2515 = vmatpush3.bf16.msra.mxu0 %v2677_v41 }
 0x3b0   : > { %2516 = vmatprep.subr.bf16.mxu0 %v2746_v1 }
 0x3b5   : > { %2507 = vmatmul.mubr.msk.bf16.vlgmr.msra.gmra.mxu1 %vm1035_vm6, %v2888_v57  ;;  %v2679_v57 = vld [vmem:[#allocation2 + $0x220] sm:$0xff]  }
 0x3b6   : > { %2546 = vmatprep.mubr.msk.bf16.mxu1 %vm2747_vm0, %v2746_v1  ;;  %2531 = vmatpush3.bf16.msra.mxu1 %v2674_v38  ;;  %v1820_v38 = vld [vmem:[%s223_s14] sm:$0xf] }
 0x3b7   : > { %2532 = vmatprep.subr.bf16.mxu1 %v2746_v1  ;;  %2517 = vmatpush3.bf16.msra.mxu0 %v2679_v57 }
 0x3b8   : > { %2518 = vmatprep.subr.bf16.mxu0 %v2746_v1 }
 0x3ba   : > { %2533 = vmatpush3.bf16.msra.mxu1 %v2676_v40 }
 0x3bb   : > { %2534 = vmatprep.subr.bf16.mxu1 %v2746_v1  ;;  %2519 = vmatpush3.bf16.msra.mxu0 %v2681_v44 }
 0x3bc   : > { %2520 = vmatprep.subr.bf16.mxu0 %v2746_v1 }
 0x3be   : > { %2535 = vmatpush3.bf16.msra.mxu1 %v2678_v42  ;;  %v2133_v42 = vld [vmem:[%s3029_s3 + $0x4] ss:$0 sm:$0xff] }
 0x3bf   : > { %2536 = vmatprep.subr.bf16.mxu1 %v2746_v1  ;;  %2521 = vmatpush3.bf16.msra.mxu0 %v2683_v46 }
 0x3c0   : > { %2522 = vmatprep.subr.bf16.mxu0 %v2746_v1 }
 0x3c2   : > { %2537 = vmatpush3.bf16.msra.mxu1 %v2680_v43 }
 0x3c3   : > { %2538 = vmatprep.subr.bf16.mxu1 %v2746_v1  ;;  %2523 = vmatpush3.bf16.msra.mxu0 %v2685_v48 }
 0x3c4   : > { %2524 = vmatprep.subr.bf16.mxu0 %v2746_v1 }
 0x3c6   : > { %2539 = vmatpush3.bf16.msra.mxu1 %v2682_v45 }
 0x3c7   : > { %2540 = vmatprep.subr.bf16.mxu1 %v2746_v1  ;;  %2525 = vmatpush3.bf16.msra.mxu0 %v2687_v50 }
 0x3c8   : > { %2550 = vmatprep.subr.bf16.mxu0 %v2746_v1 }
 0x3ca   : > { %2541 = vmatpush3.bf16.msra.mxu1 %v2684_v47 }
 0x3cb   : > { %2542 = vmatprep.subr.bf16.mxu1 %v2746_v1 }
 0x3ce   : > { %2543 = vmatpush3.bf16.msra.mxu1 %v2686_v49 }
 0x3cf   : > { %2544 = vmatprep.subr.bf16.mxu1 %v2746_v1 }
 0x3d2   : > { %2545 = vmatpush3.bf16.msra.mxu1 %v2688_v51 }
 0x445   : > { %v1347_v52 = vpop.f32.mrf.mxu0 }
 0x447   : > { %v2462_v53 = vpop.f32.mrf.mxu0 }
 0x449   : > { %v1350_v54 = vpop.f32.mrf.mxu0 }
 0x44b   : > { %v2463_v55 = vpop.f32.mrf.mxu0 }
 0x44d   : > { %v1259_v56 = vpop.f32.mrf.mxu1 }
 0x44e   : > { %v1348_v58 = vadd.f32 %v1347_v52, %v1259_v56 }
 0x44f   : > { %v2442_v59 = vpop.f32.mrf.mxu1 }
 0x451   : > { %v1262_v60 = vpop.f32.mrf.mxu1 }
 0x453   : > { %v2443_v61 = vpop.f32.mrf.mxu1 }
 0x465   : > { %v1540_v62 = vpop.f32.mrf.mxu0 }
 0x467   : > { %v2502_v63 = vpop.f32.mrf.mxu0 }
 0x469   : > { %v1543_v0 = vpop.f32.mrf.mxu0 }
 0x46b   : > { %v2503_v2 = vpop.f32.mrf.mxu0 }
 0x46d   : > { %v1452_v3 = vpop.f32.mrf.mxu1 }
 0x46e   : > { %v1541_v4 = vadd.f32 %v1540_v62, %v1452_v3 }
 0x46f   : > { %v2482_v13 = vpop.f32.mrf.mxu1 }
 0x471   : > { %v1455_v5 = vpop.f32.mrf.mxu1 }
 0x473   : > { %v2483_v6 = vpop.f32.mrf.mxu1 }
 0x475   : > { %v1582_v11 = vpop.f32.mrf.mxu1 }
 0x476   : > { %v1588_v7 = vpack.c.bf16 %v1582_v11, %v1582_v11 }
 0x477   : > { %v2508_v8 = vpop.f32.mrf.mxu1 }
 0x478   : > { %2527 = vmatmul.mubr.bf16.vlgmr.msra.gmra.mxu0 %v1588_v7  ;;  %2547 = vmatmul.mubr.bf16.vlgmr.msra.gmra.mxu1 %v1588_v7 }
 0x479   : > { %v1585_v9 = vpop.f32.mrf.mxu1  ;;  %2566 = vmatprep.mubr.msk.bf16.mxu0 %vm2747_vm0, %v2746_v1  ;;  %2551 = vmatpush3.bf16.msra.mxu0 %v2689_v12 }
 0x47a   : > { %2552 = vmatprep.subr.bf16.mxu0 %v2746_v1 }
 0x47b   : > { %v2509_v10 = vpop.f32.mrf.mxu1 }
 0x47d   : > { %2553 = vmatpush3.bf16.msra.mxu0 %v2690_v14 }
 0x47e   : > { %2554 = vmatprep.subr.bf16.mxu0 %v2746_v1 }
 0x481   : > { %2555 = vmatpush3.bf16.msra.mxu0 %v2691_v15 }
 0x482   : > { %2556 = vmatprep.subr.bf16.mxu0 %v2746_v1 }
 0x485   : > { %2557 = vmatpush3.bf16.msra.mxu0 %v2692_v16 }
 0x486   : > { %2558 = vmatprep.subr.bf16.mxu0 %v2746_v1 }
 0x489   : > { %2559 = vmatpush3.bf16.msra.mxu0 %v2693_v17 }
 0x48a   : > { %2560 = vmatprep.subr.bf16.mxu0 %v2746_v1 }
 0x48d   : > { %2561 = vmatpush3.bf16.msra.mxu0 %v2694_v18 }
 0x48e   : > { %2562 = vmatprep.subr.bf16.mxu0 %v2746_v1 }
 0x491   : > { %2563 = vmatpush3.bf16.msra.mxu0 %v2695_v19 }
 0x492   : > { %2564 = vmatprep.subr.bf16.mxu0 %v2746_v1 }
 0x495   : > { %2565 = vmatpush3.bf16.msra.mxu0 %v2696_v20 }
 0x538   : > { %v1688_v21 = vpop.f32.mrf.mxu0  ;;  %v1794_v22 = vpop.f32.mrf.mxu1 }
 0x539   : > { %v1800_v24 = vadd.f32 %v1794_v22, %v1541_v4  ;;  %v1694_v34 = vadd.f32 %v1688_v21, %v1348_v58 }
 0x53a   : > { %v2528_v25 = vpop.f32.mrf.mxu0  ;;  %v2548_v26 = vpop.f32.mrf.mxu1 }
 0x53b   : > { %v1812_v27 = vadd.f32 %v2131_v23, %v1800_v24  ;;  %v1807_v36 = vadd.f32 %v2130_v35, %v1694_v34 }
 0x53c   : > { %v1691_v28 = vpop.f32.mrf.mxu0  ;;  %v1797_v29 = vpop.f32.mrf.mxu1 }
 0x53d   : > { %v2132_v30 = vmul.f32 -1.442695, %v1812_v27 }
 0x53e   : > { %v2529_v31 = vpop.f32.mrf.mxu0  ;;  %v2549_v32 = vpop.f32.mrf.mxu1 }
 0x53f   : > { %2701 = vpow2.f32 %v2132_v30 }
 0x54c   : > { %v2702_v33 = vpop.eup %2701 }
 0x54d   : > { %v1816_v1 = vadd.f32 1.0, %v2702_v33 }
 0x54f   : > { %2703 = vrcp.f32 %v1816_v1 }
 0x55c   : > { %v2704_v37 = vpop.eup %2703 }
 0x55d   : > { %v1819_v39 = vmul.f32 %v2704_v37, %v1807_v36 }
 0x55f   : > { %v1821_v40 = vadd.f32 %v1820_v38, %v1819_v39 }
 0x561   : > { %v1822_v41 = vpack.c.bf16 %v1821_v40, %v1821_v40 }
 0x563   : > { %2567 = vmatmul.mubr.bf16.vlgmr.msra.gmra.mxu0 %v1822_v41 }
 0x623   : > { %v1927_v57 = vpop.f32.mrf.mxu0 }
 0x624   : > { %v1928_v43 = vadd.f32 %v2133_v42, %v1927_v57 }
 0x625   : > { %v2568_v44 = vpop.f32.mrf.mxu0 }
 0x626   : > { %1933 = vst [vmem:[%s227_s20] sm:$0xf] %v1928_v43 }
 0x627   : > { %v1930_v45 = vpop.f32.mrf.mxu0 }
 0x629   : > { %v2569_v46 = vpop.f32.mrf.mxu0 }
 0x62a PF: > { %s15_s15 = sadd.s32 1, %s2741_s15  }
 0x62b   : > { %p12_p1 = scmp.ge.s32.totalorder %s15_s15, 4  }
 0x62d   :  { %14 = sbr.rel (!%p12_p1) target bundleno = 1 (0x1), region = 86 }
 0x632   :  { %1953 = vsyncpa [#allocation3], 1 }
 0x633   :  { %1955 = vsyncpa [#allocation3 + $0x1], 1 }

// kernel: conformer_forward.3
= control target key start
LH: loop header
LB: loop body
LE: loop exit
PB: predicated region body
PF: predicated region fallthrough
CT: control target
= control target key end

     0   :  { %9 = vsyncpa [#allocation3], 0  ;;  %s4638_s0 = inlined_call_operand.vmem [shape: f32[2,8,128], index: 0, kind: input, shape index: {}]   ;;  %s4639_s1 = inlined_call_operand.vmem [shape: f32[2,8], index: 1, kind: input, shape index: {}]   ;;  %s4640_s2 = inlined_call_operand.vmem [shape: f32[2,27,128], index: 2, kind: input, shape index: {}]   ;;  %s4641_s3 = inlined_call_operand.hbm [shape: bf16[22,128,128], index: 3, kind: input, shape index: {}]   ;;  %s4642_s4 = inlined_call_operand.vmem [shape: f32[2,8,128], index: 4, kind: output, shape index: {}]  }
   0x1   :  { %11 = vsyncpa [#allocation3 + $0x1], 0  ;;  %s3946_s15 = smov 0   ;;  %s3948_s16 = smov 0  }
   0x2   :  { %s3950_s17 = smov 0   ;;  %s3952_s18 = smov 0  }
   0x3 LB: > { %s3965_s19 = sadd.s32 4294967295, %s3910_s18   ;;  %s3968_s20 = sadd.s32 1, %s3910_s18   ;;  %s3910_s18 = sphi %s3952_s18, %s4651_s18   ;;  %s3906_s17 = sphi %s3950_s17, %s4650_s17   ;;  %s3902_s16 = sphi %s3948_s16, %s4649_s16   ;;  %s3898_s15 = sphi %s3946_s15, %s4648_s15  }
   0x4   : > { %s89_s21 = ssub.s32 %s3910_s18, %s3968_s20  ;;  %s92_s22 = sadd.s32 1, %s3906_s17 }
   0x5   : > { %p90_p0 = scmp.eq.s32.totalorder %s89_s21, 0  ;;  %p99_p1 = scmp.ne.s32.totalorder %s3906_s17, %s3902_s16 }
   0x6   : > { %p100_p2 = scmp.eq.s32.totalorder %s3910_s18, 0  ;;  %p105_p3 = scmp.ne.s32.totalorder %s3902_s16, %s3898_s15 }
   0x7   : > { %s3978_s23 = scalar_select %p90_p0, %s3906_s17, %s92_s22  }
   0x8   : > { %p101_p4 = por %p100_p2, %p99_p1  ;;  %p106_p5 = scmp.eq.s32.totalorder %s3965_s19, 0 }
   0x9   : > { %p3617_p6 = scmp.lt.s32.totalorder %s3910_s18, 2  ;;  %s164_s25 = sand.u32 1, %s3906_s17  }
   0xa   : > { %p3982_p7 = por %p106_p5, %p105_p3  ;;  %s3609_s26 = smul.u32 704, %s164_s25 }
   0xb   : > { %s3161_s27 = smul.u32 11264, %s3910_s18  ;;  %p3988_p8 = pnand %p3617_p6, %p101_p4 }
   0xc   : > { %s4644_s24 = scalar_select %p3982_p7, 1, 0 }
   0xd   : > { %s3995_s5 = scalar_lea.hbm %s4641_s3, %s3161_s27  ;;  %s168_s6 = scalar_lea.vmem [#allocation2], %s3609_s26 }
   0xe   : > { %s176_s7 = sshll.u32 %s168_s6, 4  ;;  %s4000_s8 = scalar_lea.sflag [#allocation3], %s164_s25  ;;  %s3997_s7 = int_to_ptr.vmem [resolvable:$true] %s176_s7 }
   0xf   : > { %s3848_s9 = scalar_lea.hbm %s3995_s5, 11264  ;;  %p3850_p11 = pneg %p3988_p8 }
  0x10   : > { %p3849_p10 = scmp.ne.s32.totalorder %s3995_s5, %s3848_s9  ;;  %s3853_s12 = scalar_lea.hbm %s4641_s3, 22528 }
  0x11   : > { %p3854_p0 = scmp.lt.s32.totalorder %s3995_s5, %s4641_s3  ;;  %p3855_p1 = scmp.lt.s32.totalorder %s3853_s12, %s3848_s9 }
  0x12   : > { %p3851_p12 = pnand %p3850_p11, %p3849_p10 }
  0x13   : > { %p3856_p2 = por %p3855_p1, %p3854_p0 }
  0x14   : > { %p3852_p13 = pneg %p3851_p12 }
  0x16   : > { %p3857_p3 = pnand %p3856_p2, %p3852_p13 }
  0x18   : > { %3860 = shalt.err (!%p3857_p3)
}
  0x19   : > { %s3861_s15 = scalar_lea.vmem %s3997_s7, 11264  ;;  %s3912_s21 = smov [#allocation2]  }
  0x1a   : > { %p3862_p4 = scmp.ne.s32.totalorder %s3997_s7, %s3861_s15  ;;  %s3866_s22 = sshll.u32 %s3912_s21, 4  ;;  %s3867_s22 = int_to_ptr.vmem [resolvable:$false] %s3866_s22 }
  0x1b   : > { %s3868_s25 = scalar_lea.vmem %s3867_s22, 22528  ;;  %p3869_p10 = scmp.lt.s32.totalorder %s3997_s7, %s3867_s22 }
  0x1c   : > { %p3864_p5 = pnand %p3862_p4, %p3850_p11  ;;  %p3870_p12 = scmp.lt.s32.totalorder %s3868_s25, %s3861_s15 }
  0x1e   : > { %p3865_p6 = pneg %p3864_p5  ;;  %p3871_p9 = por %p3870_p12, %p3869_p10 }
  0x20   : > { %p3872_p7 = pnand %p3871_p9, %p3865_p6 }
  0x22   : > { %3875 = shalt.err (!%p3872_p7)
}
  0x23   : > { %s3913_s26 = smov 64   ;;  %s3914_s27 = smov 4  }
  0x24   : > { %3616 = dma.hbm_to_vmem [thread:$0]  (!%p3988_p8), %s3995_s5, 11264, %s3997_s7, %s4000_s8, %s3913_s26, %s3913_s26, %s3914_s27  }
  0x25   : > { %p184_p11 = scmp.lt.s32.totalorder %s3910_s18, 3  ;;  %p4646_p13 = scmp.ge.s32.totalorder %s3910_s18, 1 }
  0x27   : > { %p185_p0 = pnand %p4646_p13, %p184_p11 }
  0x28   : > { %s190_s29 = sand.u32 (!%p185_p0), 1, %s3902_s16   ;;  %p4647_p7 = scmp.ne.s32.totalorder (!%p185_p0), %s4644_s24, 0 }
  0x29   : > { %188 = sbr.rel (%p185_p0) target bundleno = 5124 (0x1404), region = 36  ;;  %s191_s6 = scalar_lea.sflag (!%p185_p0), [#allocation3], %s190_s29 }
  0x2a   : > { %s3610_s30 = smul.u32 (!%p185_p0), 704, %s190_s29 }
  0x2c   : > { %s4025_s9 = scalar_lea.vmem (!%p185_p0), [#allocation2], %s3610_s30 }
  0x2e   : > { %3893 = dma.done.wait (%p4647_p7), %s191_s6, 11264  }
  0x2f   : > { %3895 = vsyncadd (%p4647_p7), %s191_s6, 4294956032  ;;  %p219_p9 = scmp.lt.s32.totalorder %s3965_s19, 1  ;;  %p2869_p8 = scmp.ne.s32.totalorder %s3965_s19, 0 }
  0x31   : > { %s220_s28 = scalar_select %p219_p9, %s3965_s19, 1 }
  0x32   : > { %229 = sbr.rel (%p2869_p8) target bundleno = 57 (0x39), region = 44 }
  0x33   : > { %s3154_s5 = sshll.u32 %s220_s28, 5 }
  0x34   : > { %s4036_s8 = scalar_lea.vmem %s4640_s2, %s3154_s5 }
  0x37   : > { %v230_v0 = vld [vmem:[%s4638_s0] sm:$0xff]  ;;  %v231_v1 = vld [vmem:[%s4638_s0 + $0x8] sm:$0xff] }
  0x38   : > { %232 = vst [vmem:[%s4642_s4] sm:$0xff] %v230_v0  ;;  %233 = vst [vmem:[%s4642_s4 + $0x8] sm:$0xff] %v231_v1 }
  0x39 PF: > { %v3673_v6 = vld [vmem:[%s4025_s9 + $0x38] sm:$0xff]   ;;  %v3915_v7 = vmov 0.0   ;;  %v3674_v8 = vld [vmem:[%s4025_s9 + $0x30] sm:$0xff]   ;;  %v3675_v9 = vld [vmem:[%s4025_s9 + $0x28] sm:$0xff]   ;;  %vm3916_vm0 = vmmov 0   ;;  %v241_v31 = vlaneseq  ;;  %vm950_vm1 = vcmask 261120  }
  0x3a   : > { %3293 = vmatprep.subr.bf16.mxu0 %v3915_v7  ;;  %3313 = vmatprep.subr.bf16.mxu1 %v3915_v7  ;;  %v3676_v10 = vld [vmem:[%s4025_s9 + $0x20] sm:$0xff]   ;;  %v3677_v11 = vld [vmem:[%s4025_s9 + $0x18] sm:$0xff]   ;;  %v3678_v12 = vld [vmem:[%s4025_s9 + $0x10] sm:$0xff]   ;;  %vm1071_vm2 = vcmask 1043456   ;;  %vm1043_vm3 = vcmask 64512   ;;  %s3918_s30 = smov 96  }
  0x3b   : > { %3294 = vmatpush3.bf16.msra.mxu0 %v3673_v6  ;;  %3309 = vmatprep.mubr.msk.bf16.mxu0 %vm3916_vm0, %v3915_v7  ;;  %v3679_v13 = vld [vmem:[%s4025_s9 + $0x8] sm:$0xff]   ;;  %v3680_v14 = vld [vmem:[%s4025_s9] sm:$0xff]   ;;  %v4089_v32 = vshrl.u32 %v241_v31, 7  ;;  %v3681_v49 = vld [vmem:[%s4025_s9 + $0x78] sm:$0xff]   ;;  %s3919_s6 = smov 64   ;;  %s3920_s28 = smov 32  }
  0x3c   : > { %3295 = vmatprep.subr.bf16.mxu0 %v3915_v7  ;;  %3329 = vmatprep.mubr.msk.bf16.mxu1 %vm3916_vm0, %v3915_v7  ;;  %v4095_v34 = vld [vmem:[%s4036_s8] sm:$0xff]  ;;  %v3682_v50 = vld [vmem:[%s4025_s9 + $0x70] sm:$0xff]   ;;  %v3683_v51 = vld [vmem:[%s4025_s9 + $0x68] sm:$0xff]   ;;  %vm1847_vm4 = vcmask 523264   ;;  %vm1850_vm5 = vcmask 785408  }
  0x3d   : > { %v4092_v33 = vsub.s32 0, %v4089_v32  ;;  %v4101_v39 = vsub.s32 1, %v4089_v32  ;;  %3314 = vmatpush3.bf16.msra.mxu1 %v3681_v49  ;;  %v3684_v52 = vld [vmem:[%s4025_s9 + $0x60] sm:$0xff]   ;;  %v3685_v53 = vld [vmem:[%s4025_s9 + $0x58] sm:$0xff]   ;;  %v3686_v54 = vld [vmem:[%s4025_s9 + $0x50] sm:$0xff]   ;;  %v4125_v57 = vsub.s32 2, %v4089_v32 }
  0x3e   : > { %3315 = vmatprep.subr.bf16.mxu1 %v3915_v7  ;;  %v3687_v55 = vld [vmem:[%s4025_s9 + $0x48] sm:$0xff]   ;;  %v3688_v56 = vld [vmem:[%s4025_s9 + $0x40] sm:$0xff]   ;;  %vm243_vm6 = vcmp.lt.s32.totalorder %v4089_v32, 4  ;;  %vm2239_vm7 = vcmp.lt.s32.totalorder %v4089_v32, 3  ;;  %vm2252_vm8 = vcmp.lt.s32.totalorder %v4089_v32, 2  ;;  %vm2265_vm9 = vcmp.lt.s32.totalorder %v4089_v32, 1 }
  0x3f   : > { %v4054_v2 = vld [vmem:[%s4642_s4] sm:$0xff]  ;;  %v4059_v3 = vld [vmem:[%s4642_s4 + $0x8] sm:$0xff]  ;;  %3296 = vmatpush3.bf16.msra.mxu0 %v3674_v8  ;;  %v278_v38 = vrot.slane %v4095_v34, %v4092_v33  ;;  %v284_v44 = vrot.slane %v4095_v34, %v4101_v39  ;;  %v307_v58 = vrot.slane %v4095_v34, %v4125_v57  ;;  %vm2286_vm10 = vcmp.lt.s32.totalorder %v4089_v32, 7 }
  0x40   : > { %246 = vadd.xlane.f32.xlu0 %v4054_v2  ;;  %v253_v4 = vmul.f32 %v4054_v2, %v4054_v2  ;;  %v254_v5 = vmul.f32 %v4059_v3, %v4059_v3  ;;  %3297 = vmatprep.subr.bf16.mxu0 %v3915_v7  ;;  %v3693_v31 = vld [vmem:[%s4025_s9 + $0xa8] sm:$0xff]   ;;  %vm2299_vm11 = vcmp.lt.s32.totalorder %v4089_v32, 6  ;;  %vm2312_vm12 = vcmp.lt.s32.totalorder %v4089_v32, 5 }
  0x41   : > { %3316 = vmatpush3.bf16.msra.mxu1 %v3682_v50 }
  0x42   : > { %255 = vadd.xlane.f32.xlu1 %v253_v4  ;;  %3317 = vmatprep.subr.bf16.mxu1 %v3915_v7 }
  0x43   : > { %3298 = vmatpush3.bf16.msra.mxu0 %v3675_v9 }
  0x44   : > { %248 = vadd.xlane.f32.xlu0 %v4059_v3  ;;  %3299 = vmatprep.subr.bf16.mxu0 %v3915_v7 }
  0x45   : > { %3318 = vmatpush3.bf16.msra.mxu1 %v3683_v51 }
  0x46   : > { %257 = vadd.xlane.f32.xlu1 %v254_v5  ;;  %3319 = vmatprep.subr.bf16.mxu1 %v3915_v7 }
  0x47   : > { %3300 = vmatpush3.bf16.msra.mxu0 %v3676_v10 }
  0x48   : > { %3301 = vmatprep.subr.bf16.mxu0 %v3915_v7 }
  0x49   : > { %3320 = vmatpush3.bf16.msra.mxu1 %v3684_v52 }
  0x4a   : > { %3321 = vmatprep.subr.bf16.mxu1 %v3915_v7 }
  0x4b   : > { %3302 = vmatpush3.bf16.msra.mxu0 %v3677_v11 }
  0x4c   : > { %3303 = vmatprep.subr.bf16.mxu0 %v3915_v7 }
  0x4d   : > { %3322 = vmatpush3.bf16.msra.mxu1 %v3685_v53 }
  0x4e   : > { %3323 = vmatprep.subr.bf16.mxu1 %v3915_v7 }
  0x4f   : > { %3304 = vmatpush3.bf16.msra.mxu0 %v3678_v12 }
  0x50   : > { %3305 = vmatprep.subr.bf16.mxu0 %v3915_v7 }
  0x51   : > { %3324 = vmatpush3.bf16.msra.mxu1 %v3686_v54 }
  0x52   : > { %3325 = vmatprep.subr.bf16.mxu1 %v3915_v7 }
  0x53   : > { %3306 = vmatpush3.bf16.msra.mxu0 %v3679_v13 }
  0x54   : > { %3307 = vmatprep.subr.bf16.mxu0 %v3915_v7 }
  0x55   : > { %3326 = vmatpush3.bf16.msra.mxu1 %v3687_v55 }
  0x56   : > { %3327 = vmatprep.subr.bf16.mxu1 %v3915_v7 }
  0x57   : > { %3308 = vmatpush3.bf16.msra.mxu0 %v3680_v14 }
  0x58   : > { %3333 = vmatprep.subr.bf16.mxu0 %v3915_v7 }
  0x59   : > { %3328 = vmatpush3.bf16.msra.mxu1 %v3688_v56 }
  0x5a   : > { %3353 = vmatprep.subr.bf16.mxu1 %v3915_v7 }
  0xc9   : > { %v247_v15 = vpop.xlane.xlu0 %246 }
  0xca   : > { %v251_v16 = vmul.f32 0.03125, %v247_v15  ;;  %v4132_v15 = vsub.s32 3, %v4089_v32 }
  0xcb   : > { %v256_v17 = vpop.xlane.xlu1 %255 }
  0xcc   : > { %v261_v18 = vmul.f32 %v251_v16, %v251_v16  ;;  %v259_v19 = vmul.f32 0.03125, %v256_v17  ;;  %v271_v35 = vsub.f32 %v4054_v2, %v251_v16  ;;  %v432_v16 = vrot.slane %v4095_v34, %v4132_v15 }
  0xcd   : > { %v249_v20 = vpop.xlane.xlu0 %248 }
  0xce   : > { %v263_v21 = vsub.f32 %v259_v19, %v261_v18  ;;  %v252_v22 = vmul.f32 0.03125, %v249_v20 }
  0xcf   : > { %v258_v23 = vpop.xlane.xlu1 %257 }
  0xd0   : > { %v265_v24 = vmax.f32 %v263_v21, 0.0  ;;  %v262_v25 = vmul.f32 %v252_v22, %v252_v22  ;;  %v260_v26 = vmul.f32 0.03125, %v258_v23  ;;  %v272_v40 = vsub.f32 %v4059_v3, %v252_v22 }
  0xd2   : > { %v267_v27 = vadd.f32 1e-05, %v265_v24  ;;  %v264_v28 = vsub.f32 %v260_v26, %v262_v25 }
  0xd4   : > { %3761 = vrsqrt.f32 %v267_v27  ;;  %v266_v29 = vmax.f32 %v264_v28, 0.0  ;;  %v3689_v28 = vld [vmem:[%s4025_s9 + $0xb8] sm:$0xff]  }
  0xd6   : > { %v268_v30 = vadd.f32 1e-05, %v266_v29  ;;  %v3690_v29 = vld [vmem:[%s4025_s9 + $0xf8] sm:$0xff]  }
  0xd8   : > { %3763 = vrsqrt.f32 %v268_v30  ;;  %v3692_v30 = vld [vmem:[%s4025_s9 + $0xf0] sm:$0xff]  }
  0xe1   : > { %v3762_v36 = vpop.eup %3761 }
  0xe2   : > { %v273_v37 = vmul.f32 %v3762_v36, %v271_v35  ;;  %v3694_v35 = vld [vmem:[%s4025_s9 + $0xe8] sm:$0xff]   ;;  %v3695_v36 = vld [vmem:[%s4025_s9 + $0xa0] sm:$0xff]  }
  0xe4   : > { %v279_v43 = vmul.f32 %v278_v38, %v273_v37  ;;  %v3696_v37 = vld [vmem:[%s4025_s9 + $0xe0] sm:$0xff]  }
  0xe5   : > { %v3764_v41 = vpop.eup %3763 }
  0xe6   : > { %v274_v42 = vmul.f32 %v3764_v41, %v272_v40  ;;  %v285_v46 = vadd.f32 %v284_v44, %v279_v43  ;;  %v3698_v40 = vld [vmem:[%s4025_s9 + $0xd8] sm:$0xff]   ;;  %v3699_v41 = vld [vmem:[%s4025_s9 + $0x90] sm:$0xff]   ;;  %v3701_v43 = vld [vmem:[%s4025_s9 + $0x88] sm:$0xff]  }
  0xe8   : > { %v280_v45 = vmul.f32 %v278_v38, %v274_v42  ;;  %v3697_v38 = vld [vmem:[%s4025_s9 + $0x98] sm:$0xff]   ;;  %v3700_v42 = vld [vmem:[%s4025_s9 + $0xd0] sm:$0xff]  }
  0xea   : > { %v286_v47 = vadd.f32 %v284_v44, %v280_v45  ;;  %v3702_v44 = vld [vmem:[%s4025_s9 + $0xc8] sm:$0xff]   ;;  %v3703_v45 = vld [vmem:[%s4025_s9 + $0x80] sm:$0xff]  }
  0xec   : > { %v287_v48 = vpack.c.bf16 %v286_v47, %v285_v46  ;;  %v3704_v46 = vld [vmem:[%s4025_s9 + $0xc0] sm:$0xff]  }
  0xee   : > { %3310 = vmatmul.mubr.bf16.vlgmr.msra.gmra.mxu0 %v287_v48 }
  0xef   : > { %3349 = vmatprep.mubr.msk.bf16.mxu0 %vm3916_vm0, %v3915_v7  ;;  %3334 = vmatpush3.bf16.msra.mxu0 %v3689_v28  ;;  %v4215_v28 = vsub.s32 7, %v4089_v32 }
  0xf0   : > { %3335 = vmatprep.subr.bf16.mxu0 %v3915_v7 }
 0x1ae   : > { %v390_v59 = vpop.f32.mrf.mxu0 }
 0x1af   : > { %v391_v60 = vadd.f32 %v390_v59, %v307_v58 }
 0x1b0   : > { %v3311_v61 = vpop.f32.mrf.mxu0 }
 0x1b1   : > { %v2879_v62 = vmul.f32 -1.442695, %v391_v60 }
 0x1b2   : > { %v393_v63 = vpop.f32.mrf.mxu0 }
 0x1b3   : > { %3765 = vpow2.f32 %v2879_v62  ;;  %v394_v0 = vadd.f32 %v393_v63, %v307_v58 }
 0x1b4   : > { %v3312_v1 = vpop.f32.mrf.mxu0 }
 0x1b5   : > { %v2880_v4 = vmul.f32 -1.442695, %v394_v0 }
 0x1b7   : > { %3767 = vpow2.f32 %v2880_v4 }
 0x1c0   : > { %v3766_v5 = vpop.eup %3765 }
 0x1c1   : > { %v403_v6 = vadd.f32 1.0, %v3766_v5 }
 0x1c3   : > { %3769 = vrcp.f32 %v403_v6 }
 0x1c4   : > { %v3768_v8 = vpop.eup %3767 }
 0x1c5   : > { %v404_v9 = vadd.f32 1.0, %v3768_v8  ;;  %v4187_v8 = vsub.s32 5, %v4089_v32 }
 0x1c7   : > { %3771 = vrcp.f32 %v404_v9 }
 0x1d0   : > { %v3770_v10 = vpop.eup %3769 }
 0x1d1   : > { %v409_v12 = vmul.f32 %v3770_v10, %v391_v60 }
 0x1d4   : > { %v3772_v11 = vpop.eup %3771 }
 0x1d5   : > { %v410_v13 = vmul.f32 %v3772_v11, %v394_v0  ;;  %v4181_v0 = vsub.s32 4, %v4089_v32 }
 0x1d7   : > { %v411_v14 = vpack.c.bf16 %v410_v13, %v409_v12  ;;  %v557_v6 = vrot.slane %v4095_v34, %v4181_v0  ;;  %v563_v13 = vrot.slane %v4095_v34, %v4187_v8 }
 0x1d9   : > { %3330 = vmatmul.mubr.bf16.vlgmr.msra.gmra.mxu1 %v411_v14 }
 0x1da   : > { %3369 = vmatprep.mubr.msk.bf16.mxu1 %vm3916_vm0, %v3915_v7  ;;  %3354 = vmatpush3.bf16.msra.mxu1 %v3690_v29  ;;  %v4218_v29 = vsub.s32 6, %v4089_v32 }
 0x1db   : > { %3355 = vmatprep.subr.bf16.mxu1 %v3915_v7 }
 0x1de   : > { %3356 = vmatpush3.bf16.msra.mxu1 %v3692_v30  ;;  %v587_v30 = vrot.slane %v4095_v34, %v4218_v29 }
 0x1df   : > { %3357 = vmatprep.subr.bf16.mxu1 %v3915_v7 }
 0x1e2   : > { %3358 = vmatpush3.bf16.msra.mxu1 %v3694_v35 }
 0x1e3   : > { %3359 = vmatprep.subr.bf16.mxu1 %v3915_v7 }
 0x1e6   : > { %3360 = vmatpush3.bf16.msra.mxu1 %v3696_v37 }
 0x1e7   : > { %3361 = vmatprep.subr.bf16.mxu1 %v3915_v7 }
 0x1ea   : > { %3362 = vmatpush3.bf16.msra.mxu1 %v3698_v40 }
 0x1eb   : > { %3363 = vmatprep.subr.bf16.mxu1 %v3915_v7 }
 0x1ee   : > { %3364 = vmatpush3.bf16.msra.mxu1 %v3700_v42 }
 0x1ef   : > { %3365 = vmatprep.subr.bf16.mxu1 %v3915_v7 }
 0x1f2   : > { %3366 = vmatpush3.bf16.msra.mxu1 %v3702_v44 }
 0x1f3   : > { %3367 = vmatprep.subr.bf16.mxu1 %v3915_v7 }
 0x1f6   : > { %3368 = vmatpush3.bf16.msra.mxu1 %v3704_v46 }
 0x1f7   : > { %3393 = vmatprep.subr.bf16.mxu1 %v3915_v7 }
 0x299   : > { %v515_v17 = vpop.f32.mrf.mxu1 }
 0x29a   : > { %v516_v18 = vadd.f32 %v515_v17, %v432_v16 }
 0x29b   : > { %v3331_v19 = vpop.f32.mrf.mxu1 }
 0x29c   : > { %v522_v20 = vmul.f32 0.5, %v516_v18  ;;  %v3705_v18 = vld [vmem:[%s4025_s9 + $0x138] sm:$0xff]  }
 0x29d   : > { %v518_v21 = vpop.f32.mrf.mxu1 }
 0x29e   : > { %v4137_v22 = vadd.f32 %v522_v20, %v4054_v2  ;;  %v519_v23 = vadd.f32 %v518_v21, %v432_v16  ;;  %v3706_v20 = vld [vmem:[%s4025_s9 + $0x130] sm:$0xff]   ;;  %v3707_v21 = vld [vmem:[%s4025_s9 + $0x128] sm:$0xff]  }
 0x29f   : > { %v3332_v24 = vpop.f32.mrf.mxu1 }
 0x2a0   : > { %v523_v25 = vmul.f32 0.5, %v519_v23  ;;  %526 = vadd.xlane.f32.xlu0 %v4137_v22  ;;  %v532_v27 = vmul.f32 %v4137_v22, %v4137_v22  ;;  %v3708_v23 = vld [vmem:[%s4025_s9 + $0x120] sm:$0xff]   ;;  %v3709_v24 = vld [vmem:[%s4025_s9 + $0x118] sm:$0xff]  }
 0x2a2   : > { %v4141_v26 = vadd.f32 %v523_v25, %v4059_v3  ;;  %v3691_v3 = vld [vmem:[%s4025_s9 + $0xb0] sm:$0xff]  }
 0x2a3   : > { %3336 = vmatpush3.bf16.msra.mxu0 %v3691_v3  ;;  %v3710_v25 = vld [vmem:[%s4025_s9 + $0x110] sm:$0xff]   ;;  %v699_v3 = vrot.slane %v4095_v34, %v4215_v28 }
 0x2a4   : > { %534 = vadd.xlane.f32.xlu0 %v532_v27  ;;  %528 = vadd.xlane.f32.xlu1 %v4141_v26  ;;  %v533_v2 = vmul.f32 %v4141_v26, %v4141_v26  ;;  %v3711_v27 = vld [vmem:[%s4025_s9 + $0x108] sm:$0xff]  }
 0x2a5   : > { %3337 = vmatprep.subr.bf16.mxu0 %v3915_v7 }
 0x2a7   : > { %3338 = vmatpush3.bf16.msra.mxu0 %v3693_v31 }
 0x2a8   : > { %536 = vadd.xlane.f32.xlu1 %v533_v2  ;;  %3339 = vmatprep.subr.bf16.mxu0 %v3915_v7  ;;  %v3712_v2 = vld [vmem:[%s4025_s9 + $0x100] sm:$0xff]  }
 0x2ab   : > { %3340 = vmatpush3.bf16.msra.mxu0 %v3695_v36 }
 0x2ac   : > { %3341 = vmatprep.subr.bf16.mxu0 %v3915_v7 }
 0x2af   : > { %3342 = vmatpush3.bf16.msra.mxu0 %v3697_v38 }
 0x2b0   : > { %3343 = vmatprep.subr.bf16.mxu0 %v3915_v7 }
 0x2b3   : > { %3344 = vmatpush3.bf16.msra.mxu0 %v3699_v41 }
 0x2b4   : > { %3345 = vmatprep.subr.bf16.mxu0 %v3915_v7 }
 0x2b7   : > { %3346 = vmatpush3.bf16.msra.mxu0 %v3701_v43 }
 0x2b8   : > { %3347 = vmatprep.subr.bf16.mxu0 %v3915_v7 }
 0x2bb   : > { %3348 = vmatpush3.bf16.msra.mxu0 %v3703_v45 }
 0x2bc   : > { %3373 = vmatprep.subr.bf16.mxu0 %v3915_v7 }
 0x329   : > { %v527_v47 = vpop.xlane.xlu0 %526 }
 0x32a   : > { %v530_v48 = vmul.f32 0.03125, %v527_v47 }
 0x32c   : > { %v540_v51 = vmul.f32 %v530_v48, %v530_v48  ;;  %v550_v1 = vsub.f32 %v4137_v22, %v530_v48 }
 0x32d   : > { %v535_v49 = vpop.xlane.xlu0 %534  ;;  %v529_v50 = vpop.xlane.xlu1 %528 }
 0x32e   : > { %v538_v52 = vmul.f32 0.03125, %v535_v49  ;;  %v531_v53 = vmul.f32 0.03125, %v529_v50 }
 0x330   : > { %v542_v54 = vsub.f32 %v538_v52, %v540_v51  ;;  %v541_v58 = vmul.f32 %v531_v53, %v531_v53  ;;  %v551_v9 = vsub.f32 %v4141_v26, %v531_v53 }
 0x331   : > { %v537_v55 = vpop.xlane.xlu1 %536 }
 0x332   : > { %v544_v56 = vmax.f32 %v542_v54, 0.0  ;;  %v539_v59 = vmul.f32 0.03125, %v537_v55  ;;  %v4247_v54 = vld [vmem:[%s4036_s8 + $0x8] sm:$0xff] }
 0x333   : > { %v809_v55 = vrot.slane %v4247_v54, %v4092_v33 }
 0x334   : > { %v546_v60 = vadd.f32 1e-05, %v544_v56  ;;  %v543_v61 = vsub.f32 %v539_v59, %v541_v58 }
 0x336   : > { %3773 = vrsqrt.f32 %v546_v60  ;;  %v545_v62 = vmax.f32 %v543_v61, 0.0 }
 0x338   : > { %v547_v63 = vadd.f32 1e-05, %v545_v62 }
 0x33a   : > { %3775 = vrsqrt.f32 %v547_v63 }
 0x343   : > { %v3774_v4 = vpop.eup %3773 }
 0x344   : > { %v552_v5 = vmul.f32 %v3774_v4, %v550_v1  ;;  %v3917_v4 = vmov 1966171168  }
 0x346   : > { %v558_v12 = vmul.f32 %v557_v6, %v552_v5  ;;  %v927_v5 = vunpack.c.l.s4 %v3917_v4 }
 0x347   : > { %v3776_v10 = vpop.eup %3775 }
 0x348   : > { %v553_v11 = vmul.f32 %v3776_v10, %v551_v9  ;;  %v564_v16 = vadd.f32 %v563_v13, %v558_v12  ;;  %v2983_v10 = vld.sshfl [vmem:[%s4639_s1] sm:$0x11 pattern:$0x75316420] }
 0x34a   : > { %v559_v14 = vmul.f32 %v557_v6, %v553_v11  ;;  %v928_v6 = vunpack.c.0.s8 %v927_v5 }
 0x34c   : > { %v565_v17 = vadd.f32 %v563_v13, %v559_v14  ;;  %v931_v9 = vsub.s32 %v928_v6, %v4089_v32  ;;  %v925_v13 = vcombine.high %v2983_v10, %v2983_v10 }
 0x34e   : > { %v566_v19 = vpack.c.bf16 %v565_v17, %v564_v16  ;;  %v932_v11 = vrot.slane %v2983_v10, %v931_v9  ;;  %v939_v17 = vrot.slane %v925_v13, %v931_v9 }
 0x350   : > { %3350 = vmatmul.mubr.bf16.vlgmr.msra.gmra.mxu0 %v566_v19  ;;  %3370 = vmatmul.mubr.bf16.vlgmr.msra.gmra.mxu1 %v566_v19  ;;  %v4261_v12 = vrot.slane %v932_v11, %v4092_v33 }
 0x351   : > { %3374 = vmatpush3.bf16.msra.mxu0 %v3705_v18  ;;  %3389 = vmatprep.mubr.msk.bf16.mxu0 %vm3916_vm0, %v3915_v7 }
 0x352   : > { %3375 = vmatprep.subr.bf16.mxu0 %v3915_v7  ;;  %3395 = vmatprep.mubr.msk.bf16.mxu1 %vm3916_vm0, %v3915_v7 }
 0x355   : > { %3376 = vmatpush3.bf16.msra.mxu0 %v3706_v20 }
 0x356   : > { %3377 = vmatprep.subr.bf16.mxu0 %v3915_v7 }
 0x359   : > { %3378 = vmatpush3.bf16.msra.mxu0 %v3707_v21  ;;  %v4266_v21 = vrot.slane %v939_v17, %v4092_v33 }
 0x35a   : > { %3379 = vmatprep.subr.bf16.mxu0 %v3915_v7 }
 0x35d   : > { %3380 = vmatpush3.bf16.msra.mxu0 %v3708_v23 }
 0x35e   : > { %3381 = vmatprep.subr.bf16.mxu0 %v3915_v7 }
 0x361   : > { %3382 = vmatpush3.bf16.msra.mxu0 %v3709_v24 }
 0x362   : > { %3383 = vmatprep.subr.bf16.mxu0 %v3915_v7 }
 0x365   : > { %3384 = vmatpush3.bf16.msra.mxu0 %v3710_v25 }
 0x366   : > { %3385 = vmatprep.subr.bf16.mxu0 %v3915_v7 }
 0x369   : > { %3386 = vmatpush3.bf16.msra.mxu0 %v3711_v27 }
 0x36a   : > { %3387 = vmatprep.subr.bf16.mxu0 %v3915_v7 }
 0x36d   : > { %3388 = vmatpush3.bf16.msra.mxu0 %v3712_v2 }
 0x36e   : > { %3417 = vmatprep.subr.bf16.mxu0 %v3915_v7 }
 0x370   : > { %3390 = vmatmul.mubr.bf16.vlgmr.msra.gmra.mxu0 %v566_v19 }
 0x371   : > { %3419 = vmatprep.mubr.msk.bf16.mxu0 %vm3916_vm0, %v3915_v7 }
 0x410   : > { %v670_v31 = vpop.f32.mrf.mxu0  ;;  %v782_v35 = vpop.f32.mrf.mxu1 }
 0x411   : > { %v783_v36 = vadd.f32 %v782_v35, %v699_v3  ;;  %v671_v40 = vadd.f32 %v670_v31, %v587_v30 }
 0x412   : > { %v3351_v37 = vpop.f32.mrf.mxu0  ;;  %v3371_v38 = vpop.f32.mrf.mxu1 }
 0x413   : > { %v4224_v41 = vpack.c.bf16 %v783_v36, %v783_v36  ;;  %v677_v34 = vmul.f32 0.35355338, %v671_v40 }
 0x414   : > { %v673_v42 = vpop.f32.mrf.mxu0  ;;  %v785_v43 = vpop.f32.mrf.mxu1 }
 0x415   : > { %v786_v44 = vadd.f32 %v785_v43, %v699_v3  ;;  %v955_v45 = vsel %vm950_vm1, %v4224_v41, 0  ;;  %v4231_v49 = vpack.c.bf16 %v677_v34, %v677_v34  ;;  %v674_v50 = vadd.f32 %v673_v42, %v587_v30 }
 0x416   : > { %v3352_v46 = vpop.f32.mrf.mxu0  ;;  %v3372_v47 = vpop.f32.mrf.mxu1  ;;  %3394 = vmatpush3.bf16.xpose.msra.mxu1 %v955_v45 }
 0x417   : > { %3399 = vmatprep.subr.bf16.mxu1 %v3915_v7  ;;  %v4229_v48 = vpack.c.bf16 %v786_v44, %v786_v44  ;;  %v678_v52 = vmul.f32 0.35355338, %v674_v50 }
 0x419   : > { %v1001_v51 = vsel %vm950_vm1, %v4229_v48, 0  ;;  %v4240_v53 = vpack.c.bf16 %v678_v52, %v678_v52 }
 0x41d   : > { %3396 = vmatmul.mubr.msk.bf16.vlgmr.msra.gmra.mxu1 %vm950_vm1, %v4231_v49 }
 0x41e   : > { %3400 = vmatpush3.bf16.xpose.msra.mxu1 %v1001_v51  ;;  %3401 = vmatprep.mubr.msk.bf16.mxu1 %vm3916_vm0, %v3915_v7 }
 0x41f   : > { %3405 = vmatprep.subr.bf16.mxu1 %v3915_v7 }
 0x425   : > { %3402 = vmatmul.mubr.msk.bf16.vlgmr.msra.gmra.mxu1 %vm950_vm1, %v4240_v53 }
 0x426   : > { %3407 = vmatprep.mubr.msk.bf16.mxu1 %vm3916_vm0, %v3915_v7 }
 0x430   : > { %v892_v56 = vpop.f32.mrf.mxu0 }
 0x431   : > { %v893_v58 = vadd.f32 %v892_v56, %v809_v55 }
 0x432   : > { %v3391_v59 = vpop.f32.mrf.mxu0 }
 0x433   : > { %v4251_v60 = vpack.c.bf16 %v893_v58, %v893_v58 }
 0x434   : > { %v895_v61 = vpop.f32.mrf.mxu0 }
 0x435   : > { %v896_v62 = vadd.f32 %v895_v61, %v809_v55  ;;  %v1073_v63 = vsel %vm1071_vm2, %v4251_v60, 0 }
 0x436   : > { %v3392_v1 = vpop.f32.mrf.mxu0  ;;  %3406 = vmatpush3.bf16.msra.mxu1 %v1073_v63 }
 0x437   : > { %3411 = vmatprep.subr.bf16.mxu1 %v3915_v7  ;;  %v4285_v56 = vpack.c.bf16 %v896_v62, %v896_v62 }
 0x439   : > { %v1119_v61 = vsel %vm1071_vm2, %v4285_v56, 0 }
 0x4dd   : > { %v991_v14 = vpop.f32.mrf.mxu1 }
 0x4de   : > { %v992_v16 = vadd.f32 %v991_v14, %v4261_v12 }
 0x4df   : > { %v3397_v18 = vpop.f32.mrf.mxu1 }
 0x4e0   : > { %v1044_v19 = vsel %vm1043_vm3, %v992_v16, -inf }
 0x4e1   : > { %1045 = vmax.xlane.f32.xlu0 %v1044_v19  ;;  %v994_v20 = vpop.f32.mrf.mxu1 }
 0x4e3   : > { %v3398_v23 = vpop.f32.mrf.mxu1 }
 0x4e5   : > { %v1037_v24 = vpop.f32.mrf.mxu1 }
 0x4e6   : > { %v1038_v25 = vadd.f32 %v1037_v24, %v4266_v21 }
 0x4e7   : > { %v3403_v27 = vpop.f32.mrf.mxu1 }
 0x4e8   : > { %v1047_v2 = vsel %vm1043_vm3, %v1038_v25, -inf }
 0x4e9   : > { %1048 = vmax.xlane.f32.xlu1 %v1047_v2  ;;  %v1040_v3 = vpop.f32.mrf.mxu1 }
 0x4eb   : > { %v3404_v30 = vpop.f32.mrf.mxu1 }
 0x4fa   : > { %1213 = vrot.lane.b32.xlu1 %v4229_v48, %s3918_s30 }
 0x56a   : > { %v1046_v31 = vpop.xlane.xlu0 %1045 }
 0x56b   : > { %v1050_v35 = vsub.f32 %v992_v16, %v1046_v31 }
 0x56d   : > { %v1052_v36 = vmul.f32 1.442695, %v1050_v35 }
 0x56f   : > { %3777 = vpow2.f32 %v1052_v36 }
 0x572   : > { %v1049_v37 = vpop.xlane.xlu1 %1048 }
 0x573   : > { %v1051_v38 = vsub.f32 %v1038_v25, %v1049_v37 }
 0x575   : > { %v1054_v40 = vmul.f32 1.442695, %v1051_v38 }
 0x576   : > { %v1214_v47 = vpop.permute.xlu1 %1213 }
 0x577   : > { %3779 = vpow2.f32 %v1054_v40  ;;  %v1219_v5 = vsel %vm950_vm1, %v1214_v47, 0 }
 0x57c   : > { %v3778_v42 = vpop.eup %3777 }
 0x57d   : > { %v1056_v43 = vsel %vm1043_vm3, %v3778_v42, 0.0 }
 0x57e   : > { %1057 = vadd.xlane.f32.xlu0 %v1056_v43 }
 0x584   : > { %v3780_v44 = vpop.eup %3779 }
 0x585   : > { %v1059_v45 = vsel %vm1043_vm3, %v3780_v44, 0.0 }
 0x586   : > { %1060 = vadd.xlane.f32.xlu1 %v1059_v45 }
 0x594   : > { %1163 = vrot.lane.b32.xlu0 %v4224_v41, %s3918_s30 }
 0x597   : > { %1161 = vrot.lane.b32.xlu1 %v4231_v49, %s3918_s30 }
 0x59b   : > { %1211 = vrot.lane.b32.xlu1 %v4240_v53, %s3918_s30 }
 0x607   : > { %v1058_v46 = vpop.xlane.xlu0 %1057 }
 0x608   : > { %3781 = vrcp.f32 %v1058_v46 }
 0x60b   : > { %v1164_v34 = vpop.permute.xlu0 %1163 }
 0x60c   : > { %v1169_v50 = vsel %vm950_vm1, %v1164_v34, 0 }
 0x60d   : > { %3418 = vmatpush3.bf16.xpose.msra.mxu0 %v1169_v50 }
 0x60e   : > { %3429 = vmatprep.subr.bf16.mxu0 %v3915_v7 }
 0x60f   : > { %v1061_v51 = vpop.xlane.xlu1 %1060 }
 0x610   : > { %3783 = vrcp.f32 %v1061_v51 }
 0x613   : > { %v1162_v52 = vpop.permute.xlu1 %1161 }
 0x614   : > { %3420 = vmatmul.mubr.msk.bf16.vlgmr.msra.gmra.mxu0 %vm950_vm1, %v1162_v52 }
 0x615   : > { %v3782_v55 = vpop.eup %3781  ;;  %3431 = vmatprep.mubr.msk.bf16.mxu0 %vm3916_vm0, %v3915_v7 }
 0x616   : > { %v1064_v58 = vmul.f32 %v3782_v55, %v3778_v42 }
 0x617   : > { %v1212_v62 = vpop.permute.xlu1 %1211 }
 0x618   : > { %v1066_v59 = vpack.c.bf16 %v1064_v58, %v1064_v58 }
 0x61a   : > { %3408 = vmatmul.mubr.msk.bf16.vlgmr.msra.gmra.mxu1 %vm1043_vm3, %v1066_v59 }
 0x61b   : > { %3412 = vmatpush3.bf16.msra.mxu1 %v1119_v61  ;;  %3413 = vmatprep.mubr.msk.bf16.mxu1 %vm3916_vm0, %v3915_v7 }
 0x61c   : > { %3423 = vmatprep.subr.bf16.mxu1 %v3915_v7 }
 0x61d   : > { %v3784_v63 = vpop.eup %3783 }
 0x61e   : > { %v1065_v1 = vmul.f32 %v3784_v63, %v3780_v44 }
 0x620   : > { %v1067_v4 = vpack.c.bf16 %v1065_v1, %v1065_v1 }
 0x622   : > { %3414 = vmatmul.mubr.msk.bf16.vlgmr.msra.gmra.mxu1 %vm1043_vm3, %v1067_v4 }
 0x623   : > { %3424 = vmatpush3.bf16.xpose.msra.mxu1 %v1219_v5  ;;  %3425 = vmatprep.mubr.msk.bf16.mxu1 %vm3916_vm0, %v3915_v7 }
 0x624   : > { %3435 = vmatprep.subr.bf16.mxu1 %v3915_v7 }
 0x62a   : > { %3426 = vmatmul.mubr.msk.bf16.vlgmr.msra.gmra.mxu1 %vm950_vm1, %v1212_v62 }
 0x62b   : > { %3437 = vmatprep.mubr.msk.bf16.mxu1 %vm3916_vm0, %v3915_v7 }
 0x6d4   : > { %v1205_v6 = vpop.f32.mrf.mxu0 }
 0x6d5   : > { %v1206_v9 = vadd.f32 %v1205_v6, %v4261_v12 }
 0x6d6   : > { %v3421_v10 = vpop.f32.mrf.mxu0 }
 0x6d7   : > { %v1261_v11 = vsel %vm1043_vm3, %v1206_v9, -inf }
 0x6d8   : > { %1262 = vmax.xlane.f32.xlu0 %v1261_v11  ;;  %v1208_v13 = vpop.f32.mrf.mxu0 }
 0x6da   : > { %v4303_v14 = vpop.f32.mrf.mxu1  ;;  %v3422_v16 = vpop.f32.mrf.mxu0 }
 0x6dc   : > { %v3409_v17 = vpop.f32.mrf.mxu1 }
 0x6de   : > { %v1112_v18 = vpop.f32.mrf.mxu1 }
 0x6e0   : > { %v3410_v19 = vpop.f32.mrf.mxu1 }
 0x6e2   : > { %v4305_v20 = vpop.f32.mrf.mxu1 }
 0x6e4   : > { %v3415_v23 = vpop.f32.mrf.mxu1 }
 0x6e6   : > { %v1158_v24 = vpop.f32.mrf.mxu1 }
 0x6e8   : > { %v3416_v25 = vpop.f32.mrf.mxu1 }
 0x6ea   : > { %v1255_v27 = vpop.f32.mrf.mxu1 }
 0x6eb   : > { %v1256_v2 = vadd.f32 %v1255_v27, %v4266_v21 }
 0x6ec   : > { %v3427_v3 = vpop.f32.mrf.mxu1 }
 0x6ed   : > { %v1264_v30 = vsel %vm1043_vm3, %v1256_v2, -inf }
 0x6ee   : > { %1265 = vmax.xlane.f32.xlu1 %v1264_v30  ;;  %v1258_v31 = vpop.f32.mrf.mxu1 }
 0x6f0   : > { %v3428_v35 = vpop.f32.mrf.mxu1 }
 0x6ff   : > { %1333 = vrot.lane.b32.xlu1 %v4285_v56, %s3918_s30 }
 0x703   : > { %1383 = vrot.lane.b32.xlu1 %v4224_v41, %s3919_s6 }
 0x707   : > { %1433 = vrot.lane.b32.xlu1 %v4229_v48, %s3919_s6 }
 0x70b   : > { %1431 = vrot.lane.b32.xlu1 %v4240_v53, %s3919_s6 }
 0x761   : > { %v1263_v36 = vpop.xlane.xlu0 %1262 }
 0x762   : > { %v1267_v37 = vsub.f32 %v1206_v9, %v1263_v36 }
 0x764   : > { %v1269_v38 = vmul.f32 1.442695, %v1267_v37 }
 0x766   : > { %3785 = vpow2.f32 %v1269_v38 }
 0x773   : > { %v3786_v40 = vpop.eup %3785 }
 0x774   : > { %v1273_v42 = vsel %vm1043_vm3, %v3786_v40, 0.0 }
 0x775   : > { %1274 = vadd.xlane.f32.xlu0 %v1273_v42 }
 0x777   : > { %v1266_v43 = vpop.xlane.xlu1 %1265 }
 0x778   : > { %v1268_v44 = vsub.f32 %v1256_v2, %v1266_v43 }
 0x77a   : > { %v1271_v45 = vmul.f32 1.442695, %v1268_v44 }
 0x77b   : > { %v1334_v46 = vpop.permute.xlu1 %1333 }
 0x77c   : > { %3787 = vpow2.f32 %v1271_v45  ;;  %v1339_v47 = vsel %vm1071_vm2, %v1334_v46, 0 }
 0x77d   : > { %3436 = vmatpush3.bf16.msra.mxu1 %v1339_v47 }
 0x77e   : > { %3447 = vmatprep.subr.bf16.mxu1 %v3915_v7 }
 0x77f   : > { %v1384_v63 = vpop.permute.xlu1 %1383 }
 0x780   : > { %v1389_v4 = vsel %vm950_vm1, %v1384_v63, 0 }
 0x783   : > { %v1434_v6 = vpop.permute.xlu1 %1433 }
 0x784   : > { %v1439_v11 = vsel %vm950_vm1, %v1434_v6, 0 }
 0x787   : > { %v1432_v13 = vpop.permute.xlu1 %1431 }
 0x789   : > { %v3788_v34 = vpop.eup %3787 }
 0x78a   : > { %v1276_v50 = vsel %vm1043_vm3, %v3788_v34, 0.0 }
 0x78b   : > { %1277 = vadd.xlane.f32.xlu0 %v1276_v50 }
 0x7a1   : > { %1285 = vrot.lane.b32.xlu0 %v4251_v60, %s3918_s30 }
 0x7a5   : > { %1381 = vrot.lane.b32.xlu0 %v4231_v49, %s3919_s6 }
 0x7fe   : > { %v1275_v51 = vpop.xlane.xlu0 %1274 }
 0x7ff   : > { %3789 = vrcp.f32 %v1275_v51 }
 0x80c   : > { %v3790_v52 = vpop.eup %3789 }
 0x80d   : > { %v1281_v58 = vmul.f32 %v3790_v52, %v3786_v40 }
 0x80f   : > { %v1283_v1 = vpack.c.bf16 %v1281_v58, %v1281_v58 }
 0x814   : > { %v1278_v55 = vpop.xlane.xlu0 %1277 }
 0x815   : > { %3791 = vrcp.f32 %v1278_v55 }
 0x818   : > { %v1286_v59 = vpop.permute.xlu0 %1285 }
 0x819   : > { %v1291_v61 = vsel %vm1071_vm2, %v1286_v59, 0 }
 0x81a   : > { %3430 = vmatpush3.bf16.msra.mxu0 %v1291_v61 }
 0x81b   : > { %3441 = vmatprep.subr.bf16.mxu0 %v3915_v7 }
 0x81c   : > { %v1382_v9 = vpop.permute.xlu0 %1381 }
 0x81d   : > { %3432 = vmatmul.mubr.msk.bf16.vlgmr.msra.gmra.mxu0 %vm1043_vm3, %v1283_v1 }
 0x81e   : > { %3442 = vmatpush3.bf16.xpose.msra.mxu0 %v1389_v4  ;;  %3443 = vmatprep.mubr.msk.bf16.mxu0 %vm3916_vm0, %v3915_v7 }
 0x81f   : > { %3453 = vmatprep.subr.bf16.mxu0 %v3915_v7 }
 0x822   : > { %v3792_v5 = vpop.eup %3791 }
 0x823   : > { %v1282_v62 = vmul.f32 %v3792_v5, %v3788_v34 }
 0x825   : > { %3444 = vmatmul.mubr.msk.bf16.vlgmr.msra.gmra.mxu0 %vm950_vm1, %v1382_v9  ;;  %v1284_v10 = vpack.c.bf16 %v1282_v62, %v1282_v62 }
 0x826   : > { %3455 = vmatprep.mubr.msk.bf16.mxu0 %vm3916_vm0, %v3915_v7 }
 0x827   : > { %3438 = vmatmul.mubr.msk.bf16.vlgmr.msra.gmra.mxu1 %vm1043_vm3, %v1284_v10 }
 0x828   : > { %3448 = vmatpush3.bf16.xpose.msra.mxu1 %v1439_v11  ;;  %3449 = vmatprep.mubr.msk.bf16.mxu1 %vm3916_vm0, %v3915_v7 }
 0x829   : > { %3459 = vmatprep.subr.bf16.mxu1 %v3915_v7 }
 0x82f   : > { %3450 = vmatmul.mubr.msk.bf16.vlgmr.msra.gmra.mxu1 %vm950_vm1, %v1432_v13 }
 0x830   : > { %3461 = vmatprep.mubr.msk.bf16.mxu1 %vm3916_vm0, %v3915_v7 }
 0x8dd   : > { %v4343_v16 = vpop.f32.mrf.mxu0 }
 0x8df   : > { %v3433_v17 = vpop.f32.mrf.mxu0 }
 0x8e1   : > { %v1330_v18 = vpop.f32.mrf.mxu0 }
 0x8e3   : > { %v3434_v19 = vpop.f32.mrf.mxu0 }
 0x8e5   : > { %v1425_v23 = vpop.f32.mrf.mxu0 }
 0x8e6   : > { %v1426_v24 = vadd.f32 %v1425_v23, %v4261_v12 }
 0x8e7   : > { %v4346_v25 = vpop.f32.mrf.mxu1  ;;  %v3445_v27 = vpop.f32.mrf.mxu0 }
 0x8e8   : > { %v3658_v2 = vpack.i.bf16 %v4346_v25, %v4343_v16  ;;  %v1481_v3 = vsel %vm1043_vm3, %v1426_v24, -inf }
 0x8e9   : > { %v3439_v30 = vpop.f32.mrf.mxu1  ;;  %1482 = vmax.xlane.f32.xlu0 %v1481_v3  ;;  %v1428_v31 = vpop.f32.mrf.mxu0 }
 0x8eb   : > { %v1378_v35 = vpop.f32.mrf.mxu1  ;;  %v3446_v36 = vpop.f32.mrf.mxu0 }
 0x8ed   : > { %v3440_v37 = vpop.f32.mrf.mxu1 }
 0x8ef   : > { %v1475_v38 = vpop.f32.mrf.mxu1 }
 0x8f0   : > { %v1476_v40 = vadd.f32 %v1475_v38, %v4266_v21 }
 0x8f1   : > { %v3451_v42 = vpop.f32.mrf.mxu1 }
 0x8f2   : > { %v1484_v43 = vsel %vm1043_vm3, %v1476_v40, -inf }
 0x8f3   : > { %1485 = vmax.xlane.f32.xlu1 %v1484_v43  ;;  %v1478_v44 = vpop.f32.mrf.mxu1 }
 0x8f5   : > { %v3452_v45 = vpop.f32.mrf.mxu1 }
 0x904   : > { %1553 = vrot.lane.b32.xlu1 %v4285_v56, %s3919_s6 }
 0x908   : > { %1603 = vrot.lane.b32.xlu1 %v4224_v41, %s3920_s28 }
 0x90c   : > { %1653 = vrot.lane.b32.xlu1 %v4229_v48, %s3920_s28 }
 0x910   : > { %1651 = vrot.lane.b32.xlu1 %v4240_v53, %s3920_s28 }
 0x972   : > { %v1483_v46 = vpop.xlane.xlu0 %1482 }
 0x973   : > { %v1487_v47 = vsub.f32 %v1426_v24, %v1483_v46 }
 0x975   : > { %v1489_v34 = vmul.f32 1.442695, %v1487_v47 }
 0x977   : > { %3793 = vpow2.f32 %v1489_v34 }
 0x97c   : > { %v1486_v50 = vpop.xlane.xlu1 %1485 }
 0x97d   : > { %v1488_v51 = vsub.f32 %v1476_v40, %v1486_v50 }
 0x97f   : > { %v1491_v52 = vmul.f32 1.442695, %v1488_v51 }
 0x980   : > { %v1554_v55 = vpop.permute.xlu1 %1553 }
 0x981   : > { %3795 = vpow2.f32 %v1491_v52  ;;  %v1559_v58 = vsel %vm1071_vm2, %v1554_v55, 0 }
 0x982   : > { %3460 = vmatpush3.bf16.msra.mxu1 %v1559_v58 }
 0x983   : > { %3471 = vmatprep.subr.bf16.mxu1 %v3915_v7 }
 0x984   : > { %v3794_v41 = vpop.eup %3793  ;;  %v1604_v6 = vpop.permute.xlu1 %1603 }
 0x985   : > { %v1493_v48 = vsel %vm1043_vm3, %v3794_v41, 0.0  ;;  %v1609_v10 = vsel %vm950_vm1, %v1604_v6, 0 }
 0x986   : > { %1494 = vadd.xlane.f32.xlu0 %v1493_v48 }
 0x988   : > { %v1654_v13 = vpop.permute.xlu1 %1653 }
 0x989   : > { %v1659_v19 = vsel %vm950_vm1, %v1654_v13, 0  ;;  %v3714_v13 = vld [vmem:[%s4025_s9 + $0x170] sm:$0xff]  }
 0x98c   : > { %v1652_v23 = vpop.permute.xlu1 %1651 }
 0x98e   : > { %v3796_v59 = vpop.eup %3795 }
 0x98f   : > { %v1496_v53 = vsel %vm1043_vm3, %v3796_v59, 0.0 }
 0x990   : > { %1497 = vadd.xlane.f32.xlu0 %v1496_v53 }
 0x9a6   : > { %1505 = vrot.lane.b32.xlu0 %v4251_v60, %s3919_s6 }
 0x9aa   : > { %1601 = vrot.lane.b32.xlu0 %v4231_v49, %s3920_s28 }
 0xa0f   : > { %v1495_v61 = vpop.xlane.xlu0 %1494 }
 0xa10   : > { %3797 = vrcp.f32 %v1495_v61 }
 0xa19   : > { %v1498_v63 = vpop.xlane.xlu0 %1497 }
 0xa1a   : > { %3799 = vrcp.f32 %v1498_v63 }
 0xa1d   : > { %v3798_v1 = vpop.eup %3797  ;;  %v1506_v4 = vpop.permute.xlu0 %1505 }
 0xa1e   : > { %v1511_v5 = vsel %vm1071_vm2, %v1506_v4, 0  ;;  %v1501_v62 = vmul.f32 %v3798_v1, %v3794_v41 }
 0xa1f   : > { %3454 = vmatpush3.bf16.msra.mxu0 %v1511_v5 }
 0xa20   : > { %v1503_v9 = vpack.c.bf16 %v1501_v62, %v1501_v62  ;;  %3465 = vmatprep.subr.bf16.mxu0 %v3915_v7 }
 0xa21   : > { %v1602_v17 = vpop.permute.xlu0 %1601 }
 0xa22   : > { %3456 = vmatmul.mubr.msk.bf16.vlgmr.msra.gmra.mxu0 %vm1043_vm3, %v1503_v9 }
 0xa23   : > { %3466 = vmatpush3.bf16.xpose.msra.mxu0 %v1609_v10  ;;  %3467 = vmatprep.mubr.msk.bf16.mxu0 %vm3916_vm0, %v3915_v7 }
 0xa24   : > { %3477 = vmatprep.subr.bf16.mxu0 %v3915_v7 }
 0xa27   : > { %v3800_v49 = vpop.eup %3799 }
 0xa28   : > { %v1502_v11 = vmul.f32 %v3800_v49, %v3796_v59 }
 0xa2a   : > { %3468 = vmatmul.mubr.msk.bf16.vlgmr.msra.gmra.mxu0 %vm950_vm1, %v1602_v17  ;;  %v1504_v18 = vpack.c.bf16 %v1502_v11, %v1502_v11  ;;  %v3713_v11 = vld [vmem:[%s4025_s9 + $0x178] sm:$0xff]   ;;  %v3715_v17 = vld [vmem:[%s4025_s9 + $0x168] sm:$0xff]  }
 0xa2b   : > { %3479 = vmatprep.mubr.msk.bf16.mxu0 %vm3916_vm0, %v3915_v7 }
 0xa2c   : > { %3462 = vmatmul.mubr.msk.bf16.vlgmr.msra.gmra.mxu1 %vm1043_vm3, %v1504_v18  ;;  %v3716_v18 = vld [vmem:[%s4025_s9 + $0x160] sm:$0xff]  }
 0xa2d   : > { %3472 = vmatpush3.bf16.xpose.msra.mxu1 %v1659_v19  ;;  %3473 = vmatprep.mubr.msk.bf16.mxu1 %vm3916_vm0, %v3915_v7  ;;  %v3717_v19 = vld [vmem:[%s4025_s9 + $0x158] sm:$0xff]  }
 0xa2e   : > { %3483 = vmatprep.subr.bf16.mxu1 %v3915_v7 }
 0xa34   : > { %3474 = vmatmul.mubr.msk.bf16.vlgmr.msra.gmra.mxu1 %vm950_vm1, %v1652_v23  ;;  %v3718_v23 = vld [vmem:[%s4025_s9 + $0x150] sm:$0xff]  }
 0xa35   : > { %3485 = vmatprep.mubr.msk.bf16.mxu1 %vm3916_vm0, %v3915_v7 }
 0xae2   : > { %v1547_v24 = vpop.f32.mrf.mxu0 }
 0xae4   : > { %v3457_v27 = vpop.f32.mrf.mxu0 }
 0xae6   : > { %v1550_v3 = vpop.f32.mrf.mxu0 }
 0xae7   : > { %v3720_v3 = vld [vmem:[%s4025_s9 + $0x140] sm:$0xff]  }
 0xae8   : > { %v3458_v30 = vpop.f32.mrf.mxu0 }
 0xaea   : > { %v1645_v31 = vpop.f32.mrf.mxu0 }
 0xaeb   : > { %v1646_v35 = vadd.f32 %v1645_v31, %v4261_v12 }
 0xaec   : > { %v1595_v36 = vpop.f32.mrf.mxu1  ;;  %v3469_v37 = vpop.f32.mrf.mxu0 }
 0xaed   : > { %v1701_v38 = vsel %vm1043_vm3, %v1646_v35, -inf  ;;  %v3663_v12 = vpack.i.bf16 %v1595_v36, %v1547_v24  ;;  %v3719_v24 = vld [vmem:[%s4025_s9 + $0x148] sm:$0xff]  }
 0xaee   : > { %v3463_v40 = vpop.f32.mrf.mxu1  ;;  %1702 = vmax.xlane.f32.xlu0 %v1701_v38  ;;  %v1648_v42 = vpop.f32.mrf.mxu0 }
 0xaf0   : > { %v1598_v43 = vpop.f32.mrf.mxu1  ;;  %v3470_v44 = vpop.f32.mrf.mxu0 }
 0xaf2   : > { %v3464_v45 = vpop.f32.mrf.mxu1 }
 0xaf4   : > { %v1695_v46 = vpop.f32.mrf.mxu1 }
 0xaf5   : > { %v1696_v47 = vadd.f32 %v1695_v46, %v4266_v21 }
 0xaf6   : > { %v3475_v34 = vpop.f32.mrf.mxu1 }
 0xaf7   : > { %v1704_v50 = vsel %vm1043_vm3, %v1696_v47, -inf }
 0xaf8   : > { %1705 = vmax.xlane.f32.xlu1 %v1704_v50  ;;  %v1698_v51 = vpop.f32.mrf.mxu1 }
 0xafa   : > { %v3476_v52 = vpop.f32.mrf.mxu1 }
 0xb09   : > { %1773 = vrot.lane.b32.xlu1 %v4285_v56, %s3920_s28 }
 0xb0d   : > { %3659 = vrot.lane.b32.xlu1 %v3658_v2, %s3920_s28 }
 0xb11   : > { %3664 = vrot.lane.b32.xlu1 %v3663_v12, %s3919_s6 }
 0xb77   : > { %v1703_v55 = vpop.xlane.xlu0 %1702 }
 0xb78   : > { %v1707_v58 = vsub.f32 %v1646_v35, %v1703_v55 }
 0xb7a   : > { %v1709_v21 = vmul.f32 1.442695, %v1707_v58 }
 0xb7c   : > { %3801 = vpow2.f32 %v1709_v21 }
 0xb81   : > { %v1706_v41 = vpop.xlane.xlu1 %1705 }
 0xb82   : > { %v1708_v48 = vsub.f32 %v1696_v47, %v1706_v41 }
 0xb84   : > { %v1711_v59 = vmul.f32 1.442695, %v1708_v48 }
 0xb85   : > { %v1774_v53 = vpop.permute.xlu1 %1773 }
 0xb86   : > { %3803 = vpow2.f32 %v1711_v59  ;;  %v1779_v61 = vsel %vm1071_vm2, %v1774_v53, 0  ;;  %v1965_v53 = vrot.slane %v4247_v54, %v4101_v39 }
 0xb87   : > { %3484 = vmatpush3.bf16.msra.mxu1 %v1779_v61 }
 0xb88   : > { %3509 = vmatprep.subr.bf16.mxu1 %v3915_v7 }
 0xb89   : > { %v3802_v56 = vpop.eup %3801  ;;  %v3660_v43 = vpop.permute.xlu1 %3659 }
 0xb8a   : > { %v1713_v16 = vsel %vm1043_vm3, %v3802_v56, 0.0  ;;  %v3662_v45 = vunpack.i.h.bf16 %v3660_v43  ;;  %v3661_v46 = vunpack.i.l.bf16 %v3660_v43 }
 0xb8b   : > { %1714 = vadd.xlane.f32.xlu0 %v1713_v16 }
 0xb8c   : > { %v1846_v51 = vsel %vm950_vm1, %v4305_v20, %v3662_v45  ;;  %v1845_v52 = vsel %vm950_vm1, %v4303_v14, %v3661_v46 }
 0xb8d   : > { %v3665_v44 = vpop.permute.xlu1 %3664 }
 0xb8e   : > { %v3667_v47 = vunpack.i.h.bf16 %v3665_v44  ;;  %v3666_v34 = vunpack.i.l.bf16 %v3665_v44 }
 0xb90   : > { %v1849_v58 = vsel %vm1847_vm4, %v1846_v51, %v3667_v47  ;;  %v1848_v21 = vsel %vm1847_vm4, %v1845_v52, %v3666_v34 }
 0xb93   : > { %v3804_v25 = vpop.eup %3803 }
 0xb94   : > { %v1716_v2 = vsel %vm1043_vm3, %v3804_v25, 0.0 }
 0xb95   : > { %1717 = vadd.xlane.f32.xlu0 %v1716_v2 }
 0xbab   : > { %1725 = vrot.lane.b32.xlu0 %v4251_v60, %s3920_s28 }
 0xc14   : > { %v1715_v63 = vpop.xlane.xlu0 %1714 }
 0xc15   : > { %3805 = vrcp.f32 %v1715_v63 }
 0xc1e   : > { %v1718_v1 = vpop.xlane.xlu0 %1717 }
 0xc1f   : > { %3807 = vrcp.f32 %v1718_v1 }
 0xc22   : > { %v3806_v4 = vpop.eup %3805  ;;  %v1726_v5 = vpop.permute.xlu0 %1725 }
 0xc23   : > { %v1731_v62 = vsel %vm1071_vm2, %v1726_v5, 0  ;;  %v1721_v6 = vmul.f32 %v3806_v4, %v3802_v56  ;;  %v3721_v4 = vld [vmem:[%s4025_s9 + $0x1b8] sm:$0xff]   ;;  %v3723_v5 = vld [vmem:[%s4025_s9 + $0x1b0] sm:$0xff]  }
 0xc24   : > { %3478 = vmatpush3.bf16.msra.mxu0 %v1731_v62  ;;  %v3724_v62 = vld [vmem:[%s4025_s9 + $0x1f0] sm:$0xff]  }
 0xc25   : > { %v1723_v9 = vpack.c.bf16 %v1721_v6, %v1721_v6  ;;  %3489 = vmatprep.subr.bf16.mxu0 %v3915_v7  ;;  %v3725_v6 = vld [vmem:[%s4025_s9 + $0x1a8] sm:$0xff]  }
 0xc27   : > { %3480 = vmatmul.mubr.msk.bf16.vlgmr.msra.gmra.mxu0 %vm1043_vm3, %v1723_v9  ;;  %v3726_v9 = vld [vmem:[%s4025_s9 + $0x1e8] sm:$0xff]  }
 0xc28   : > { %3505 = vmatprep.mubr.msk.bf16.mxu0 %vm3916_vm0, %v3915_v7  ;;  %3490 = vmatpush3.bf16.msra.mxu0 %v3713_v11  ;;  %v3730_v11 = vld [vmem:[%s4025_s9 + $0x1d8] sm:$0xff]  }
 0xc29   : > { %3491 = vmatprep.subr.bf16.mxu0 %v3915_v7 }
 0xc2c   : > { %v3808_v60 = vpop.eup %3807  ;;  %3492 = vmatpush3.bf16.msra.mxu0 %v3714_v13  ;;  %v3731_v13 = vld [vmem:[%s4025_s9 + $0x190] sm:$0xff]  }
 0xc2d   : > { %v1722_v10 = vmul.f32 %v3808_v60, %v3804_v25  ;;  %3493 = vmatprep.subr.bf16.mxu0 %v3915_v7  ;;  %v3727_v60 = vld [vmem:[%s4025_s9 + $0x1a0] sm:$0xff]  }
 0xc2f   : > { %v1724_v49 = vpack.c.bf16 %v1722_v10, %v1722_v10  ;;  %v3728_v10 = vld [vmem:[%s4025_s9 + $0x1e0] sm:$0xff]  }
 0xc30   : > { %3494 = vmatpush3.bf16.msra.mxu0 %v3715_v17  ;;  %v3732_v17 = vld [vmem:[%s4025_s9 + $0x1d0] sm:$0xff]  }
 0xc31   : > { %3486 = vmatmul.mubr.msk.bf16.vlgmr.msra.gmra.mxu1 %vm1043_vm3, %v1724_v49  ;;  %3495 = vmatprep.subr.bf16.mxu0 %v3915_v7  ;;  %v3729_v49 = vld [vmem:[%s4025_s9 + $0x198] sm:$0xff]  }
 0xc32   : > { %3525 = vmatprep.mubr.msk.bf16.mxu1 %vm3916_vm0, %v3915_v7  ;;  %3510 = vmatpush3.bf16.msra.mxu1 %v3721_v4  ;;  %v3744_v4 = vld [vmem:[%s4025_s9 + $0x200] sm:$0xff]  }
 0xc33   : > { %3511 = vmatprep.subr.bf16.mxu1 %v3915_v7 }
 0xc34   : > { %3496 = vmatpush3.bf16.msra.mxu0 %v3716_v18  ;;  %v3733_v18 = vld [vmem:[%s4025_s9 + $0x188] sm:$0xff]  }
 0xc35   : > { %3497 = vmatprep.subr.bf16.mxu0 %v3915_v7 }
 0xc36   : > { %3512 = vmatpush3.bf16.msra.mxu1 %v3723_v5 }
 0xc37   : > { %3513 = vmatprep.subr.bf16.mxu1 %v3915_v7 }
 0xc38   : > { %3498 = vmatpush3.bf16.msra.mxu0 %v3717_v19  ;;  %v3734_v19 = vld [vmem:[%s4025_s9 + $0x1c8] sm:$0xff]  }
 0xc39   : > { %3499 = vmatprep.subr.bf16.mxu0 %v3915_v7 }
 0xc3a   : > { %3514 = vmatpush3.bf16.msra.mxu1 %v3725_v6 }
 0xc3b   : > { %3515 = vmatprep.subr.bf16.mxu1 %v3915_v7 }
 0xc3c   : > { %3500 = vmatpush3.bf16.msra.mxu0 %v3718_v23  ;;  %v3735_v23 = vld [vmem:[%s4025_s9 + $0x180] sm:$0xff]  }
 0xc3d   : > { %3501 = vmatprep.subr.bf16.mxu0 %v3915_v7 }
 0xc3e   : > { %3516 = vmatpush3.bf16.msra.mxu1 %v3727_v60 }
 0xc3f   : > { %3517 = vmatprep.subr.bf16.mxu1 %v3915_v7 }
 0xc40   : > { %3502 = vmatpush3.bf16.msra.mxu0 %v3719_v24  ;;  %v3736_v24 = vld [vmem:[%s4025_s9 + $0x1c0] sm:$0xff]  }
 0xc41   : > { %3503 = vmatprep.subr.bf16.mxu0 %v3915_v7 }
 0xc42   : > { %3518 = vmatpush3.bf16.msra.mxu1 %v3729_v49 }
 0xc43   : > { %3519 = vmatprep.subr.bf16.mxu1 %v3915_v7 }
 0xc44   : > { %3504 = vmatpush3.bf16.msra.mxu0 %v3720_v3 }
 0xc45   : > { %3529 = vmatprep.subr.bf16.mxu0 %v3915_v7 }
 0xc46   : > { %3520 = vmatpush3.bf16.msra.mxu1 %v3731_v13 }
 0xc47   : > { %3521 = vmatprep.subr.bf16.mxu1 %v3915_v7 }
 0xc4a   : > { %3522 = vmatpush3.bf16.msra.mxu1 %v3733_v18 }
 0xc4b   : > { %3523 = vmatprep.subr.bf16.mxu1 %v3915_v7 }
 0xc4e   : > { %3524 = vmatpush3.bf16.msra.mxu1 %v3735_v23 }
 0xc4f   : > { %3549 = vmatprep.subr.bf16.mxu1 %v3915_v7 }
 0xce7   : > { %v1767_v27 = vpop.f32.mrf.mxu0 }
 0xce9   : > { %v3481_v30 = vpop.f32.mrf.mxu0 }
 0xceb   : > { %v1770_v31 = vpop.f32.mrf.mxu0 }
 0xced   : > { %v3482_v35 = vpop.f32.mrf.mxu0 }
 0xcf1   : > { %v1815_v36 = vpop.f32.mrf.mxu1 }
 0xcf2   : > { %v3668_v37 = vpack.i.bf16 %v1815_v36, %v1767_v27 }
 0xcf3   : > { %v3487_v38 = vpop.f32.mrf.mxu1 }
 0xcf4   : > { %3669 = vrot.lane.b32.xlu0 %v3668_v37, %s3918_s30 }
 0xcf5   : > { %v1818_v40 = vpop.f32.mrf.mxu1 }
 0xcf7   : > { %v3488_v42 = vpop.f32.mrf.mxu1 }
 0xd66   : > { %v3670_v50 = vpop.permute.xlu0 %3669 }
 0xd67   : > { %v3672_v12 = vunpack.i.h.bf16 %v3670_v50  ;;  %v3671_v55 = vunpack.i.l.bf16 %v3670_v50 }
 0xd69   : > { %v1852_v41 = vsel %vm1850_vm5, %v1849_v58, %v3672_v12  ;;  %v1851_v48 = vsel %vm1850_vm5, %v1848_v21, %v3671_v55  ;;  %v1999_v12 = vrot.slane %v4247_v54, %v4125_v57 }
 0xd6a   : > { %v1853_v59 = vpack.c.bf16 %v1852_v41, %v1851_v48  ;;  %v2005_v48 = vrot.slane %v4247_v54, %v4132_v15  ;;  %v3739_v54 = vld [vmem:[%s4025_s9 + $0x228] sm:$0xff]  }
 0xd6c   : > { %3506 = vmatmul.mubr.bf16.vlgmr.msra.gmra.mxu0 %v1853_v59 }
 0xd6d   : > { %3545 = vmatprep.mubr.msk.bf16.mxu0 %vm3916_vm0, %v3915_v7 }
 0xe2c   : > { %v1953_v20 = vpop.f32.mrf.mxu0 }
 0xe2d   : > { %v1960_v61 = vadd.f32 %v1953_v20, %v4137_v22 }
 0xe2e   : > { %v3507_v14 = vpop.f32.mrf.mxu0 }
 0xe2f   : > { %v4438_v56 = vadd.f32 %v1965_v53, %v1960_v61  ;;  %v3737_v14 = vld [vmem:[%s4025_s9 + $0x238] sm:$0xff]  }
 0xe30   : > { %v1956_v16 = vpop.f32.mrf.mxu0 }
 0xe31   : > { %v1961_v25 = vadd.f32 %v1956_v16, %v4141_v26  ;;  %1968 = vadd.xlane.f32.xlu1 %v4438_v56  ;;  %v1974_v2 = vmul.f32 %v4438_v56, %v4438_v56  ;;  %v3722_v26 = vld [vmem:[%s4025_s9 + $0x1f8] sm:$0xff]   ;;  %v3738_v16 = vld [vmem:[%s4025_s9 + $0x230] sm:$0xff]  }
 0xe32   : > { %v3508_v63 = vpop.f32.mrf.mxu0  ;;  %3530 = vmatpush3.bf16.msra.mxu0 %v3722_v26 }
 0xe33   : > { %1976 = vadd.xlane.f32.xlu0 %v1974_v2  ;;  %v4444_v1 = vadd.f32 %v1965_v53, %v1961_v25  ;;  %3531 = vmatprep.subr.bf16.mxu0 %v3915_v7  ;;  %v3740_v25 = vld [vmem:[%s4025_s9 + $0x220] sm:$0xff]   ;;  %v3741_v2 = vld [vmem:[%s4025_s9 + $0x218] sm:$0xff]   ;;  %v3742_v63 = vld [vmem:[%s4025_s9 + $0x210] sm:$0xff]  }
 0xe35   : > { %v1975_v22 = vmul.f32 %v4444_v1, %v4444_v1 }
 0xe36   : > { %3532 = vmatpush3.bf16.msra.mxu0 %v3724_v62 }
 0xe37   : > { %1970 = vadd.xlane.f32.xlu0 %v4444_v1  ;;  %3533 = vmatprep.subr.bf16.mxu0 %v3915_v7 }
 0xe3a   : > { %3534 = vmatpush3.bf16.msra.mxu0 %v3726_v9 }
 0xe3b   : > { %1978 = vadd.xlane.f32.xlu0 %v1975_v22  ;;  %3535 = vmatprep.subr.bf16.mxu0 %v3915_v7  ;;  %v3743_v22 = vld [vmem:[%s4025_s9 + $0x208] sm:$0xff]  }
 0xe3e   : > { %3536 = vmatpush3.bf16.msra.mxu0 %v3728_v10 }
 0xe3f   : > { %3537 = vmatprep.subr.bf16.mxu0 %v3915_v7 }
 0xe42   : > { %3538 = vmatpush3.bf16.msra.mxu0 %v3730_v11 }
 0xe43   : > { %3539 = vmatprep.subr.bf16.mxu0 %v3915_v7 }
 0xe46   : > { %3540 = vmatpush3.bf16.msra.mxu0 %v3732_v17 }
 0xe47   : > { %3541 = vmatprep.subr.bf16.mxu0 %v3915_v7 }
 0xe4a   : > { %3542 = vmatpush3.bf16.msra.mxu0 %v3734_v19 }
 0xe4b   : > { %3543 = vmatprep.subr.bf16.mxu0 %v3915_v7 }
 0xe4e   : > { %3544 = vmatpush3.bf16.msra.mxu0 %v3736_v24 }
 0xe4f   : > { %3569 = vmatprep.subr.bf16.mxu0 %v3915_v7 }
 0xeba   : > { %v1969_v27 = vpop.xlane.xlu1 %1968 }
 0xebb   : > { %v1972_v3 = vmul.f32 0.03125, %v1969_v27  ;;  %v4509_v27 = vsel %vm243_vm6, 1.0, %v3915_v7 }
 0xebc   : > { %v1977_v30 = vpop.xlane.xlu0 %1976 }
 0xebd   : > { %v1982_v31 = vmul.f32 %v1972_v3, %v1972_v3  ;;  %v1980_v35 = vmul.f32 0.03125, %v1977_v30  ;;  %v1992_v51 = vsub.f32 %v4438_v56, %v1972_v3  ;;  %v240_v30 = vld [vmem:[%s4036_s8 + $0x18] sm:$0x7] }
 0xebf   : > { %v1984_v36 = vsub.f32 %v1980_v35, %v1982_v31  ;;  %v4513_v35 = vld [vmem:[%s4036_s8 + $0x10] sm:$0xff] }
 0xec0   : > { %v1971_v37 = vpop.xlane.xlu0 %1970 }
 0xec1   : > { %v1986_v38 = vmax.f32 %v1984_v36, 0.0  ;;  %v1973_v40 = vmul.f32 0.03125, %v1971_v37 }
 0xec3   : > { %v1988_v42 = vadd.f32 1e-05, %v1986_v38  ;;  %v1983_v44 = vmul.f32 %v1973_v40, %v1973_v40  ;;  %v1993_v55 = vsub.f32 %v4444_v1, %v1973_v40  ;;  %v2292_v38 = vrot.slane %v240_v30, %v4092_v33 }
 0xec4   : > { %v1979_v43 = vpop.xlane.xlu0 %1978  ;;  %v2305_v40 = vrot.slane %v240_v30, %v4101_v39 }
 0xec5   : > { %v1981_v45 = vmul.f32 0.03125, %v1979_v43  ;;  %3809 = vrsqrt.f32 %v1988_v42  ;;  %v2245_v42 = vrot.slane %v4513_v35, %v4181_v0  ;;  %v2258_v43 = vrot.slane %v4513_v35, %v4187_v8 }
 0xec7   : > { %v1985_v46 = vsub.f32 %v1981_v45, %v1983_v44  ;;  %v2271_v44 = vrot.slane %v4513_v35, %v4218_v29  ;;  %v2279_v45 = vrot.slane %v4513_v35, %v4215_v28 }
 0xec9   : > { %v1987_v47 = vmax.f32 %v1985_v46, 0.0 }
 0xecb   : > { %v1989_v34 = vadd.f32 1e-05, %v1987_v47 }
 0xecd   : > { %3811 = vrsqrt.f32 %v1989_v34 }
 0xed2   : > { %v3810_v50 = vpop.eup %3809 }
 0xed3   : > { %v1994_v52 = vmul.f32 %v3810_v50, %v1992_v51 }
 0xed5   : > { %v2000_v41 = vmul.f32 %v1999_v12, %v1994_v52 }
 0xed7   : > { %v2006_v53 = vadd.f32 %v2005_v48, %v2000_v41 }
 0xeda   : > { %v3812_v58 = vpop.eup %3811 }
 0xedb   : > { %v1995_v21 = vmul.f32 %v3812_v58, %v1993_v55 }
 0xedd   : > { %v2001_v59 = vmul.f32 %v1999_v12, %v1995_v21 }
 0xedf   : > { %v2007_v20 = vadd.f32 %v2005_v48, %v2001_v59 }
 0xee1   : > { %v2008_v61 = vpack.c.bf16 %v2007_v20, %v2006_v53 }
 0xee3   : > { %3526 = vmatmul.mubr.bf16.vlgmr.msra.gmra.mxu1 %v2008_v61  ;;  %3546 = vmatmul.mubr.bf16.vlgmr.msra.gmra.mxu0 %v2008_v61 }
 0xee4   : > { %3565 = vmatprep.mubr.msk.bf16.mxu1 %vm3916_vm0, %v3915_v7  ;;  %3585 = vmatprep.mubr.msk.bf16.mxu0 %vm3916_vm0, %v3915_v7 }
 0xee5   : > { %3550 = vmatpush3.bf16.msra.mxu1 %v3737_v14 }
 0xee6   : > { %3551 = vmatprep.subr.bf16.mxu1 %v3915_v7 }
 0xee9   : > { %3552 = vmatpush3.bf16.msra.mxu1 %v3738_v16 }
 0xeea   : > { %3553 = vmatprep.subr.bf16.mxu1 %v3915_v7 }
 0xeed   : > { %3554 = vmatpush3.bf16.msra.mxu1 %v3739_v54 }
 0xeee   : > { %3555 = vmatprep.subr.bf16.mxu1 %v3915_v7 }
 0xef1   : > { %3556 = vmatpush3.bf16.msra.mxu1 %v3740_v25 }
 0xef2   : > { %3557 = vmatprep.subr.bf16.mxu1 %v3915_v7 }
 0xef5   : > { %3558 = vmatpush3.bf16.msra.mxu1 %v3741_v2 }
 0xef6   : > { %3559 = vmatprep.subr.bf16.mxu1 %v3915_v7 }
 0xef9   : > { %3560 = vmatpush3.bf16.msra.mxu1 %v3742_v63 }
 0xefa   : > { %3561 = vmatprep.subr.bf16.mxu1 %v3915_v7 }
 0xefd   : > { %3562 = vmatpush3.bf16.msra.mxu1 %v3743_v22 }
 0xefe   : > { %3563 = vmatprep.subr.bf16.mxu1 %v3915_v7 }
 0xf01   : > { %3564 = vmatpush3.bf16.msra.mxu1 %v3744_v4 }
 0xf02   : > { %3589 = vmatprep.subr.bf16.mxu1 %v3915_v7 }
 0xfa3   : > { %v2108_v26 = vpop.f32.mrf.mxu1  ;;  %v2214_v5 = vpop.f32.mrf.mxu0 }
 0xfa4   : > { %v3072_v62 = vmul.f32 -1.442695, %v2214_v5 }
 0xfa5   : > { %v3527_v6 = vpop.f32.mrf.mxu1  ;;  %v3547_v9 = vpop.f32.mrf.mxu0 }
 0xfa6   : > { %3813 = vpow2.f32 %v3072_v62 }
 0xfa7   : > { %v2111_v60 = vpop.f32.mrf.mxu1  ;;  %v2217_v10 = vpop.f32.mrf.mxu0 }
 0xfa8   : > { %v3073_v49 = vmul.f32 -1.442695, %v2217_v10 }
 0xfa9   : > { %v3528_v11 = vpop.f32.mrf.mxu1  ;;  %v3548_v13 = vpop.f32.mrf.mxu0 }
 0xfaa   : > { %3815 = vpow2.f32 %v3073_v49  ;;  %v2318_v11 = vrot.slane %v240_v30, %v4125_v57 }
 0xfb3   : > { %v3814_v17 = vpop.eup %3813 }
 0xfb4   : > { %v2227_v18 = vadd.f32 1.0, %v3814_v17 }
 0xfb6   : > { %3817 = vrcp.f32 %v2227_v18 }
 0xfb7   : > { %v3816_v19 = vpop.eup %3815 }
 0xfb8   : > { %v2228_v23 = vadd.f32 1.0, %v3816_v19 }
 0xfba   : > { %3819 = vrcp.f32 %v2228_v23 }
 0xfc3   : > { %v3818_v24 = vpop.eup %3817 }
 0xfc4   : > { %v2233_v3 = vmul.f32 %v3818_v24, %v2108_v26 }
 0xfc6   : > { %v2235_v36 = vmul.f32 %v4509_v27, %v2233_v3 }
 0xfc7   : > { %v3820_v31 = vpop.eup %3819 }
 0xfc8   : > { %v2234_v37 = vmul.f32 %v3820_v31, %v2111_v60  ;;  %v2237_v47 = vrot.slane %v2235_v36, 5  ;;  %v2250_v50 = vrot.slane %v2235_v36, 6  ;;  %v2263_v12 = vrot.slane %v2235_v36, 7 }
 0xfc9   : > { %v2284_v54 = vrot.slane %v2235_v36, 1  ;;  %v2297_v62 = vrot.slane %v2235_v36, 2  ;;  %v2280_v10 = vmul.f32 %v2279_v45, %v2235_v36  ;;  %v2310_v18 = vrot.slane %v2235_v36, 3 }
 0xfca   : > { %v2236_v46 = vmul.f32 %v4509_v27, %v2234_v37 }
 0xfcc   : > { %v2238_v34 = vrot.slane %v2236_v46, 5  ;;  %v2251_v51 = vrot.slane %v2236_v46, 6  ;;  %v2264_v52 = vrot.slane %v2236_v46, 7  ;;  %v2285_v55 = vrot.slane %v2236_v46, 1 }
 0xfcd   : > { %v2298_v25 = vrot.slane %v2236_v46, 2  ;;  %v2311_v6 = vrot.slane %v2236_v46, 3  ;;  %v2281_v49 = vmul.f32 %v2279_v45, %v2236_v46 }
 0xfce   : > { %v2240_v58 = vsel %vm2239_vm7, %v2237_v47, %v2238_v34  ;;  %v2241_v21 = vsel %vm2239_vm7, %v2238_v34, %v2237_v47  ;;  %v2253_v41 = vsel %vm2252_vm8, %v2250_v50, %v2251_v51  ;;  %v2254_v48 = vsel %vm2252_vm8, %v2251_v51, %v2250_v50 }
 0xfcf   : > { %v2246_v59 = vmul.f32 %v2245_v42, %v2241_v21  ;;  %v2247_v53 = vmul.f32 %v2245_v42, %v2240_v58  ;;  %v2259_v20 = vmul.f32 %v2258_v43, %v2254_v48  ;;  %v2260_v61 = vmul.f32 %v2258_v43, %v2253_v41 }
 0xfd0   : > { %v2266_v14 = vsel %vm2265_vm9, %v2263_v12, %v2264_v52  ;;  %v2267_v16 = vsel %vm2265_vm9, %v2264_v52, %v2263_v12  ;;  %v2287_v26 = vsel %vm2286_vm10, %v2284_v54, %v2285_v55  ;;  %v2288_v5 = vsel %vm2286_vm10, %v2285_v55, %v2284_v54 }
 0xfd1   : > { %v2261_v2 = vadd.f32 %v2259_v20, %v2246_v59  ;;  %v2262_v63 = vadd.f32 %v2260_v61, %v2247_v53  ;;  %v2272_v22 = vmul.f32 %v2271_v44, %v2267_v16  ;;  %v2273_v4 = vmul.f32 %v2271_v44, %v2266_v14 }
 0xfd2   : > { %v2300_v13 = vsel %vm2299_vm11, %v2297_v62, %v2298_v25  ;;  %v2301_v17 = vsel %vm2299_vm11, %v2298_v25, %v2297_v62  ;;  %v2293_v24 = vmul.f32 %v2292_v38, %v2287_v26  ;;  %v2294_v3 = vmul.f32 %v2292_v38, %v2288_v5  ;;  %v4553_v62 = vld [vmem:[%s4036_s8 + $0x8] sm:$0xff] }
 0xfd3   : > { %v2274_v9 = vadd.f32 %v2272_v22, %v2261_v2  ;;  %v2275_v60 = vadd.f32 %v2273_v4, %v2262_v63  ;;  %v2313_v31 = vsel %vm2312_vm12, %v2310_v18, %v2311_v6  ;;  %v2314_v37 = vsel %vm2312_vm12, %v2311_v6, %v2310_v18 }
 0xfd4   : > { %v2306_v30 = vmul.f32 %v2305_v40, %v2300_v13  ;;  %v2307_v44 = vmul.f32 %v2305_v40, %v2301_v17  ;;  %v2319_v47 = vmul.f32 %v2318_v11, %v2313_v31  ;;  %v2320_v34 = vmul.f32 %v2318_v11, %v2314_v37 }
 0xfd5   : > { %v2282_v19 = vadd.f32 %v2280_v10, %v2274_v9  ;;  %v2283_v23 = vadd.f32 %v2281_v49, %v2275_v60  ;;  %v2356_v6 = vrot.slane %v4553_v62, %v4181_v0  ;;  %v2362_v49 = vrot.slane %v4553_v62, %v4187_v8 }
 0xfd7   : > { %v2295_v42 = vadd.f32 %v2293_v24, %v2282_v19  ;;  %v2296_v43 = vadd.f32 %v2294_v3, %v2283_v23 }
 0xfd9   : > { %v2308_v45 = vadd.f32 %v2306_v30, %v2295_v42  ;;  %v2309_v46 = vadd.f32 %v2307_v44, %v2296_v43 }
 0xfdb   : > { %v2321_v50 = vadd.f32 %v2319_v47, %v2308_v45  ;;  %v2322_v36 = vadd.f32 %v2320_v34, %v2309_v46 }
 0xfdd   : > { %v2323_v51 = vmul.f32 %v4509_v27, %v2321_v50  ;;  %v2324_v38 = vmul.f32 %v4509_v27, %v2322_v36 }
 0xfdf   : > { %v2325_v52 = vadd.f32 %v2324_v38, %v2323_v51  ;;  %v2334_v12 = vmul.f32 %v2323_v51, %v2323_v51  ;;  %v2335_v55 = vmul.f32 %v2324_v38, %v2324_v38  ;;  %v3745_v51 = vld [vmem:[%s4025_s9 + $0x278] sm:$0xff]   ;;  %v3747_v38 = vld [vmem:[%s4025_s9 + $0x268] sm:$0xff]  }
 0xfe0   : > { %3570 = vmatpush3.bf16.msra.mxu0 %v3745_v51 }
 0xfe1   : > { %v2326_v58 = vrot.slane %v2325_v52, 4  ;;  %v2336_v32 = vadd.f32 %v2335_v55, %v2334_v12  ;;  %3571 = vmatprep.subr.bf16.mxu0 %v3915_v7  ;;  %v3749_v12 = vld [vmem:[%s4025_s9 + $0x258] sm:$0xff]   ;;  %v3750_v55 = vld [vmem:[%s4025_s9 + $0x250] sm:$0xff]  }
 0xfe3   : > { %v2327_v21 = vadd.f32 %v2326_v58, %v2325_v52  ;;  %v2337_v41 = vrot.slane %v2336_v32, 4  ;;  %v3748_v52 = vld [vmem:[%s4025_s9 + $0x260] sm:$0xff]   ;;  %v3751_v58 = vld [vmem:[%s4025_s9 + $0x248] sm:$0xff]  }
 0xfe5   : > { %v2328_v48 = vrot.slane %v2327_v21, 2  ;;  %v2338_v59 = vadd.f32 %v2337_v41, %v2336_v32  ;;  %v3752_v32 = vld [vmem:[%s4025_s9 + $0x240] sm:$0xff]  }
 0xfe7   : > { %v2329_v40 = vadd.f32 %v2328_v48, %v2327_v21  ;;  %v2339_v53 = vrot.slane %v2338_v59, 2 }
 0xfe9   : > { %v2330_v20 = vrot.slane %v2329_v40, 1  ;;  %v2340_v61 = vadd.f32 %v2339_v53, %v2338_v59 }
 0xfeb   : > { %v2331_v14 = vadd.f32 %v2330_v20, %v2329_v40  ;;  %v2341_v16 = vrot.slane %v2340_v61, 1 }
 0xfed   : > { %v2333_v54 = vmul.f32 0.125, %v2331_v14  ;;  %v2342_v25 = vadd.f32 %v2341_v16, %v2340_v61 }
 0xfef   : > { %v2343_v2 = vmul.f32 0.125, %v2342_v25  ;;  %v2344_v27 = vmul.f32 %v2333_v54, %v2333_v54  ;;  %v2346_v26 = vsub.f32 %v2321_v50, %v2333_v54  ;;  %v2347_v5 = vsub.f32 %v2322_v36, %v2333_v54 }
 0xff1   : > { %v2345_v63 = vsub.f32 %v2343_v2, %v2344_v27 }
 0xff3   : > { %v2348_v22 = vmax.f32 %v2345_v63, 0.0 }
 0xff5   : > { %v2349_v4 = vadd.f32 1e-05, %v2348_v22 }
 0xff7   : > { %3821 = vrsqrt.f32 %v2349_v4 }
0x1004   : > { %v3822_v9 = vpop.eup %3821 }
0x1005   : > { %v2351_v60 = vmul.f32 %v3822_v9, %v2346_v26  ;;  %v2352_v10 = vmul.f32 %v3822_v9, %v2347_v5  ;;  %v2519_v5 = vrot.slane %v4553_v62, %v4218_v29  ;;  %v3754_v29 = vld [vmem:[%s4025_s9 + $0x2b0] sm:$0xff]  }
0x1007   : > { %v2357_v11 = vmul.f32 %v2356_v6, %v2351_v60  ;;  %v2358_v13 = vmul.f32 %v2356_v6, %v2352_v10 }
0x1009   : > { %v2363_v17 = vadd.f32 %v2362_v49, %v2357_v11  ;;  %v2364_v18 = vadd.f32 %v2362_v49, %v2358_v13  ;;  %v2525_v11 = vrot.slane %v4553_v62, %v4215_v28  ;;  %v3756_v28 = vld [vmem:[%s4025_s9 + $0x2a0] sm:$0xff]   ;;  %v3757_v62 = vld [vmem:[%s4025_s9 + $0x298] sm:$0xff]  }
0x100b   : > { %v3074_v19 = vmul.f32 -1.442695, %v2363_v17  ;;  %v3075_v23 = vmul.f32 -1.442695, %v2364_v18 }
0x100d   : > { %3823 = vpow2.f32 %v3074_v19 }
0x100e   : > { %3825 = vpow2.f32 %v3075_v23  ;;  %v3753_v23 = vld [vmem:[%s4025_s9 + $0x2b8] sm:$0xff]  }
0x101a   : > { %v3824_v24 = vpop.eup %3823 }
0x101b   : > { %v3826_v3 = vpop.eup %3825  ;;  %v2371_v31 = vadd.f32 1.0, %v3824_v24  ;;  %v3755_v24 = vld [vmem:[%s4025_s9 + $0x2a8] sm:$0xff]  }
0x101c   : > { %v2372_v37 = vadd.f32 1.0, %v3826_v3  ;;  %v3758_v3 = vld [vmem:[%s4025_s9 + $0x290] sm:$0xff]  }
0x101d   : > { %3827 = vrcp.f32 %v2371_v31  ;;  %v3759_v31 = vld [vmem:[%s4025_s9 + $0x288] sm:$0xff]  }
0x101e   : > { %3829 = vrcp.f32 %v2372_v37  ;;  %v3760_v37 = vld [vmem:[%s4025_s9 + $0x280] sm:$0xff]  }
0x102a   : > { %v3828_v0 = vpop.eup %3827 }
0x102b   : > { %v3830_v42 = vpop.eup %3829  ;;  %v2377_v43 = vmul.f32 %v3828_v0, %v2363_v17  ;;  %v2549_v0 = vrot.slane %v4513_v35, %v4092_v33 }
0x102c   : > { %v2378_v30 = vmul.f32 %v3830_v42, %v2364_v18 }
0x102e   : > { %v2379_v8 = vpack.c.bf16 %v2378_v30, %v2377_v43 }
0x1030   : > { %3566 = vmatmul.mubr.bf16.vlgmr.msra.gmra.mxu1 %v2379_v8 }
0x1031   : > { %3605 = vmatprep.mubr.msk.bf16.mxu1 %vm3916_vm0, %v3915_v7  ;;  %3590 = vmatpush3.bf16.msra.mxu1 %v3753_v23 }
0x1032   : > { %3591 = vmatprep.subr.bf16.mxu1 %v3915_v7 }
0x1035   : > { %3592 = vmatpush3.bf16.msra.mxu1 %v3754_v29 }
0x1036   : > { %3593 = vmatprep.subr.bf16.mxu1 %v3915_v7 }
0x1039   : > { %3594 = vmatpush3.bf16.msra.mxu1 %v3755_v24 }
0x103a   : > { %3595 = vmatprep.subr.bf16.mxu1 %v3915_v7 }
0x103d   : > { %3596 = vmatpush3.bf16.msra.mxu1 %v3756_v28 }
0x103e   : > { %3597 = vmatprep.subr.bf16.mxu1 %v3915_v7 }
0x1041   : > { %3598 = vmatpush3.bf16.msra.mxu1 %v3757_v62 }
0x1042   : > { %3599 = vmatprep.subr.bf16.mxu1 %v3915_v7 }
0x1045   : > { %3600 = vmatpush3.bf16.msra.mxu1 %v3758_v3 }
0x1046   : > { %3601 = vmatprep.subr.bf16.mxu1 %v3915_v7 }
0x1049   : > { %3602 = vmatpush3.bf16.msra.mxu1 %v3759_v31 }
0x104a   : > { %3603 = vmatprep.subr.bf16.mxu1 %v3915_v7 }
0x104d   : > { %3604 = vmatpush3.bf16.msra.mxu1 %v3760_v37 }
0x10f0   : > { %v2479_v44 = vpop.f32.mrf.mxu1 }
0x10f1   : > { %v4562_v45 = vadd.f32 %v2479_v44, %v4438_v56 }
0x10f2   : > { %v3567_v46 = vpop.f32.mrf.mxu1 }
0x10f3   : > { %2488 = vadd.xlane.f32.xlu1 %v4562_v45  ;;  %v2494_v50 = vmul.f32 %v4562_v45, %v4562_v45 }
0x10f4   : > { %v2482_v47 = vpop.f32.mrf.mxu1 }
0x10f5   : > { %v4566_v34 = vadd.f32 %v2482_v47, %v4444_v1  ;;  %v3746_v1 = vld [vmem:[%s4025_s9 + $0x270] sm:$0xff]  }
0x10f6   : > { %v3568_v36 = vpop.f32.mrf.mxu1  ;;  %3572 = vmatpush3.bf16.msra.mxu0 %v3746_v1 }
0x10f7   : > { %2496 = vadd.xlane.f32.xlu1 %v2494_v50  ;;  %2490 = vadd.xlane.f32.xlu0 %v4566_v34  ;;  %v2495_v56 = vmul.f32 %v4566_v34, %v4566_v34 }
0x10f8   : > { %3573 = vmatprep.subr.bf16.mxu0 %v3915_v7 }
0x10fa   : > { %3574 = vmatpush3.bf16.msra.mxu0 %v3747_v38 }
0x10fb   : > { %2498 = vadd.xlane.f32.xlu0 %v2495_v56  ;;  %3575 = vmatprep.subr.bf16.mxu0 %v3915_v7 }
0x10fe   : > { %3576 = vmatpush3.bf16.msra.mxu0 %v3748_v52 }
0x10ff   : > { %3577 = vmatprep.subr.bf16.mxu0 %v3915_v7 }
0x1102   : > { %3578 = vmatpush3.bf16.msra.mxu0 %v3749_v12 }
0x1103   : > { %3579 = vmatprep.subr.bf16.mxu0 %v3915_v7 }
0x1106   : > { %3580 = vmatpush3.bf16.msra.mxu0 %v3750_v55  ;;  %v2674_v55 = vrot.slane %v4513_v35, %v4101_v39 }
0x1107   : > { %3581 = vmatprep.subr.bf16.mxu0 %v3915_v7 }
0x110a   : > { %3582 = vmatpush3.bf16.msra.mxu0 %v3751_v58 }
0x110b   : > { %3583 = vmatprep.subr.bf16.mxu0 %v3915_v7 }
0x110e   : > { %3584 = vmatpush3.bf16.msra.mxu0 %v3752_v32 }
0x117c   : > { %v2489_v21 = vpop.xlane.xlu1 %2488 }
0x117d   : > { %v2492_v41 = vmul.f32 0.03125, %v2489_v21 }
0x117f   : > { %v2502_v40 = vmul.f32 %v2492_v41, %v2492_v41  ;;  %v2512_v4 = vsub.f32 %v4562_v45, %v2492_v41 }
0x1180   : > { %v2497_v48 = vpop.xlane.xlu1 %2496  ;;  %v2491_v59 = vpop.xlane.xlu0 %2490 }
0x1181   : > { %v2500_v53 = vmul.f32 0.03125, %v2497_v48  ;;  %v2493_v20 = vmul.f32 0.03125, %v2491_v59 }
0x1183   : > { %v2504_v61 = vsub.f32 %v2500_v53, %v2502_v40  ;;  %v2503_v54 = vmul.f32 %v2493_v20, %v2493_v20  ;;  %v2513_v9 = vsub.f32 %v4566_v34, %v2493_v20 }
0x1184   : > { %v2499_v14 = vpop.xlane.xlu0 %2498 }
0x1185   : > { %v2506_v16 = vmax.f32 %v2504_v61, 0.0  ;;  %v2501_v25 = vmul.f32 0.03125, %v2499_v14 }
0x1187   : > { %v2508_v2 = vadd.f32 1e-05, %v2506_v16  ;;  %v2505_v27 = vsub.f32 %v2501_v25, %v2503_v54 }
0x1189   : > { %3831 = vrsqrt.f32 %v2508_v2  ;;  %v2507_v63 = vmax.f32 %v2505_v27, 0.0 }
0x118b   : > { %v2509_v22 = vadd.f32 1e-05, %v2507_v63 }
0x118d   : > { %3833 = vrsqrt.f32 %v2509_v22 }
0x1196   : > { %v3832_v26 = vpop.eup %3831 }
0x1197   : > { %v2514_v6 = vmul.f32 %v3832_v26, %v2512_v4 }
0x1199   : > { %v2520_v49 = vmul.f32 %v2519_v5, %v2514_v6 }
0x119a   : > { %v3834_v60 = vpop.eup %3833 }
0x119b   : > { %v2515_v10 = vmul.f32 %v3834_v60, %v2513_v9  ;;  %v2526_v17 = vadd.f32 %v2525_v11, %v2520_v49  ;;  %v2799_v49 = vrot.slane %v4513_v35, %v4125_v57 }
0x119d   : > { %v2521_v13 = vmul.f32 %v2519_v5, %v2515_v10 }
0x119f   : > { %v2527_v18 = vadd.f32 %v2525_v11, %v2521_v13 }
0x11a1   : > { %v2528_v19 = vpack.c.bf16 %v2527_v18, %v2526_v17  ;;  %v2805_v17 = vrot.slane %v4513_v35, %v4132_v15 }
0x11a3   : > { %3586 = vmatmul.mubr.bf16.vlgmr.msra.gmra.mxu0 %v2528_v19 }
0x1263   : > { %v2632_v42 = vpop.f32.mrf.mxu0 }
0x1264   : > { %v2633_v43 = vadd.f32 %v2632_v42, %v2549_v0 }
0x1265   : > { %v3587_v30 = vpop.f32.mrf.mxu0 }
0x1266   : > { %v3124_v8 = vmul.f32 -1.442695, %v2633_v43 }
0x1267   : > { %v2635_v44 = vpop.f32.mrf.mxu0 }
0x1268   : > { %3835 = vpow2.f32 %v3124_v8  ;;  %v2636_v46 = vadd.f32 %v2635_v44, %v2549_v0 }
0x1269   : > { %v3588_v47 = vpop.f32.mrf.mxu0 }
0x126a   : > { %v3125_v50 = vmul.f32 -1.442695, %v2636_v46 }
0x126c   : > { %3837 = vpow2.f32 %v3125_v50 }
0x1275   : > { %v3836_v36 = vpop.eup %3835 }
0x1276   : > { %v2645_v56 = vadd.f32 1.0, %v3836_v36 }
0x1278   : > { %3839 = vrcp.f32 %v2645_v56 }
0x1279   : > { %v3838_v51 = vpop.eup %3837 }
0x127a   : > { %v2646_v1 = vadd.f32 1.0, %v3838_v51 }
0x127c   : > { %3841 = vrcp.f32 %v2646_v1 }
0x1285   : > { %v3840_v7 = vpop.eup %3839 }
0x1286   : > { %v2651_v52 = vmul.f32 %v3840_v7, %v2633_v43 }
0x1289   : > { %v3842_v38 = vpop.eup %3841 }
0x128a   : > { %v2652_v33 = vmul.f32 %v3842_v38, %v2636_v46 }
0x128c   : > { %v2653_v12 = vpack.c.bf16 %v2652_v33, %v2651_v52 }
0x128e   : > { %3606 = vmatmul.mubr.bf16.vlgmr.msra.gmra.mxu1 %v2653_v12 }
0x134e   : > { %v2757_v58 = vpop.f32.mrf.mxu1 }
0x134f   : > { %v2758_v32 = vadd.f32 %v2757_v58, %v2674_v55 }
0x1350   : > { %v3607_v21 = vpop.f32.mrf.mxu1 }
0x1351   : > { %v2764_v41 = vmul.f32 0.5, %v2758_v32 }
0x1352   : > { %v2760_v48 = vpop.f32.mrf.mxu1 }
0x1353   : > { %v2766_v59 = vadd.f32 %v2764_v41, %v4562_v45  ;;  %v2761_v40 = vadd.f32 %v2760_v48, %v2674_v55 }
0x1354   : > { %v3608_v53 = vpop.f32.mrf.mxu1 }
0x1355   : > { %v2765_v20 = vmul.f32 0.5, %v2761_v40  ;;  %2768 = vadd.xlane.f32.xlu1 %v2766_v59  ;;  %v2774_v14 = vmul.f32 %v2766_v59, %v2766_v59 }
0x1357   : > { %v2767_v61 = vadd.f32 %v2765_v20, %v4566_v34 }
0x1359   : > { %2776 = vadd.xlane.f32.xlu1 %v2774_v14  ;;  %2770 = vadd.xlane.f32.xlu0 %v2767_v61  ;;  %v2775_v16 = vmul.f32 %v2767_v61, %v2767_v61 }
0x135d   : > { %2778 = vadd.xlane.f32.xlu0 %v2775_v16 }
0x13de   : > { %v2769_v54 = vpop.xlane.xlu1 %2768 }
0x13df   : > { %v2772_v39 = vmul.f32 0.03125, %v2769_v54 }
0x13e1   : > { %v2782_v27 = vmul.f32 %v2772_v39, %v2772_v39  ;;  %v2792_v11 = vsub.f32 %v2766_v59, %v2772_v39 }
0x13e2   : > { %v2777_v25 = vpop.xlane.xlu1 %2776  ;;  %v2771_v2 = vpop.xlane.xlu0 %2770 }
0x13e3   : > { %v2780_v63 = vmul.f32 0.03125, %v2777_v25  ;;  %v2773_v22 = vmul.f32 0.03125, %v2771_v2 }
0x13e5   : > { %v2784_v4 = vsub.f32 %v2780_v63, %v2782_v27  ;;  %v2783_v5 = vmul.f32 %v2773_v22, %v2773_v22  ;;  %v2793_v23 = vsub.f32 %v2767_v61, %v2773_v22 }
0x13e6   : > { %v2779_v45 = vpop.xlane.xlu0 %2778 }
0x13e7   : > { %v2786_v26 = vmax.f32 %v2784_v4, 0.0  ;;  %v2781_v6 = vmul.f32 0.03125, %v2779_v45 }
0x13e9   : > { %v2788_v9 = vadd.f32 1e-05, %v2786_v26  ;;  %v2785_v60 = vsub.f32 %v2781_v6, %v2783_v5 }
0x13eb   : > { %3843 = vrsqrt.f32 %v2788_v9  ;;  %v2787_v34 = vmax.f32 %v2785_v60, 0.0 }
0x13ed   : > { %v2789_v10 = vadd.f32 1e-05, %v2787_v34 }
0x13ef   : > { %3845 = vrsqrt.f32 %v2789_v10 }
0x13f8   : > { %v3844_v13 = vpop.eup %3843 }
0x13f9   : > { %v2794_v18 = vmul.f32 %v3844_v13, %v2792_v11 }
0x13fb   : > { %v2800_v19 = vmul.f32 %v2799_v49, %v2794_v18 }
0x13fc   : > { %v3846_v29 = vpop.eup %3845 }
0x13fd   : > { %v2806_v24 = vadd.f32 %v2805_v17, %v2800_v19  ;;  %v2795_v28 = vmul.f32 %v3846_v29, %v2793_v23 }
0x13ff   : > { %2808 = vst [vmem:[%s4642_s4] sm:$0xff] %v2806_v24  ;;  %v2801_v62 = vmul.f32 %v2799_v49, %v2795_v28 }
0x1401   : > { %v2807_v3 = vadd.f32 %v2805_v17, %v2801_v62 }
0x1403   : > { %2809 = vst [vmem:[%s4642_s4 + $0x8] sm:$0xff] %v2807_v3 }
0x1404 PF: > { %p14_p1 = scmp.ge.s32.totalorder %s3968_s20, 4   ;;  %s4648_s15 = smov %s3902_s16 }
0x1405   : > { %s4649_s16 = smov %s3906_s17  ;;  %s4650_s17 = smov %s3978_s23 }
0x1406   : > { %s4651_s18 = smov %s3968_s20  ;;  %16 = sbr.rel (!%p14_p1) target bundleno = 3 (0x3), region = 89 }
0x140b   :  { %2821 = vsyncpa [#allocation3], 1 }
0x140c   :  { %2823 = vsyncpa [#allocation3 + $0x1], 1 }

</bundles_post_ra>
